<compile_context>
chip_gen: v6e
topology: v6e:2x2x1
jax: 0.10.0
libtpu: 0.0.40
codegen_flags: <defaults>
</compile_context>

<pallas_src>
import numpy as np
import jax
import jax.numpy as jnp
from jax import lax
from jax.experimental import pallas as pl
from jax.experimental.pallas import tpu as pltpu

# ---------------- config (synthetic, small) ----------------
VOCAB = 40        # len(vocabulary)
PAD_INDEX = 0
E = 32            # word_embedding_size
H = 32            # lstm_hidden_size
I_FEAT = 64       # img_feature_size
B = 2             # batch_size
R = 2             # num_rounds
T = 8             # max_sequence_length (question)
P = 8             # number of image proposals (img.shape[1])
HIST_T = T * 20   # history sequence length (160)

UNROLL = 8        # manual unroll factor for the history recurrence

_VMEM = pl.BlockSpec(memory_space=pltpu.MemorySpace.VMEM)


# ---------------- fused Pallas kernel ----------------
def encoder_kernel(xgq_ref, xgh_ref, lenq_ref, lenh_ref,
                   whhq_ref, whhh_ref,
                   imgf_ref, imgft_ref, sel_ref,
                   wprojT_ref, bproj_ref, wattn_ref, battn_ref,
                   wfi_ref, wfq_ref, wfh_ref, bfus_ref,
                   out_ref, hh_scr, ch_scr):
    """Fused question-LSTM + history-LSTM + late-fusion forward.

    xgq_ref: (Tq, N, 4H)  per-step question gate inputs (= emb@Wih + b, gathered)
    xgh_ref: (Th, N, 4H)  per-step history  gate inputs
    lenq/lenh: (N, H) int32, valid lengths broadcast along lanes
    whhq/whhh: (H, 4H)    hidden->gates weights (gate order i, f, g, o)
    imgf_ref:  (N*P, I)   image features (replicated per round, flattened)
    imgft_ref: (I, N*P)   transpose of the above
    sel_ref:   (N, N*P)   0/1 block selector (row n owns columns n*P..n*P+P-1)
    wprojT:(H, I), bproj:(1, H)          image_features_projection (transposed)
    wattn:(1, H), battn:(1, 1)           attention_proj (Linear(H, 1))
    wfi/wfq/wfh:(I,H)/(H,H)/(H,H), bfus:(1,H)   fusion Linear split by rows
    out_ref: (N, H)
    """
    N, H_ = out_ref.shape
    TQ = xgq_ref.shape[0]
    TH = xgh_ref.shape[0]

    lens_q = lenq_ref[...]          # (N, H) int32
    lens_h = lenh_ref[...]
    whh_q = whhq_ref[...]           # (H, 4H) kept in vregs across the loops
    whh_h = whhh_ref[...]

    def step(xg_t, h, c, whh, lens, t):
        # gates = x@Wih + b (pre-folded into xg_t) + h@Whh
        gates = xg_t + jnp.dot(h, whh, preferred_element_type=jnp.float32)  # (N,4H)
        sg = jax.nn.sigmoid(gates)   # full-slab EUP
        tg = jnp.tanh(gates)         # full-slab EUP
        i_g = sg[:, 0:H_]
        f_g = sg[:, H_:2 * H_]
        g_a = tg[:, 2 * H_:3 * H_]
        o_g = sg[:, 3 * H_:4 * H_]
        c_new = f_g * c + i_g * g_a
        h_new = o_g * jnp.tanh(c_new)
        mask = t < lens              # (N, H) bool
        return jnp.where(mask, h_new, h), jnp.where(mask, c_new, c)

    zeros = jnp.zeros((N, H_), jnp.float32)
    hq, cq = zeros, zeros
    hh, ch = zeros, zeros

    # --- prologue: interleave the two recurrences for the first TQ steps ---
    for t in range(TQ):
        hq, cq = step(xgq_ref[t], hq, cq, whh_q, lens_q, t)
        hh, ch = step(xgh_ref[t], hh, ch, whh_h, lens_h, t)
    hh_scr[...] = hh
    ch_scr[...] = ch

    # --- main loop: remaining history steps, unrolled by UNROLL ---
    n_blocks = (TH - TQ) // UNROLL

    def body(blk, carry):
        h = hh_scr[...]
        c = ch_scr[...]
        t0 = TQ + blk * UNROLL
        for j in range(UNROLL):
            h, c = step(xgh_ref[t0 + j], h, c, whh_h, lens_h, t0 + j)
        hh_scr[...] = h
        ch_scr[...] = c
        return carry

    lax.fori_loop(0, n_blocks, body, 0)

    hh = hh_scr[...]
    ch = ch_scr[...]
    # remainder (empty when (TH-TQ) % UNROLL == 0)
    for t in range(TQ + n_blocks * UNROLL, TH):
        hh, ch = step(xgh_ref[t], hh, ch, whh_h, lens_h, t)

    # --- fusion epilogue (pure 2D matmuls) ---
    q = hq                                                     # (N, H)
    qw = q * wattn_ref[...]                                    # (N, H)
    V = jnp.dot(qw, wprojT_ref[...],
                preferred_element_type=jnp.float32)            # (N, I)
    const = (jnp.sum(qw * bproj_ref[...], axis=-1, keepdims=True)
             + battn_ref[0, 0])                                # (N, 1)

    logits = jnp.dot(V, imgft_ref[...],
                     preferred_element_type=jnp.float32) + const   # (N, N*P)
    logits = jnp.where(sel_ref[...] > 0.5, logits, jnp.float32(-1e30))

    m = jnp.max(logits, axis=-1, keepdims=True)
    e = jnp.exp(logits - m)
    attn = e / jnp.sum(e, axis=-1, keepdims=True)              # softmax over own block

    attended = jnp.dot(attn, imgf_ref[...],
                       preferred_element_type=jnp.float32)     # (N, I)

    z = (jnp.dot(attended, wfi_ref[...], preferred_element_type=jnp.float32)
         + jnp.dot(q, wfq_ref[...], preferred_element_type=jnp.float32)
         + jnp.dot(hh, wfh_ref[...], preferred_element_type=jnp.float32)
         + bfus_ref[...])
    out_ref[...] = jnp.tanh(z)


# ---------------- wrapper ----------------
def late_fusion_encoder(params, batch):
    img = batch["img_feat"]                          # (B, P, I)
    ques = batch["ques"]                             # (B, R, T)
    hist = batch["hist"]                             # (B, R, T*20)
    Bq, Rq, Tq = ques.shape
    Th = hist.shape[-1]
    N = Bq * Rq
    P_, I_ = img.shape[1], img.shape[2]
    emb = params["word_embed"]

    # Fold input projection + bias into the embedding table (plain-JAX glue).
    tbl_q = emb @ params["wih_q"] + params["b_q"]    # (VOCAB, 4H)
    tbl_h = emb @ params["wih_h"] + params["b_h"]    # (VOCAB, 4H)

    xgq = jnp.transpose(tbl_q[ques.reshape(N, Tq)], (1, 0, 2))   # (Tq, N, 4H)
    xgh = jnp.transpose(tbl_h[hist.reshape(N, Th)], (1, 0, 2))   # (Th, N, 4H)

    lens_q = jnp.broadcast_to(
        batch["ques_len"].astype(jnp.int32).reshape(N, 1), (N, H))
    lens_h = jnp.broadcast_to(
        batch["hist_len"].astype(jnp.int32).reshape(N, 1), (N, H))

    # replicate image features per round, pre-flatten (glue)
    img_rep = jnp.broadcast_to(img[:, None], (Bq, Rq, P_, I_)).reshape(N, P_, I_)
    img_flat = img_rep.reshape(N * P_, I_)                       # (N*P, I)
    img_flatT = img_flat.T                                       # (I, N*P)
    sel = (jnp.arange(N * P_)[None, :] // P_
           == jnp.arange(N)[:, None]).astype(jnp.float32)        # (N, N*P)

    wprojT = params["wproj"].T                                   # (H, I)

    fused = pl.pallas_call(
        encoder_kernel,
        out_shape=jax.ShapeDtypeStruct((N, H), jnp.float32),
        in_specs=[_VMEM] * 17,
        out_specs=_VMEM,
        scratch_shapes=[pltpu.VMEM((N, H), jnp.float32),
                        pltpu.VMEM((N, H), jnp.float32)],
    )(xgq, xgh, lens_q, lens_h,
      params["whh_q"], params["whh_h"],
      img_flat, img_flatT, sel,
      wprojT, params["bproj"], params["wattn"], params["battn"],
      params["wf_img"], params["wf_q"], params["wf_h"], params["bfus"])

    return fused.reshape(Bq, Rq, H)


# ---------------- pure-JAX reference (for self-check) ----------------
def lstm_ref(x_emb, lengths, wih, whh, b):
    N, T_, _ = x_emb.shape
    H_ = whh.shape[0]
    h = jnp.zeros((N, H_), jnp.float32)
    c = jnp.zeros((N, H_), jnp.float32)
    lens = lengths.astype(jnp.int32).reshape(N, 1)

    def step(carry, t):
        h, c = carry
        x_t = x_emb[:, t, :]
        g = x_t @ wih + h @ whh + b
        i_g = jax.nn.sigmoid(g[:, :H_])
        f_g = jax.nn.sigmoid(g[:, H_:2 * H_])
        g_g = jnp.tanh(g[:, 2 * H_:3 * H_])
        o_g = jax.nn.sigmoid(g[:, 3 * H_:])
        c_new = f_g * c + i_g * g_g
        h_new = o_g * jnp.tanh(c_new)
        mask = t < lens
        return (jnp.where(mask, h_new, h), jnp.where(mask, c_new, c)), None

    (h, c), _ = lax.scan(step, (h, c), jnp.arange(T_))
    return h


def encoder_ref(params, batch):
    img = batch["img_feat"]
    ques = batch["ques"]
    hist = batch["hist"]
    Bq, Rq, Tq = ques.shape
    N = Bq * Rq
    emb = params["word_embed"]

    q_h = lstm_ref(emb[ques.reshape(N, Tq)], batch["ques_len"],
                   params["wih_q"], params["whh_q"], params["b_q"])
    h_h = lstm_ref(emb[hist.reshape(N, hist.shape[-1])], batch["hist_len"],
                   params["wih_h"], params["whh_h"], params["b_h"])

    img_rep = jnp.broadcast_to(img[:, None], (Bq, Rq) + img.shape[1:])
    img_rep = img_rep.reshape(N, img.shape[1], img.shape[2])

    proj = img_rep @ params["wproj"] + params["bproj"]            # (N, P, H)
    prod = proj * q_h[:, None, :]
    logits = jnp.sum(prod * params["wattn"][None, :, :], axis=-1) + params["battn"][0, 0]
    attn = jax.nn.softmax(logits, axis=-1)
    attended = jnp.sum(attn[:, :, None] * img_rep, axis=1)

    z = (attended @ params["wf_img"] + q_h @ params["wf_q"]
         + h_h @ params["wf_h"] + params["bfus"])
    return jnp.tanh(z).reshape(Bq, Rq, -1)


# ---------------- parameter init (deterministic, synthetic) ----------------
def init_params(key):
    ks = jax.random.split(key, 12)
    scale = 0.1

    word_embed = scale * jax.random.normal(ks[0], (VOCAB, E), jnp.float32)
    word_embed = word_embed.at[PAD_INDEX].set(0.0)   # padding_idx zero row

    def lstm_w(k):
        k1, k2, k3 = jax.random.split(k, 3)
        wih = scale * jax.random.normal(k1, (E, 4 * H), jnp.float32)
        whh = scale * jax.random.normal(k2, (H, 4 * H), jnp.float32)
        b = scale * jax.random.normal(k3, (1, 4 * H), jnp.float32)  # b_ih + b_hh
        return wih, whh, b

    wih_q, whh_q, b_q = lstm_w(ks[1])
    wih_h, whh_h, b_h = lstm_w(ks[2])

    # image_features_projection: kaiming_uniform weight, bias = 0
    bound = float(np.sqrt(6.0 / I_FEAT))
    wproj = jax.random.uniform(ks[3], (I_FEAT, H), jnp.float32, -bound, bound)
    bproj = jnp.zeros((1, H), jnp.float32)

    # attention_proj: Linear(H, 1)
    wattn = scale * jax.random.normal(ks[4], (1, H), jnp.float32)
    battn = scale * jax.random.normal(ks[5], (1, 1), jnp.float32)

    # fusion: Linear(I + 2H, H), kaiming_uniform weight, bias = 0
    fusion_size = I_FEAT + 2 * H
    bound = float(np.sqrt(6.0 / fusion_size))
    wfus = jax.random.uniform(ks[6], (fusion_size, H), jnp.float32, -bound, bound)
    wf_img = wfus[:I_FEAT]
    wf_q = wfus[I_FEAT:I_FEAT + H]
    wf_h = wfus[I_FEAT + H:]
    bfus = jnp.zeros((1, H), jnp.float32)

    return dict(word_embed=word_embed,
                wih_q=wih_q, whh_q=whh_q, b_q=b_q,
                wih_h=wih_h, whh_h=whh_h, b_h=b_h,
                wproj=wproj, bproj=bproj,
                wattn=wattn, battn=battn,
                wf_img=wf_img, wf_q=wf_q, wf_h=wf_h, bfus=bfus)


if __name__ == "__main__":
    key = jax.random.PRNGKey(0)
    kp, k1, k2, k3, k4, k5 = jax.random.split(key, 6)

    params = init_params(kp)

    batch = {
        "img_feat": jax.random.normal(k1, (B, P, I_FEAT), jnp.float32),
        "ques": jax.random.randint(k2, (B, R, T), 0, VOCAB, jnp.int32),
        "hist": jax.random.randint(k3, (B, R, HIST_T), 0, VOCAB, jnp.int32),
        "ques_len": jax.random.randint(k4, (B * R,), 1, T + 1, jnp.int32),
        "hist_len": jax.random.randint(k5, (B * R,), 1, HIST_T + 1, jnp.int32),
    }

    out = late_fusion_encoder(params, batch)
    out = jax.block_until_ready(out)

    ref = jax.block_until_ready(encoder_ref(params, batch))
    assert out.shape == (B, R, H), out.shape
    np.testing.assert_allclose(np.asarray(out), np.asarray(ref),
                               rtol=1e-3, atol=1e-3)
    print("KERNEL_OK")
</pallas_src>

<mosaic_0001>
module attributes {stable_mosaic.version = 11 : i64} {
  func.func @encoder_kernel(%arg0: memref<8x4x128xf32, #tpu.memory_space<vmem>>, %arg1: memref<160x4x128xf32, #tpu.memory_space<vmem>>, %arg2: memref<4x32xi32, #tpu.memory_space<vmem>>, %arg3: memref<4x32xi32, #tpu.memory_space<vmem>>, %arg4: memref<32x128xf32, #tpu.memory_space<vmem>>, %arg5: memref<32x128xf32, #tpu.memory_space<vmem>>, %arg6: memref<32x64xf32, #tpu.memory_space<vmem>>, %arg7: memref<64x32xf32, #tpu.memory_space<vmem>>, %arg8: memref<4x32xf32, #tpu.memory_space<vmem>>, %arg9: memref<32x64xf32, #tpu.memory_space<vmem>>, %arg10: memref<1x32xf32, #tpu.memory_space<vmem>>, %arg11: memref<1x32xf32, #tpu.memory_space<vmem>>, %arg12: memref<1x1xf32, #tpu.memory_space<vmem>>, %arg13: memref<64x32xf32, #tpu.memory_space<vmem>>, %arg14: memref<32x32xf32, #tpu.memory_space<vmem>>, %arg15: memref<32x32xf32, #tpu.memory_space<vmem>>, %arg16: memref<1x32xf32, #tpu.memory_space<vmem>>, %arg17: memref<4x32xf32, #tpu.memory_space<vmem>>, %arg18: memref<4x32xf32, #tpu.memory_space<vmem>>, %arg19: memref<4x32xf32, #tpu.memory_space<vmem>>) attributes {dimension_semantics = [], scalar_prefetch = 0 : i64, scratch_operands = 2 : i64, tpu.core_type = #tpu.core_type<tc>} {
    %c0 = arith.constant 0 : index
    %c0_0 = arith.constant 0 : index
    %0 = vector.load %arg2[%c0, %c0_0] : memref<4x32xi32, #tpu.memory_space<vmem>>, vector<4x32xi32>
    %c0_1 = arith.constant 0 : index
    %c0_2 = arith.constant 0 : index
    %1 = vector.load %arg3[%c0_1, %c0_2] : memref<4x32xi32, #tpu.memory_space<vmem>>, vector<4x32xi32>
    %c0_3 = arith.constant 0 : index
    %c0_4 = arith.constant 0 : index
    %2 = vector.load %arg4[%c0_3, %c0_4] : memref<32x128xf32, #tpu.memory_space<vmem>>, vector<32x128xf32>
    %c0_5 = arith.constant 0 : index
    %c0_6 = arith.constant 0 : index
    %3 = vector.load %arg5[%c0_5, %c0_6] : memref<32x128xf32, #tpu.memory_space<vmem>>, vector<32x128xf32>
    %cst = arith.constant 0.000000e+00 : f32
    %4 = vector.broadcast %cst : f32 to vector<4x32xf32>
    %c0_7 = arith.constant 0 : index
    %c0_8 = arith.constant 0 : index
    %c0_9 = arith.constant 0 : index
    %5 = vector.load %arg0[%c0_7, %c0_8, %c0_9] : memref<8x4x128xf32, #tpu.memory_space<vmem>>, vector<1x4x128xf32>
    %6 = vector.shape_cast %5 : vector<1x4x128xf32> to vector<4x128xf32>
    %cst_10 = arith.constant dense<0.000000e+00> : vector<4x128xf32>
    %7 = tpu.matmul %4, %2, %cst_10 {dimension_numbers = #tpu.dot_dimension_numbers<[1], [0], [0], [1], [0, 0, 1, 1], [], []>} : vector<4x32xf32>, vector<32x128xf32>, vector<4x128xf32> -> vector<4x128xf32>
    %8 = arith.addf %6, %7 : vector<4x128xf32>
    %9 = arith.negf %8 : vector<4x128xf32>
    %10 = math.exp %9 : vector<4x128xf32>
    %cst_11 = arith.constant 1.000000e+00 : f32
    %11 = vector.broadcast %cst_11 : f32 to vector<4x128xf32>
    %12 = arith.addf %11, %10 : vector<4x128xf32>
    %13 = arith.divf %11, %12 : vector<4x128xf32>
    %14 = math.tanh %8 : vector<4x128xf32>
    %15 = vector.extract_strided_slice %13 {offsets = [0, 0], sizes = [4, 32], strides = [1, 1]} : vector<4x128xf32> to vector<4x32xf32>
    %16 = vector.extract_strided_slice %13 {offsets = [0, 32], sizes = [4, 32], strides = [1, 1]} : vector<4x128xf32> to vector<4x32xf32>
    %17 = vector.extract_strided_slice %14 {offsets = [0, 64], sizes = [4, 32], strides = [1, 1]} : vector<4x128xf32> to vector<4x32xf32>
    %18 = vector.extract_strided_slice %13 {offsets = [0, 96], sizes = [4, 32], strides = [1, 1]} : vector<4x128xf32> to vector<4x32xf32>
    %19 = arith.mulf %16, %4 : vector<4x32xf32>
    %20 = arith.mulf %15, %17 : vector<4x32xf32>
    %21 = arith.addf %19, %20 : vector<4x32xf32>
    %22 = math.tanh %21 : vector<4x32xf32>
    %23 = arith.mulf %18, %22 : vector<4x32xf32>
    %c0_i32 = arith.constant 0 : i32
    %24 = vector.broadcast %c0_i32 : i32 to vector<4x32xi32>
    %25 = arith.cmpi sgt, %0, %24 : vector<4x32xi32>
    %26 = arith.select %25, %23, %4 : vector<4x32xi1>, vector<4x32xf32>
    %27 = arith.select %25, %21, %4 : vector<4x32xi1>, vector<4x32xf32>
    %c0_12 = arith.constant 0 : index
    %c0_13 = arith.constant 0 : index
    %c0_14 = arith.constant 0 : index
    %28 = vector.load %arg1[%c0_12, %c0_13, %c0_14] : memref<160x4x128xf32, #tpu.memory_space<vmem>>, vector<1x4x128xf32>
    %29 = vector.shape_cast %28 : vector<1x4x128xf32> to vector<4x128xf32>
    %cst_15 = arith.constant dense<0.000000e+00> : vector<4x128xf32>
    %30 = tpu.matmul %4, %3, %cst_15 {dimension_numbers = #tpu.dot_dimension_numbers<[1], [0], [0], [1], [0, 0, 1, 1], [], []>} : vector<4x32xf32>, vector<32x128xf32>, vector<4x128xf32> -> vector<4x128xf32>
    %31 = arith.addf %29, %30 : vector<4x128xf32>
    %32 = arith.negf %31 : vector<4x128xf32>
    %33 = math.exp %32 : vector<4x128xf32>
    %cst_16 = arith.constant 1.000000e+00 : f32
    %34 = vector.broadcast %cst_16 : f32 to vector<4x128xf32>
    %35 = arith.addf %34, %33 : vector<4x128xf32>
    %36 = arith.divf %34, %35 : vector<4x128xf32>
    %37 = math.tanh %31 : vector<4x128xf32>
    %38 = vector.extract_strided_slice %36 {offsets = [0, 0], sizes = [4, 32], strides = [1, 1]} : vector<4x128xf32> to vector<4x32xf32>
    %39 = vector.extract_strided_slice %36 {offsets = [0, 32], sizes = [4, 32], strides = [1, 1]} : vector<4x128xf32> to vector<4x32xf32>
    %40 = vector.extract_strided_slice %37 {offsets = [0, 64], sizes = [4, 32], strides = [1, 1]} : vector<4x128xf32> to vector<4x32xf32>
    %41 = vector.extract_strided_slice %36 {offsets = [0, 96], sizes = [4, 32], strides = [1, 1]} : vector<4x128xf32> to vector<4x32xf32>
    %42 = arith.mulf %39, %4 : vector<4x32xf32>
    %43 = arith.mulf %38, %40 : vector<4x32xf32>
    %44 = arith.addf %42, %43 : vector<4x32xf32>
    %45 = math.tanh %44 : vector<4x32xf32>
    %46 = arith.mulf %41, %45 : vector<4x32xf32>
    %c0_i32_17 = arith.constant 0 : i32
    %47 = vector.broadcast %c0_i32_17 : i32 to vector<4x32xi32>
    %48 = arith.cmpi sgt, %1, %47 : vector<4x32xi32>
    %49 = arith.select %48, %46, %4 : vector<4x32xi1>, vector<4x32xf32>
    %50 = arith.select %48, %44, %4 : vector<4x32xi1>, vector<4x32xf32>
    %c1 = arith.constant 1 : index
    %c0_18 = arith.constant 0 : index
    %c0_19 = arith.constant 0 : index
    %51 = vector.load %arg0[%c1, %c0_18, %c0_19] : memref<8x4x128xf32, #tpu.memory_space<vmem>>, vector<1x4x128xf32>
    %52 = vector.shape_cast %51 : vector<1x4x128xf32> to vector<4x128xf32>
    %cst_20 = arith.constant dense<0.000000e+00> : vector<4x128xf32>
    %53 = tpu.matmul %26, %2, %cst_20 {dimension_numbers = #tpu.dot_dimension_numbers<[1], [0], [0], [1], [0, 0, 1, 1], [], []>} : vector<4x32xf32>, vector<32x128xf32>, vector<4x128xf32> -> vector<4x128xf32>
    %54 = arith.addf %52, %53 : vector<4x128xf32>
    %55 = arith.negf %54 : vector<4x128xf32>
    %56 = math.exp %55 : vector<4x128xf32>
    %cst_21 = arith.constant 1.000000e+00 : f32
    %57 = vector.broadcast %cst_21 : f32 to vector<4x128xf32>
    %58 = arith.addf %57, %56 : vector<4x128xf32>
    %59 = arith.divf %57, %58 : vector<4x128xf32>
    %60 = math.tanh %54 : vector<4x128xf32>
    %61 = vector.extract_strided_slice %59 {offsets = [0, 0], sizes = [4, 32], strides = [1, 1]} : vector<4x128xf32> to vector<4x32xf32>
    %62 = vector.extract_strided_slice %59 {offsets = [0, 32], sizes = [4, 32], strides = [1, 1]} : vector<4x128xf32> to vector<4x32xf32>
    %63 = vector.extract_strided_slice %60 {offsets = [0, 64], sizes = [4, 32], strides = [1, 1]} : vector<4x128xf32> to vector<4x32xf32>
    %64 = vector.extract_strided_slice %59 {offsets = [0, 96], sizes = [4, 32], strides = [1, 1]} : vector<4x128xf32> to vector<4x32xf32>
    %65 = arith.mulf %62, %27 : vector<4x32xf32>
    %66 = arith.mulf %61, %63 : vector<4x32xf32>
    %67 = arith.addf %65, %66 : vector<4x32xf32>
    %68 = math.tanh %67 : vector<4x32xf32>
    %69 = arith.mulf %64, %68 : vector<4x32xf32>
    %c1_i32 = arith.constant 1 : i32
    %70 = vector.broadcast %c1_i32 : i32 to vector<4x32xi32>
    %71 = arith.cmpi sgt, %0, %70 : vector<4x32xi32>
    %72 = arith.select %71, %69, %26 : vector<4x32xi1>, vector<4x32xf32>
    %73 = arith.select %71, %67, %27 : vector<4x32xi1>, vector<4x32xf32>
    %c1_22 = arith.constant 1 : index
    %c0_23 = arith.constant 0 : index
    %c0_24 = arith.constant 0 : index
    %74 = vector.load %arg1[%c1_22, %c0_23, %c0_24] : memref<160x4x128xf32, #tpu.memory_space<vmem>>, vector<1x4x128xf32>
    %75 = vector.shape_cast %74 : vector<1x4x128xf32> to vector<4x128xf32>
    %cst_25 = arith.constant dense<0.000000e+00> : vector<4x128xf32>
    %76 = tpu.matmul %49, %3, %cst_25 {dimension_numbers = #tpu.dot_dimension_numbers<[1], [0], [0], [1], [0, 0, 1, 1], [], []>} : vector<4x32xf32>, vector<32x128xf32>, vector<4x128xf32> -> vector<4x128xf32>
    %77 = arith.addf %75, %76 : vector<4x128xf32>
    %78 = arith.negf %77 : vector<4x128xf32>
    %79 = math.exp %78 : vector<4x128xf32>
    %cst_26 = arith.constant 1.000000e+00 : f32
    %80 = vector.broadcast %cst_26 : f32 to vector<4x128xf32>
    %81 = arith.addf %80, %79 : vector<4x128xf32>
    %82 = arith.divf %80, %81 : vector<4x128xf32>
    %83 = math.tanh %77 : vector<4x128xf32>
    %84 = vector.extract_strided_slice %82 {offsets = [0, 0], sizes = [4, 32], strides = [1, 1]} : vector<4x128xf32> to vector<4x32xf32>
    %85 = vector.extract_strided_slice %82 {offsets = [0, 32], sizes = [4, 32], strides = [1, 1]} : vector<4x128xf32> to vector<4x32xf32>
    %86 = vector.extract_strided_slice %83 {offsets = [0, 64], sizes = [4, 32], strides = [1, 1]} : vector<4x128xf32> to vector<4x32xf32>
    %87 = vector.extract_strided_slice %82 {offsets = [0, 96], sizes = [4, 32], strides = [1, 1]} : vector<4x128xf32> to vector<4x32xf32>
    %88 = arith.mulf %85, %50 : vector<4x32xf32>
    %89 = arith.mulf %84, %86 : vector<4x32xf32>
    %90 = arith.addf %88, %89 : vector<4x32xf32>
    %91 = math.tanh %90 : vector<4x32xf32>
    %92 = arith.mulf %87, %91 : vector<4x32xf32>
    %c1_i32_27 = arith.constant 1 : i32
    %93 = vector.broadcast %c1_i32_27 : i32 to vector<4x32xi32>
    %94 = arith.cmpi sgt, %1, %93 : vector<4x32xi32>
    %95 = arith.select %94, %92, %49 : vector<4x32xi1>, vector<4x32xf32>
    %96 = arith.select %94, %90, %50 : vector<4x32xi1>, vector<4x32xf32>
    %c2 = arith.constant 2 : index
    %c0_28 = arith.constant 0 : index
    %c0_29 = arith.constant 0 : index
    %97 = vector.load %arg0[%c2, %c0_28, %c0_29] : memref<8x4x128xf32, #tpu.memory_space<vmem>>, vector<1x4x128xf32>
    %98 = vector.shape_cast %97 : vector<1x4x128xf32> to vector<4x128xf32>
    %cst_30 = arith.constant dense<0.000000e+00> : vector<4x128xf32>
    %99 = tpu.matmul %72, %2, %cst_30 {dimension_numbers = #tpu.dot_dimension_numbers<[1], [0], [0], [1], [0, 0, 1, 1], [], []>} : vector<4x32xf32>, vector<32x128xf32>, vector<4x128xf32> -> vector<4x128xf32>
    %100 = arith.addf %98, %99 : vector<4x128xf32>
    %101 = arith.negf %100 : vector<4x128xf32>
    %102 = math.exp %101 : vector<4x128xf32>
    %cst_31 = arith.constant 1.000000e+00 : f32
    %103 = vector.broadcast %cst_31 : f32 to vector<4x128xf32>
    %104 = arith.addf %103, %102 : vector<4x128xf32>
    %105 = arith.divf %103, %104 : vector<4x128xf32>
    %106 = math.tanh %100 : vector<4x128xf32>
    %107 = vector.extract_strided_slice %105 {offsets = [0, 0], sizes = [4, 32], strides = [1, 1]} : vector<4x128xf32> to vector<4x32xf32>
    %108 = vector.extract_strided_slice %105 {offsets = [0, 32], sizes = [4, 32], strides = [1, 1]} : vector<4x128xf32> to vector<4x32xf32>
    %109 = vector.extract_strided_slice %106 {offsets = [0, 64], sizes = [4, 32], strides = [1, 1]} : vector<4x128xf32> to vector<4x32xf32>
    %110 = vector.extract_strided_slice %105 {offsets = [0, 96], sizes = [4, 32], strides = [1, 1]} : vector<4x128xf32> to vector<4x32xf32>
    %111 = arith.mulf %108, %73 : vector<4x32xf32>
    %112 = arith.mulf %107, %109 : vector<4x32xf32>
    %113 = arith.addf %111, %112 : vector<4x32xf32>
    %114 = math.tanh %113 : vector<4x32xf32>
    %115 = arith.mulf %110, %114 : vector<4x32xf32>
    %c2_i32 = arith.constant 2 : i32
    %116 = vector.broadcast %c2_i32 : i32 to vector<4x32xi32>
    %117 = arith.cmpi sgt, %0, %116 : vector<4x32xi32>
    %118 = arith.select %117, %115, %72 : vector<4x32xi1>, vector<4x32xf32>
    %119 = arith.select %117, %113, %73 : vector<4x32xi1>, vector<4x32xf32>
    %c2_32 = arith.constant 2 : index
    %c0_33 = arith.constant 0 : index
    %c0_34 = arith.constant 0 : index
    %120 = vector.load %arg1[%c2_32, %c0_33, %c0_34] : memref<160x4x128xf32, #tpu.memory_space<vmem>>, vector<1x4x128xf32>
    %121 = vector.shape_cast %120 : vector<1x4x128xf32> to vector<4x128xf32>
    %cst_35 = arith.constant dense<0.000000e+00> : vector<4x128xf32>
    %122 = tpu.matmul %95, %3, %cst_35 {dimension_numbers = #tpu.dot_dimension_numbers<[1], [0], [0], [1], [0, 0, 1, 1], [], []>} : vector<4x32xf32>, vector<32x128xf32>, vector<4x128xf32> -> vector<4x128xf32>
    %123 = arith.addf %121, %122 : vector<4x128xf32>
    %124 = arith.negf %123 : vector<4x128xf32>
    %125 = math.exp %124 : vector<4x128xf32>
    %cst_36 = arith.constant 1.000000e+00 : f32
    %126 = vector.broadcast %cst_36 : f32 to vector<4x128xf32>
    %127 = arith.addf %126, %125 : vector<4x128xf32>
    %128 = arith.divf %126, %127 : vector<4x128xf32>
    %129 = math.tanh %123 : vector<4x128xf32>
    %130 = vector.extract_strided_slice %128 {offsets = [0, 0], sizes = [4, 32], strides = [1, 1]} : vector<4x128xf32> to vector<4x32xf32>
    %131 = vector.extract_strided_slice %128 {offsets = [0, 32], sizes = [4, 32], strides = [1, 1]} : vector<4x128xf32> to vector<4x32xf32>
    %132 = vector.extract_strided_slice %129 {offsets = [0, 64], sizes = [4, 32], strides = [1, 1]} : vector<4x128xf32> to vector<4x32xf32>
    %133 = vector.extract_strided_slice %128 {offsets = [0, 96], sizes = [4, 32], strides = [1, 1]} : vector<4x128xf32> to vector<4x32xf32>
    %134 = arith.mulf %131, %96 : vector<4x32xf32>
    %135 = arith.mulf %130, %132 : vector<4x32xf32>
    %136 = arith.addf %134, %135 : vector<4x32xf32>
    %137 = math.tanh %136 : vector<4x32xf32>
    %138 = arith.mulf %133, %137 : vector<4x32xf32>
    %c2_i32_37 = arith.constant 2 : i32
    %139 = vector.broadcast %c2_i32_37 : i32 to vector<4x32xi32>
    %140 = arith.cmpi sgt, %1, %139 : vector<4x32xi32>
    %141 = arith.select %140, %138, %95 : vector<4x32xi1>, vector<4x32xf32>
    %142 = arith.select %140, %136, %96 : vector<4x32xi1>, vector<4x32xf32>
    %c3 = arith.constant 3 : index
    %c0_38 = arith.constant 0 : index
    %c0_39 = arith.constant 0 : index
    %143 = vector.load %arg0[%c3, %c0_38, %c0_39] : memref<8x4x128xf32, #tpu.memory_space<vmem>>, vector<1x4x128xf32>
    %144 = vector.shape_cast %143 : vector<1x4x128xf32> to vector<4x128xf32>
    %cst_40 = arith.constant dense<0.000000e+00> : vector<4x128xf32>
    %145 = tpu.matmul %118, %2, %cst_40 {dimension_numbers = #tpu.dot_dimension_numbers<[1], [0], [0], [1], [0, 0, 1, 1], [], []>} : vector<4x32xf32>, vector<32x128xf32>, vector<4x128xf32> -> vector<4x128xf32>
    %146 = arith.addf %144, %145 : vector<4x128xf32>
    %147 = arith.negf %146 : vector<4x128xf32>
    %148 = math.exp %147 : vector<4x128xf32>
    %cst_41 = arith.constant 1.000000e+00 : f32
    %149 = vector.broadcast %cst_41 : f32 to vector<4x128xf32>
    %150 = arith.addf %149, %148 : vector<4x128xf32>
    %151 = arith.divf %149, %150 : vector<4x128xf32>
    %152 = math.tanh %146 : vector<4x128xf32>
    %153 = vector.extract_strided_slice %151 {offsets = [0, 0], sizes = [4, 32], strides = [1, 1]} : vector<4x128xf32> to vector<4x32xf32>
    %154 = vector.extract_strided_slice %151 {offsets = [0, 32], sizes = [4, 32], strides = [1, 1]} : vector<4x128xf32> to vector<4x32xf32>
    %155 = vector.extract_strided_slice %152 {offsets = [0, 64], sizes = [4, 32], strides = [1, 1]} : vector<4x128xf32> to vector<4x32xf32>
    %156 = vector.extract_strided_slice %151 {offsets = [0, 96], sizes = [4, 32], strides = [1, 1]} : vector<4x128xf32> to vector<4x32xf32>
    %157 = arith.mulf %154, %119 : vector<4x32xf32>
    %158 = arith.mulf %153, %155 : vector<4x32xf32>
    %159 = arith.addf %157, %158 : vector<4x32xf32>
    %160 = math.tanh %159 : vector<4x32xf32>
    %161 = arith.mulf %156, %160 : vector<4x32xf32>
    %c3_i32 = arith.constant 3 : i32
    %162 = vector.broadcast %c3_i32 : i32 to vector<4x32xi32>
    %163 = arith.cmpi sgt, %0, %162 : vector<4x32xi32>
    %164 = arith.select %163, %161, %118 : vector<4x32xi1>, vector<4x32xf32>
    %165 = arith.select %163, %159, %119 : vector<4x32xi1>, vector<4x32xf32>
    %c3_42 = arith.constant 3 : index
    %c0_43 = arith.constant 0 : index
    %c0_44 = arith.constant 0 : index
    %166 = vector.load %arg1[%c3_42, %c0_43, %c0_44] : memref<160x4x128xf32, #tpu.memory_space<vmem>>, vector<1x4x128xf32>
    %167 = vector.shape_cast %166 : vector<1x4x128xf32> to vector<4x128xf32>
    %cst_45 = arith.constant dense<0.000000e+00> : vector<4x128xf32>
    %168 = tpu.matmul %141, %3, %cst_45 {dimension_numbers = #tpu.dot_dimension_numbers<[1], [0], [0], [1], [0, 0, 1, 1], [], []>} : vector<4x32xf32>, vector<32x128xf32>, vector<4x128xf32> -> vector<4x128xf32>
    %169 = arith.addf %167, %168 : vector<4x128xf32>
    %170 = arith.negf %169 : vector<4x128xf32>
    %171 = math.exp %170 : vector<4x128xf32>
    %cst_46 = arith.constant 1.000000e+00 : f32
    %172 = vector.broadcast %cst_46 : f32 to vector<4x128xf32>
    %173 = arith.addf %172, %171 : vector<4x128xf32>
    %174 = arith.divf %172, %173 : vector<4x128xf32>
    %175 = math.tanh %169 : vector<4x128xf32>
    %176 = vector.extract_strided_slice %174 {offsets = [0, 0], sizes = [4, 32], strides = [1, 1]} : vector<4x128xf32> to vector<4x32xf32>
    %177 = vector.extract_strided_slice %174 {offsets = [0, 32], sizes = [4, 32], strides = [1, 1]} : vector<4x128xf32> to vector<4x32xf32>
    %178 = vector.extract_strided_slice %175 {offsets = [0, 64], sizes = [4, 32], strides = [1, 1]} : vector<4x128xf32> to vector<4x32xf32>
    %179 = vector.extract_strided_slice %174 {offsets = [0, 96], sizes = [4, 32], strides = [1, 1]} : vector<4x128xf32> to vector<4x32xf32>
    %180 = arith.mulf %177, %142 : vector<4x32xf32>
    %181 = arith.mulf %176, %178 : vector<4x32xf32>
    %182 = arith.addf %180, %181 : vector<4x32xf32>
    %183 = math.tanh %182 : vector<4x32xf32>
    %184 = arith.mulf %179, %183 : vector<4x32xf32>
    %c3_i32_47 = arith.constant 3 : i32
    %185 = vector.broadcast %c3_i32_47 : i32 to vector<4x32xi32>
    %186 = arith.cmpi sgt, %1, %185 : vector<4x32xi32>
    %187 = arith.select %186, %184, %141 : vector<4x32xi1>, vector<4x32xf32>
    %188 = arith.select %186, %182, %142 : vector<4x32xi1>, vector<4x32xf32>
    %c4 = arith.constant 4 : index
    %c0_48 = arith.constant 0 : index
    %c0_49 = arith.constant 0 : index
    %189 = vector.load %arg0[%c4, %c0_48, %c0_49] : memref<8x4x128xf32, #tpu.memory_space<vmem>>, vector<1x4x128xf32>
    %190 = vector.shape_cast %189 : vector<1x4x128xf32> to vector<4x128xf32>
    %cst_50 = arith.constant dense<0.000000e+00> : vector<4x128xf32>
    %191 = tpu.matmul %164, %2, %cst_50 {dimension_numbers = #tpu.dot_dimension_numbers<[1], [0], [0], [1], [0, 0, 1, 1], [], []>} : vector<4x32xf32>, vector<32x128xf32>, vector<4x128xf32> -> vector<4x128xf32>
    %192 = arith.addf %190, %191 : vector<4x128xf32>
    %193 = arith.negf %192 : vector<4x128xf32>
    %194 = math.exp %193 : vector<4x128xf32>
    %cst_51 = arith.constant 1.000000e+00 : f32
    %195 = vector.broadcast %cst_51 : f32 to vector<4x128xf32>
    %196 = arith.addf %195, %194 : vector<4x128xf32>
    %197 = arith.divf %195, %196 : vector<4x128xf32>
    %198 = math.tanh %192 : vector<4x128xf32>
    %199 = vector.extract_strided_slice %197 {offsets = [0, 0], sizes = [4, 32], strides = [1, 1]} : vector<4x128xf32> to vector<4x32xf32>
    %200 = vector.extract_strided_slice %197 {offsets = [0, 32], sizes = [4, 32], strides = [1, 1]} : vector<4x128xf32> to vector<4x32xf32>
    %201 = vector.extract_strided_slice %198 {offsets = [0, 64], sizes = [4, 32], strides = [1, 1]} : vector<4x128xf32> to vector<4x32xf32>
    %202 = vector.extract_strided_slice %197 {offsets = [0, 96], sizes = [4, 32], strides = [1, 1]} : vector<4x128xf32> to vector<4x32xf32>
    %203 = arith.mulf %200, %165 : vector<4x32xf32>
    %204 = arith.mulf %199, %201 : vector<4x32xf32>
    %205 = arith.addf %203, %204 : vector<4x32xf32>
    %206 = math.tanh %205 : vector<4x32xf32>
    %207 = arith.mulf %202, %206 : vector<4x32xf32>
    %c4_i32 = arith.constant 4 : i32
    %208 = vector.broadcast %c4_i32 : i32 to vector<4x32xi32>
    %209 = arith.cmpi sgt, %0, %208 : vector<4x32xi32>
    %210 = arith.select %209, %207, %164 : vector<4x32xi1>, vector<4x32xf32>
    %211 = arith.select %209, %205, %165 : vector<4x32xi1>, vector<4x32xf32>
    %c4_52 = arith.constant 4 : index
    %c0_53 = arith.constant 0 : index
    %c0_54 = arith.constant 0 : index
    %212 = vector.load %arg1[%c4_52, %c0_53, %c0_54] : memref<160x4x128xf32, #tpu.memory_space<vmem>>, vector<1x4x128xf32>
    %213 = vector.shape_cast %212 : vector<1x4x128xf32> to vector<4x128xf32>
    %cst_55 = arith.constant dense<0.000000e+00> : vector<4x128xf32>
    %214 = tpu.matmul %187, %3, %cst_55 {dimension_numbers = #tpu.dot_dimension_numbers<[1], [0], [0], [1], [0, 0, 1, 1], [], []>} : vector<4x32xf32>, vector<32x128xf32>, vector<4x128xf32> -> vector<4x128xf32>
    %215 = arith.addf %213, %214 : vector<4x128xf32>
    %216 = arith.negf %215 : vector<4x128xf32>
    %217 = math.exp %216 : vector<4x128xf32>
    %cst_56 = arith.constant 1.000000e+00 : f32
    %218 = vector.broadcast %cst_56 : f32 to vector<4x128xf32>
    %219 = arith.addf %218, %217 : vector<4x128xf32>
    %220 = arith.divf %218, %219 : vector<4x128xf32>
    %221 = math.tanh %215 : vector<4x128xf32>
    %222 = vector.extract_strided_slice %220 {offsets = [0, 0], sizes = [4, 32], strides = [1, 1]} : vector<4x128xf32> to vector<4x32xf32>
    %223 = vector.extract_strided_slice %220 {offsets = [0, 32], sizes = [4, 32], strides = [1, 1]} : vector<4x128xf32> to vector<4x32xf32>
    %224 = vector.extract_strided_slice %221 {offsets = [0, 64], sizes = [4, 32], strides = [1, 1]} : vector<4x128xf32> to vector<4x32xf32>
    %225 = vector.extract_strided_slice %220 {offsets = [0, 96], sizes = [4, 32], strides = [1, 1]} : vector<4x128xf32> to vector<4x32xf32>
    %226 = arith.mulf %223, %188 : vector<4x32xf32>
    %227 = arith.mulf %222, %224 : vector<4x32xf32>
    %228 = arith.addf %226, %227 : vector<4x32xf32>
    %229 = math.tanh %228 : vector<4x32xf32>
    %230 = arith.mulf %225, %229 : vector<4x32xf32>
    %c4_i32_57 = arith.constant 4 : i32
    %231 = vector.broadcast %c4_i32_57 : i32 to vector<4x32xi32>
    %232 = arith.cmpi sgt, %1, %231 : vector<4x32xi32>
    %233 = arith.select %232, %230, %187 : vector<4x32xi1>, vector<4x32xf32>
    %234 = arith.select %232, %228, %188 : vector<4x32xi1>, vector<4x32xf32>
    %c5 = arith.constant 5 : index
    %c0_58 = arith.constant 0 : index
    %c0_59 = arith.constant 0 : index
    %235 = vector.load %arg0[%c5, %c0_58, %c0_59] : memref<8x4x128xf32, #tpu.memory_space<vmem>>, vector<1x4x128xf32>
    %236 = vector.shape_cast %235 : vector<1x4x128xf32> to vector<4x128xf32>
    %cst_60 = arith.constant dense<0.000000e+00> : vector<4x128xf32>
    %237 = tpu.matmul %210, %2, %cst_60 {dimension_numbers = #tpu.dot_dimension_numbers<[1], [0], [0], [1], [0, 0, 1, 1], [], []>} : vector<4x32xf32>, vector<32x128xf32>, vector<4x128xf32> -> vector<4x128xf32>
    %238 = arith.addf %236, %237 : vector<4x128xf32>
    %239 = arith.negf %238 : vector<4x128xf32>
    %240 = math.exp %239 : vector<4x128xf32>
    %cst_61 = arith.constant 1.000000e+00 : f32
    %241 = vector.broadcast %cst_61 : f32 to vector<4x128xf32>
    %242 = arith.addf %241, %240 : vector<4x128xf32>
    %243 = arith.divf %241, %242 : vector<4x128xf32>
    %244 = math.tanh %238 : vector<4x128xf32>
    %245 = vector.extract_strided_slice %243 {offsets = [0, 0], sizes = [4, 32], strides = [1, 1]} : vector<4x128xf32> to vector<4x32xf32>
    %246 = vector.extract_strided_slice %243 {offsets = [0, 32], sizes = [4, 32], strides = [1, 1]} : vector<4x128xf32> to vector<4x32xf32>
    %247 = vector.extract_strided_slice %244 {offsets = [0, 64], sizes = [4, 32], strides = [1, 1]} : vector<4x128xf32> to vector<4x32xf32>
    %248 = vector.extract_strided_slice %243 {offsets = [0, 96], sizes = [4, 32], strides = [1, 1]} : vector<4x128xf32> to vector<4x32xf32>
    %249 = arith.mulf %246, %211 : vector<4x32xf32>
    %250 = arith.mulf %245, %247 : vector<4x32xf32>
    %251 = arith.addf %249, %250 : vector<4x32xf32>
    %252 = math.tanh %251 : vector<4x32xf32>
    %253 = arith.mulf %248, %252 : vector<4x32xf32>
    %c5_i32 = arith.constant 5 : i32
    %254 = vector.broadcast %c5_i32 : i32 to vector<4x32xi32>
    %255 = arith.cmpi sgt, %0, %254 : vector<4x32xi32>
    %256 = arith.select %255, %253, %210 : vector<4x32xi1>, vector<4x32xf32>
    %257 = arith.select %255, %251, %211 : vector<4x32xi1>, vector<4x32xf32>
    %c5_62 = arith.constant 5 : index
    %c0_63 = arith.constant 0 : index
    %c0_64 = arith.constant 0 : index
    %258 = vector.load %arg1[%c5_62, %c0_63, %c0_64] : memref<160x4x128xf32, #tpu.memory_space<vmem>>, vector<1x4x128xf32>
    %259 = vector.shape_cast %258 : vector<1x4x128xf32> to vector<4x128xf32>
    %cst_65 = arith.constant dense<0.000000e+00> : vector<4x128xf32>
    %260 = tpu.matmul %233, %3, %cst_65 {dimension_numbers = #tpu.dot_dimension_numbers<[1], [0], [0], [1], [0, 0, 1, 1], [], []>} : vector<4x32xf32>, vector<32x128xf32>, vector<4x128xf32> -> vector<4x128xf32>
    %261 = arith.addf %259, %260 : vector<4x128xf32>
    %262 = arith.negf %261 : vector<4x128xf32>
    %263 = math.exp %262 : vector<4x128xf32>
    %cst_66 = arith.constant 1.000000e+00 : f32
    %264 = vector.broadcast %cst_66 : f32 to vector<4x128xf32>
    %265 = arith.addf %264, %263 : vector<4x128xf32>
    %266 = arith.divf %264, %265 : vector<4x128xf32>
    %267 = math.tanh %261 : vector<4x128xf32>
    %268 = vector.extract_strided_slice %266 {offsets = [0, 0], sizes = [4, 32], strides = [1, 1]} : vector<4x128xf32> to vector<4x32xf32>
    %269 = vector.extract_strided_slice %266 {offsets = [0, 32], sizes = [4, 32], strides = [1, 1]} : vector<4x128xf32> to vector<4x32xf32>
    %270 = vector.extract_strided_slice %267 {offsets = [0, 64], sizes = [4, 32], strides = [1, 1]} : vector<4x128xf32> to vector<4x32xf32>
    %271 = vector.extract_strided_slice %266 {offsets = [0, 96], sizes = [4, 32], strides = [1, 1]} : vector<4x128xf32> to vector<4x32xf32>
    %272 = arith.mulf %269, %234 : vector<4x32xf32>
    %273 = arith.mulf %268, %270 : vector<4x32xf32>
    %274 = arith.addf %272, %273 : vector<4x32xf32>
    %275 = math.tanh %274 : vector<4x32xf32>
    %276 = arith.mulf %271, %275 : vector<4x32xf32>
    %c5_i32_67 = arith.constant 5 : i32
    %277 = vector.broadcast %c5_i32_67 : i32 to vector<4x32xi32>
    %278 = arith.cmpi sgt, %1, %277 : vector<4x32xi32>
    %279 = arith.select %278, %276, %233 : vector<4x32xi1>, vector<4x32xf32>
    %280 = arith.select %278, %274, %234 : vector<4x32xi1>, vector<4x32xf32>
    %c6 = arith.constant 6 : index
    %c0_68 = arith.constant 0 : index
    %c0_69 = arith.constant 0 : index
    %281 = vector.load %arg0[%c6, %c0_68, %c0_69] : memref<8x4x128xf32, #tpu.memory_space<vmem>>, vector<1x4x128xf32>
    %282 = vector.shape_cast %281 : vector<1x4x128xf32> to vector<4x128xf32>
    %cst_70 = arith.constant dense<0.000000e+00> : vector<4x128xf32>
    %283 = tpu.matmul %256, %2, %cst_70 {dimension_numbers = #tpu.dot_dimension_numbers<[1], [0], [0], [1], [0, 0, 1, 1], [], []>} : vector<4x32xf32>, vector<32x128xf32>, vector<4x128xf32> -> vector<4x128xf32>
    %284 = arith.addf %282, %283 : vector<4x128xf32>
    %285 = arith.negf %284 : vector<4x128xf32>
    %286 = math.exp %285 : vector<4x128xf32>
    %cst_71 = arith.constant 1.000000e+00 : f32
    %287 = vector.broadcast %cst_71 : f32 to vector<4x128xf32>
    %288 = arith.addf %287, %286 : vector<4x128xf32>
    %289 = arith.divf %287, %288 : vector<4x128xf32>
    %290 = math.tanh %284 : vector<4x128xf32>
    %291 = vector.extract_strided_slice %289 {offsets = [0, 0], sizes = [4, 32], strides = [1, 1]} : vector<4x128xf32> to vector<4x32xf32>
    %292 = vector.extract_strided_slice %289 {offsets = [0, 32], sizes = [4, 32], strides = [1, 1]} : vector<4x128xf32> to vector<4x32xf32>
    %293 = vector.extract_strided_slice %290 {offsets = [0, 64], sizes = [4, 32], strides = [1, 1]} : vector<4x128xf32> to vector<4x32xf32>
    %294 = vector.extract_strided_slice %289 {offsets = [0, 96], sizes = [4, 32], strides = [1, 1]} : vector<4x128xf32> to vector<4x32xf32>
    %295 = arith.mulf %292, %257 : vector<4x32xf32>
    %296 = arith.mulf %291, %293 : vector<4x32xf32>
    %297 = arith.addf %295, %296 : vector<4x32xf32>
    %298 = math.tanh %297 : vector<4x32xf32>
    %299 = arith.mulf %294, %298 : vector<4x32xf32>
    %c6_i32 = arith.constant 6 : i32
    %300 = vector.broadcast %c6_i32 : i32 to vector<4x32xi32>
    %301 = arith.cmpi sgt, %0, %300 : vector<4x32xi32>
    %302 = arith.select %301, %299, %256 : vector<4x32xi1>, vector<4x32xf32>
    %303 = arith.select %301, %297, %257 : vector<4x32xi1>, vector<4x32xf32>
    %c6_72 = arith.constant 6 : index
    %c0_73 = arith.constant 0 : index
    %c0_74 = arith.constant 0 : index
    %304 = vector.load %arg1[%c6_72, %c0_73, %c0_74] : memref<160x4x128xf32, #tpu.memory_space<vmem>>, vector<1x4x128xf32>
    %305 = vector.shape_cast %304 : vector<1x4x128xf32> to vector<4x128xf32>
    %cst_75 = arith.constant dense<0.000000e+00> : vector<4x128xf32>
    %306 = tpu.matmul %279, %3, %cst_75 {dimension_numbers = #tpu.dot_dimension_numbers<[1], [0], [0], [1], [0, 0, 1, 1], [], []>} : vector<4x32xf32>, vector<32x128xf32>, vector<4x128xf32> -> vector<4x128xf32>
    %307 = arith.addf %305, %306 : vector<4x128xf32>
    %308 = arith.negf %307 : vector<4x128xf32>
    %309 = math.exp %308 : vector<4x128xf32>
    %cst_76 = arith.constant 1.000000e+00 : f32
    %310 = vector.broadcast %cst_76 : f32 to vector<4x128xf32>
    %311 = arith.addf %310, %309 : vector<4x128xf32>
    %312 = arith.divf %310, %311 : vector<4x128xf32>
    %313 = math.tanh %307 : vector<4x128xf32>
    %314 = vector.extract_strided_slice %312 {offsets = [0, 0], sizes = [4, 32], strides = [1, 1]} : vector<4x128xf32> to vector<4x32xf32>
    %315 = vector.extract_strided_slice %312 {offsets = [0, 32], sizes = [4, 32], strides = [1, 1]} : vector<4x128xf32> to vector<4x32xf32>
    %316 = vector.extract_strided_slice %313 {offsets = [0, 64], sizes = [4, 32], strides = [1, 1]} : vector<4x128xf32> to vector<4x32xf32>
    %317 = vector.extract_strided_slice %312 {offsets = [0, 96], sizes = [4, 32], strides = [1, 1]} : vector<4x128xf32> to vector<4x32xf32>
    %318 = arith.mulf %315, %280 : vector<4x32xf32>
    %319 = arith.mulf %314, %316 : vector<4x32xf32>
    %320 = arith.addf %318, %319 : vector<4x32xf32>
    %321 = math.tanh %320 : vector<4x32xf32>
    %322 = arith.mulf %317, %321 : vector<4x32xf32>
    %c6_i32_77 = arith.constant 6 : i32
    %323 = vector.broadcast %c6_i32_77 : i32 to vector<4x32xi32>
    %324 = arith.cmpi sgt, %1, %323 : vector<4x32xi32>
    %325 = arith.select %324, %322, %279 : vector<4x32xi1>, vector<4x32xf32>
    %326 = arith.select %324, %320, %280 : vector<4x32xi1>, vector<4x32xf32>
    %c7 = arith.constant 7 : index
    %c0_78 = arith.constant 0 : index
    %c0_79 = arith.constant 0 : index
    %327 = vector.load %arg0[%c7, %c0_78, %c0_79] : memref<8x4x128xf32, #tpu.memory_space<vmem>>, vector<1x4x128xf32>
    %328 = vector.shape_cast %327 : vector<1x4x128xf32> to vector<4x128xf32>
    %cst_80 = arith.constant dense<0.000000e+00> : vector<4x128xf32>
    %329 = tpu.matmul %302, %2, %cst_80 {dimension_numbers = #tpu.dot_dimension_numbers<[1], [0], [0], [1], [0, 0, 1, 1], [], []>} : vector<4x32xf32>, vector<32x128xf32>, vector<4x128xf32> -> vector<4x128xf32>
    %330 = arith.addf %328, %329 : vector<4x128xf32>
    %331 = arith.negf %330 : vector<4x128xf32>
    %332 = math.exp %331 : vector<4x128xf32>
    %cst_81 = arith.constant 1.000000e+00 : f32
    %333 = vector.broadcast %cst_81 : f32 to vector<4x128xf32>
    %334 = arith.addf %333, %332 : vector<4x128xf32>
    %335 = arith.divf %333, %334 : vector<4x128xf32>
    %336 = math.tanh %330 : vector<4x128xf32>
    %337 = vector.extract_strided_slice %335 {offsets = [0, 0], sizes = [4, 32], strides = [1, 1]} : vector<4x128xf32> to vector<4x32xf32>
    %338 = vector.extract_strided_slice %335 {offsets = [0, 32], sizes = [4, 32], strides = [1, 1]} : vector<4x128xf32> to vector<4x32xf32>
    %339 = vector.extract_strided_slice %336 {offsets = [0, 64], sizes = [4, 32], strides = [1, 1]} : vector<4x128xf32> to vector<4x32xf32>
    %340 = vector.extract_strided_slice %335 {offsets = [0, 96], sizes = [4, 32], strides = [1, 1]} : vector<4x128xf32> to vector<4x32xf32>
    %341 = arith.mulf %338, %303 : vector<4x32xf32>
    %342 = arith.mulf %337, %339 : vector<4x32xf32>
    %343 = arith.addf %341, %342 : vector<4x32xf32>
    %344 = math.tanh %343 : vector<4x32xf32>
    %345 = arith.mulf %340, %344 : vector<4x32xf32>
    %c7_i32 = arith.constant 7 : i32
    %346 = vector.broadcast %c7_i32 : i32 to vector<4x32xi32>
    %347 = arith.cmpi sgt, %0, %346 : vector<4x32xi32>
    %348 = arith.select %347, %345, %302 : vector<4x32xi1>, vector<4x32xf32>
    %c7_82 = arith.constant 7 : index
    %c0_83 = arith.constant 0 : index
    %c0_84 = arith.constant 0 : index
    %349 = vector.load %arg1[%c7_82, %c0_83, %c0_84] : memref<160x4x128xf32, #tpu.memory_space<vmem>>, vector<1x4x128xf32>
    %350 = vector.shape_cast %349 : vector<1x4x128xf32> to vector<4x128xf32>
    %cst_85 = arith.constant dense<0.000000e+00> : vector<4x128xf32>
    %351 = tpu.matmul %325, %3, %cst_85 {dimension_numbers = #tpu.dot_dimension_numbers<[1], [0], [0], [1], [0, 0, 1, 1], [], []>} : vector<4x32xf32>, vector<32x128xf32>, vector<4x128xf32> -> vector<4x128xf32>
    %352 = arith.addf %350, %351 : vector<4x128xf32>
    %353 = arith.negf %352 : vector<4x128xf32>
    %354 = math.exp %353 : vector<4x128xf32>
    %cst_86 = arith.constant 1.000000e+00 : f32
    %355 = vector.broadcast %cst_86 : f32 to vector<4x128xf32>
    %356 = arith.addf %355, %354 : vector<4x128xf32>
    %357 = arith.divf %355, %356 : vector<4x128xf32>
    %358 = math.tanh %352 : vector<4x128xf32>
    %359 = vector.extract_strided_slice %357 {offsets = [0, 0], sizes = [4, 32], strides = [1, 1]} : vector<4x128xf32> to vector<4x32xf32>
    %360 = vector.extract_strided_slice %357 {offsets = [0, 32], sizes = [4, 32], strides = [1, 1]} : vector<4x128xf32> to vector<4x32xf32>
    %361 = vector.extract_strided_slice %358 {offsets = [0, 64], sizes = [4, 32], strides = [1, 1]} : vector<4x128xf32> to vector<4x32xf32>
    %362 = vector.extract_strided_slice %357 {offsets = [0, 96], sizes = [4, 32], strides = [1, 1]} : vector<4x128xf32> to vector<4x32xf32>
    %363 = arith.mulf %360, %326 : vector<4x32xf32>
    %364 = arith.mulf %359, %361 : vector<4x32xf32>
    %365 = arith.addf %363, %364 : vector<4x32xf32>
    %366 = math.tanh %365 : vector<4x32xf32>
    %367 = arith.mulf %362, %366 : vector<4x32xf32>
    %c7_i32_87 = arith.constant 7 : i32
    %368 = vector.broadcast %c7_i32_87 : i32 to vector<4x32xi32>
    %369 = arith.cmpi sgt, %1, %368 : vector<4x32xi32>
    %370 = arith.select %369, %367, %325 : vector<4x32xi1>, vector<4x32xf32>
    %371 = arith.select %369, %365, %326 : vector<4x32xi1>, vector<4x32xf32>
    %c0_88 = arith.constant 0 : index
    %c0_89 = arith.constant 0 : index
    %372 = vector.load %arg18[%c0_88, %c0_89] : memref<4x32xf32, #tpu.memory_space<vmem>>, vector<4x32xf32>
    tpu.vector_store %arg18[%c0_88, %c0_89], %370 {strides = array<i32>} : memref<4x32xf32, #tpu.memory_space<vmem>>, vector<4x32xf32>,
    %c0_90 = arith.constant 0 : index
    %c0_91 = arith.constant 0 : index
    %373 = vector.load %arg19[%c0_90, %c0_91] : memref<4x32xf32, #tpu.memory_space<vmem>>, vector<4x32xf32>
    tpu.vector_store %arg19[%c0_90, %c0_91], %371 {strides = array<i32>} : memref<4x32xf32, #tpu.memory_space<vmem>>, vector<4x32xf32>,
    %c0_i32_92 = arith.constant 0 : i32
    %c19_i32 = arith.constant 19 : i32
    %374 = arith.addi %c0_i32_92, %c19_i32 : i32
    %c1_i32_93 = arith.constant 1 : i32
    scf.for %arg20 = %c0_i32_92 to %374 step %c1_i32_93  : i32 {
      %c0_132 = arith.constant 0 : index
      %c0_133 = arith.constant 0 : index
      %423 = vector.load %arg18[%c0_132, %c0_133] : memref<4x32xf32, #tpu.memory_space<vmem>>, vector<4x32xf32>
      %c0_134 = arith.constant 0 : index
      %c0_135 = arith.constant 0 : index
      %424 = vector.load %arg19[%c0_134, %c0_135] : memref<4x32xf32, #tpu.memory_space<vmem>>, vector<4x32xf32>
      %c8_i32 = arith.constant 8 : i32
      %425 = arith.muli %arg20, %c8_i32 : i32
      %c8_i32_136 = arith.constant 8 : i32
      %426 = arith.addi %c8_i32_136, %425 : i32
      %c0_i32_137 = arith.constant 0 : i32
      %427 = arith.addi %426, %c0_i32_137 : i32
      %428 = arith.index_cast %427 : i32 to index
      %c0_138 = arith.constant 0 : index
      %c0_139 = arith.constant 0 : index
      %429 = vector.load %arg1[%428, %c0_138, %c0_139] : memref<160x4x128xf32, #tpu.memory_space<vmem>>, vector<1x4x128xf32>
      %430 = vector.shape_cast %429 : vector<1x4x128xf32> to vector<4x128xf32>
      %c0_i32_140 = arith.constant 0 : i32
      %431 = arith.addi %426, %c0_i32_140 : i32
      %cst_141 = arith.constant dense<0.000000e+00> : vector<4x128xf32>
      %432 = tpu.matmul %423, %3, %cst_141 {dimension_numbers = #tpu.dot_dimension_numbers<[1], [0], [0], [1], [0, 0, 1, 1], [], []>} : vector<4x32xf32>, vector<32x128xf32>, vector<4x128xf32> -> vector<4x128xf32>
      %433 = arith.addf %430, %432 : vector<4x128xf32>
      %434 = arith.negf %433 : vector<4x128xf32>
      %435 = math.exp %434 : vector<4x128xf32>
      %cst_142 = arith.constant 1.000000e+00 : f32
      %436 = vector.broadcast %cst_142 : f32 to vector<4x128xf32>
      %437 = arith.addf %436, %435 : vector<4x128xf32>
      %438 = arith.divf %436, %437 : vector<4x128xf32>
      %439 = math.tanh %433 : vector<4x128xf32>
      %440 = vector.extract_strided_slice %438 {offsets = [0, 0], sizes = [4, 32], strides = [1, 1]} : vector<4x128xf32> to vector<4x32xf32>
      %441 = vector.extract_strided_slice %438 {offsets = [0, 32], sizes = [4, 32], strides = [1, 1]} : vector<4x128xf32> to vector<4x32xf32>
      %442 = vector.extract_strided_slice %439 {offsets = [0, 64], sizes = [4, 32], strides = [1, 1]} : vector<4x128xf32> to vector<4x32xf32>
      %443 = vector.extract_strided_slice %438 {offsets = [0, 96], sizes = [4, 32], strides = [1, 1]} : vector<4x128xf32> to vector<4x32xf32>
      %444 = arith.mulf %441, %424 : vector<4x32xf32>
      %445 = arith.mulf %440, %442 : vector<4x32xf32>
      %446 = arith.addf %444, %445 : vector<4x32xf32>
      %447 = math.tanh %446 : vector<4x32xf32>
      %448 = arith.mulf %443, %447 : vector<4x32xf32>
      %449 = vector.broadcast %431 : i32 to vector<4x32xi32>
      %450 = arith.cmpi slt, %449, %1 : vector<4x32xi32>
      %451 = arith.select %450, %448, %423 : vector<4x32xi1>, vector<4x32xf32>
      %452 = arith.select %450, %446, %424 : vector<4x32xi1>, vector<4x32xf32>
      %c1_i32_143 = arith.constant 1 : i32
      %453 = arith.addi %426, %c1_i32_143 : i32
      %454 = arith.index_cast %453 : i32 to index
      %c0_144 = arith.constant 0 : index
      %c0_145 = arith.constant 0 : index
      %455 = vector.load %arg1[%454, %c0_144, %c0_145] : memref<160x4x128xf32, #tpu.memory_space<vmem>>, vector<1x4x128xf32>
      %456 = vector.shape_cast %455 : vector<1x4x128xf32> to vector<4x128xf32>
      %c1_i32_146 = arith.constant 1 : i32
      %457 = arith.addi %426, %c1_i32_146 : i32
      %cst_147 = arith.constant dense<0.000000e+00> : vector<4x128xf32>
      %458 = tpu.matmul %451, %3, %cst_147 {dimension_numbers = #tpu.dot_dimension_numbers<[1], [0], [0], [1], [0, 0, 1, 1], [], []>} : vector<4x32xf32>, vector<32x128xf32>, vector<4x128xf32> -> vector<4x128xf32>
      %459 = arith.addf %456, %458 : vector<4x128xf32>
      %460 = arith.negf %459 : vector<4x128xf32>
      %461 = math.exp %460 : vector<4x128xf32>
      %cst_148 = arith.constant 1.000000e+00 : f32
      %462 = vector.broadcast %cst_148 : f32 to vector<4x128xf32>
      %463 = arith.addf %462, %461 : vector<4x128xf32>
      %464 = arith.divf %462, %463 : vector<4x128xf32>
      %465 = math.tanh %459 : vector<4x128xf32>
      %466 = vector.extract_strided_slice %464 {offsets = [0, 0], sizes = [4, 32], strides = [1, 1]} : vector<4x128xf32> to vector<4x32xf32>
      %467 = vector.extract_strided_slice %464 {offsets = [0, 32], sizes = [4, 32], strides = [1, 1]} : vector<4x128xf32> to vector<4x32xf32>
      %468 = vector.extract_strided_slice %465 {offsets = [0, 64], sizes = [4, 32], strides = [1, 1]} : vector<4x128xf32> to vector<4x32xf32>
      %469 = vector.extract_strided_slice %464 {offsets = [0, 96], sizes = [4, 32], strides = [1, 1]} : vector<4x128xf32> to vector<4x32xf32>
      %470 = arith.mulf %467, %452 : vector<4x32xf32>
      %471 = arith.mulf %466, %468 : vector<4x32xf32>
      %472 = arith.addf %470, %471 : vector<4x32xf32>
      %473 = math.tanh %472 : vector<4x32xf32>
      %474 = arith.mulf %469, %473 : vector<4x32xf32>
      %475 = vector.broadcast %457 : i32 to vector<4x32xi32>
      %476 = arith.cmpi slt, %475, %1 : vector<4x32xi32>
      %477 = arith.select %476, %474, %451 : vector<4x32xi1>, vector<4x32xf32>
      %478 = arith.select %476, %472, %452 : vector<4x32xi1>, vector<4x32xf32>
      %c2_i32_149 = arith.constant 2 : i32
      %479 = arith.addi %426, %c2_i32_149 : i32
      %480 = arith.index_cast %479 : i32 to index
      %c0_150 = arith.constant 0 : index
      %c0_151 = arith.constant 0 : index
      %481 = vector.load %arg1[%480, %c0_150, %c0_151] : memref<160x4x128xf32, #tpu.memory_space<vmem>>, vector<1x4x128xf32>
      %482 = vector.shape_cast %481 : vector<1x4x128xf32> to vector<4x128xf32>
      %c2_i32_152 = arith.constant 2 : i32
      %483 = arith.addi %426, %c2_i32_152 : i32
      %cst_153 = arith.constant dense<0.000000e+00> : vector<4x128xf32>
      %484 = tpu.matmul %477, %3, %cst_153 {dimension_numbers = #tpu.dot_dimension_numbers<[1], [0], [0], [1], [0, 0, 1, 1], [], []>} : vector<4x32xf32>, vector<32x128xf32>, vector<4x128xf32> -> vector<4x128xf32>
      %485 = arith.addf %482, %484 : vector<4x128xf32>
      %486 = arith.negf %485 : vector<4x128xf32>
      %487 = math.exp %486 : vector<4x128xf32>
      %cst_154 = arith.constant 1.000000e+00 : f32
      %488 = vector.broadcast %cst_154 : f32 to vector<4x128xf32>
      %489 = arith.addf %488, %487 : vector<4x128xf32>
      %490 = arith.divf %488, %489 : vector<4x128xf32>
      %491 = math.tanh %485 : vector<4x128xf32>
      %492 = vector.extract_strided_slice %490 {offsets = [0, 0], sizes = [4, 32], strides = [1, 1]} : vector<4x128xf32> to vector<4x32xf32>
      %493 = vector.extract_strided_slice %490 {offsets = [0, 32], sizes = [4, 32], strides = [1, 1]} : vector<4x128xf32> to vector<4x32xf32>
      %494 = vector.extract_strided_slice %491 {offsets = [0, 64], sizes = [4, 32], strides = [1, 1]} : vector<4x128xf32> to vector<4x32xf32>
      %495 = vector.extract_strided_slice %490 {offsets = [0, 96], sizes = [4, 32], strides = [1, 1]} : vector<4x128xf32> to vector<4x32xf32>
      %496 = arith.mulf %493, %478 : vector<4x32xf32>
      %497 = arith.mulf %492, %494 : vector<4x32xf32>
      %498 = arith.addf %496, %497 : vector<4x32xf32>
      %499 = math.tanh %498 : vector<4x32xf32>
      %500 = arith.mulf %495, %499 : vector<4x32xf32>
      %501 = vector.broadcast %483 : i32 to vector<4x32xi32>
      %502 = arith.cmpi slt, %501, %1 : vector<4x32xi32>
      %503 = arith.select %502, %500, %477 : vector<4x32xi1>, vector<4x32xf32>
      %504 = arith.select %502, %498, %478 : vector<4x32xi1>, vector<4x32xf32>
      %c3_i32_155 = arith.constant 3 : i32
      %505 = arith.addi %426, %c3_i32_155 : i32
      %506 = arith.index_cast %505 : i32 to index
      %c0_156 = arith.constant 0 : index
      %c0_157 = arith.constant 0 : index
      %507 = vector.load %arg1[%506, %c0_156, %c0_157] : memref<160x4x128xf32, #tpu.memory_space<vmem>>, vector<1x4x128xf32>
      %508 = vector.shape_cast %507 : vector<1x4x128xf32> to vector<4x128xf32>
      %c3_i32_158 = arith.constant 3 : i32
      %509 = arith.addi %426, %c3_i32_158 : i32
      %cst_159 = arith.constant dense<0.000000e+00> : vector<4x128xf32>
      %510 = tpu.matmul %503, %3, %cst_159 {dimension_numbers = #tpu.dot_dimension_numbers<[1], [0], [0], [1], [0, 0, 1, 1], [], []>} : vector<4x32xf32>, vector<32x128xf32>, vector<4x128xf32> -> vector<4x128xf32>
      %511 = arith.addf %508, %510 : vector<4x128xf32>
      %512 = arith.negf %511 : vector<4x128xf32>
      %513 = math.exp %512 : vector<4x128xf32>
      %cst_160 = arith.constant 1.000000e+00 : f32
      %514 = vector.broadcast %cst_160 : f32 to vector<4x128xf32>
      %515 = arith.addf %514, %513 : vector<4x128xf32>
      %516 = arith.divf %514, %515 : vector<4x128xf32>
      %517 = math.tanh %511 : vector<4x128xf32>
      %518 = vector.extract_strided_slice %516 {offsets = [0, 0], sizes = [4, 32], strides = [1, 1]} : vector<4x128xf32> to vector<4x32xf32>
      %519 = vector.extract_strided_slice %516 {offsets = [0, 32], sizes = [4, 32], strides = [1, 1]} : vector<4x128xf32> to vector<4x32xf32>
      %520 = vector.extract_strided_slice %517 {offsets = [0, 64], sizes = [4, 32], strides = [1, 1]} : vector<4x128xf32> to vector<4x32xf32>
      %521 = vector.extract_strided_slice %516 {offsets = [0, 96], sizes = [4, 32], strides = [1, 1]} : vector<4x128xf32> to vector<4x32xf32>
      %522 = arith.mulf %519, %504 : vector<4x32xf32>
      %523 = arith.mulf %518, %520 : vector<4x32xf32>
      %524 = arith.addf %522, %523 : vector<4x32xf32>
      %525 = math.tanh %524 : vector<4x32xf32>
      %526 = arith.mulf %521, %525 : vector<4x32xf32>
      %527 = vector.broadcast %509 : i32 to vector<4x32xi32>
      %528 = arith.cmpi slt, %527, %1 : vector<4x32xi32>
      %529 = arith.select %528, %526, %503 : vector<4x32xi1>, vector<4x32xf32>
      %530 = arith.select %528, %524, %504 : vector<4x32xi1>, vector<4x32xf32>
      %c4_i32_161 = arith.constant 4 : i32
      %531 = arith.addi %426, %c4_i32_161 : i32
      %532 = arith.index_cast %531 : i32 to index
      %c0_162 = arith.constant 0 : index
      %c0_163 = arith.constant 0 : index
      %533 = vector.load %arg1[%532, %c0_162, %c0_163] : memref<160x4x128xf32, #tpu.memory_space<vmem>>, vector<1x4x128xf32>
      %534 = vector.shape_cast %533 : vector<1x4x128xf32> to vector<4x128xf32>
      %c4_i32_164 = arith.constant 4 : i32
      %535 = arith.addi %426, %c4_i32_164 : i32
      %cst_165 = arith.constant dense<0.000000e+00> : vector<4x128xf32>
      %536 = tpu.matmul %529, %3, %cst_165 {dimension_numbers = #tpu.dot_dimension_numbers<[1], [0], [0], [1], [0, 0, 1, 1], [], []>} : vector<4x32xf32>, vector<32x128xf32>, vector<4x128xf32> -> vector<4x128xf32>
      %537 = arith.addf %534, %536 : vector<4x128xf32>
      %538 = arith.negf %537 : vector<4x128xf32>
      %539 = math.exp %538 : vector<4x128xf32>
      %cst_166 = arith.constant 1.000000e+00 : f32
      %540 = vector.broadcast %cst_166 : f32 to vector<4x128xf32>
      %541 = arith.addf %540, %539 : vector<4x128xf32>
      %542 = arith.divf %540, %541 : vector<4x128xf32>
      %543 = math.tanh %537 : vector<4x128xf32>
      %544 = vector.extract_strided_slice %542 {offsets = [0, 0], sizes = [4, 32], strides = [1, 1]} : vector<4x128xf32> to vector<4x32xf32>
      %545 = vector.extract_strided_slice %542 {offsets = [0, 32], sizes = [4, 32], strides = [1, 1]} : vector<4x128xf32> to vector<4x32xf32>
      %546 = vector.extract_strided_slice %543 {offsets = [0, 64], sizes = [4, 32], strides = [1, 1]} : vector<4x128xf32> to vector<4x32xf32>
      %547 = vector.extract_strided_slice %542 {offsets = [0, 96], sizes = [4, 32], strides = [1, 1]} : vector<4x128xf32> to vector<4x32xf32>
      %548 = arith.mulf %545, %530 : vector<4x32xf32>
      %549 = arith.mulf %544, %546 : vector<4x32xf32>
      %550 = arith.addf %548, %549 : vector<4x32xf32>
      %551 = math.tanh %550 : vector<4x32xf32>
      %552 = arith.mulf %547, %551 : vector<4x32xf32>
      %553 = vector.broadcast %535 : i32 to vector<4x32xi32>
      %554 = arith.cmpi slt, %553, %1 : vector<4x32xi32>
      %555 = arith.select %554, %552, %529 : vector<4x32xi1>, vector<4x32xf32>
      %556 = arith.select %554, %550, %530 : vector<4x32xi1>, vector<4x32xf32>
      %c5_i32_167 = arith.constant 5 : i32
      %557 = arith.addi %426, %c5_i32_167 : i32
      %558 = arith.index_cast %557 : i32 to index
      %c0_168 = arith.constant 0 : index
      %c0_169 = arith.constant 0 : index
      %559 = vector.load %arg1[%558, %c0_168, %c0_169] : memref<160x4x128xf32, #tpu.memory_space<vmem>>, vector<1x4x128xf32>
      %560 = vector.shape_cast %559 : vector<1x4x128xf32> to vector<4x128xf32>
      %c5_i32_170 = arith.constant 5 : i32
      %561 = arith.addi %426, %c5_i32_170 : i32
      %cst_171 = arith.constant dense<0.000000e+00> : vector<4x128xf32>
      %562 = tpu.matmul %555, %3, %cst_171 {dimension_numbers = #tpu.dot_dimension_numbers<[1], [0], [0], [1], [0, 0, 1, 1], [], []>} : vector<4x32xf32>, vector<32x128xf32>, vector<4x128xf32> -> vector<4x128xf32>
      %563 = arith.addf %560, %562 : vector<4x128xf32>
      %564 = arith.negf %563 : vector<4x128xf32>
      %565 = math.exp %564 : vector<4x128xf32>
      %cst_172 = arith.constant 1.000000e+00 : f32
      %566 = vector.broadcast %cst_172 : f32 to vector<4x128xf32>
      %567 = arith.addf %566, %565 : vector<4x128xf32>
      %568 = arith.divf %566, %567 : vector<4x128xf32>
      %569 = math.tanh %563 : vector<4x128xf32>
      %570 = vector.extract_strided_slice %568 {offsets = [0, 0], sizes = [4, 32], strides = [1, 1]} : vector<4x128xf32> to vector<4x32xf32>
      %571 = vector.extract_strided_slice %568 {offsets = [0, 32], sizes = [4, 32], strides = [1, 1]} : vector<4x128xf32> to vector<4x32xf32>
      %572 = vector.extract_strided_slice %569 {offsets = [0, 64], sizes = [4, 32], strides = [1, 1]} : vector<4x128xf32> to vector<4x32xf32>
      %573 = vector.extract_strided_slice %568 {offsets = [0, 96], sizes = [4, 32], strides = [1, 1]} : vector<4x128xf32> to vector<4x32xf32>
      %574 = arith.mulf %571, %556 : vector<4x32xf32>
      %575 = arith.mulf %570, %572 : vector<4x32xf32>
      %576 = arith.addf %574, %575 : vector<4x32xf32>
      %577 = math.tanh %576 : vector<4x32xf32>
      %578 = arith.mulf %573, %577 : vector<4x32xf32>
      %579 = vector.broadcast %561 : i32 to vector<4x32xi32>
      %580 = arith.cmpi slt, %579, %1 : vector<4x32xi32>
      %581 = arith.select %580, %578, %555 : vector<4x32xi1>, vector<4x32xf32>
      %582 = arith.select %580, %576, %556 : vector<4x32xi1>, vector<4x32xf32>
      %c6_i32_173 = arith.constant 6 : i32
      %583 = arith.addi %426, %c6_i32_173 : i32
      %584 = arith.index_cast %583 : i32 to index
      %c0_174 = arith.constant 0 : index
      %c0_175 = arith.constant 0 : index
      %585 = vector.load %arg1[%584, %c0_174, %c0_175] : memref<160x4x128xf32, #tpu.memory_space<vmem>>, vector<1x4x128xf32>
      %586 = vector.shape_cast %585 : vector<1x4x128xf32> to vector<4x128xf32>
      %c6_i32_176 = arith.constant 6 : i32
      %587 = arith.addi %426, %c6_i32_176 : i32
      %cst_177 = arith.constant dense<0.000000e+00> : vector<4x128xf32>
      %588 = tpu.matmul %581, %3, %cst_177 {dimension_numbers = #tpu.dot_dimension_numbers<[1], [0], [0], [1], [0, 0, 1, 1], [], []>} : vector<4x32xf32>, vector<32x128xf32>, vector<4x128xf32> -> vector<4x128xf32>
      %589 = arith.addf %586, %588 : vector<4x128xf32>
      %590 = arith.negf %589 : vector<4x128xf32>
      %591 = math.exp %590 : vector<4x128xf32>
      %cst_178 = arith.constant 1.000000e+00 : f32
      %592 = vector.broadcast %cst_178 : f32 to vector<4x128xf32>
      %593 = arith.addf %592, %591 : vector<4x128xf32>
      %594 = arith.divf %592, %593 : vector<4x128xf32>
      %595 = math.tanh %589 : vector<4x128xf32>
      %596 = vector.extract_strided_slice %594 {offsets = [0, 0], sizes = [4, 32], strides = [1, 1]} : vector<4x128xf32> to vector<4x32xf32>
      %597 = vector.extract_strided_slice %594 {offsets = [0, 32], sizes = [4, 32], strides = [1, 1]} : vector<4x128xf32> to vector<4x32xf32>
      %598 = vector.extract_strided_slice %595 {offsets = [0, 64], sizes = [4, 32], strides = [1, 1]} : vector<4x128xf32> to vector<4x32xf32>
      %599 = vector.extract_strided_slice %594 {offsets = [0, 96], sizes = [4, 32], strides = [1, 1]} : vector<4x128xf32> to vector<4x32xf32>
      %600 = arith.mulf %597, %582 : vector<4x32xf32>
      %601 = arith.mulf %596, %598 : vector<4x32xf32>
      %602 = arith.addf %600, %601 : vector<4x32xf32>
      %603 = math.tanh %602 : vector<4x32xf32>
      %604 = arith.mulf %599, %603 : vector<4x32xf32>
      %605 = vector.broadcast %587 : i32 to vector<4x32xi32>
      %606 = arith.cmpi slt, %605, %1 : vector<4x32xi32>
      %607 = arith.select %606, %604, %581 : vector<4x32xi1>, vector<4x32xf32>
      %608 = arith.select %606, %602, %582 : vector<4x32xi1>, vector<4x32xf32>
      %c7_i32_179 = arith.constant 7 : i32
      %609 = arith.addi %426, %c7_i32_179 : i32
      %610 = arith.index_cast %609 : i32 to index
      %c0_180 = arith.constant 0 : index
      %c0_181 = arith.constant 0 : index
      %611 = vector.load %arg1[%610, %c0_180, %c0_181] : memref<160x4x128xf32, #tpu.memory_space<vmem>>, vector<1x4x128xf32>
      %612 = vector.shape_cast %611 : vector<1x4x128xf32> to vector<4x128xf32>
      %c7_i32_182 = arith.constant 7 : i32
      %613 = arith.addi %426, %c7_i32_182 : i32
      %cst_183 = arith.constant dense<0.000000e+00> : vector<4x128xf32>
      %614 = tpu.matmul %607, %3, %cst_183 {dimension_numbers = #tpu.dot_dimension_numbers<[1], [0], [0], [1], [0, 0, 1, 1], [], []>} : vector<4x32xf32>, vector<32x128xf32>, vector<4x128xf32> -> vector<4x128xf32>
      %615 = arith.addf %612, %614 : vector<4x128xf32>
      %616 = arith.negf %615 : vector<4x128xf32>
      %617 = math.exp %616 : vector<4x128xf32>
      %cst_184 = arith.constant 1.000000e+00 : f32
      %618 = vector.broadcast %cst_184 : f32 to vector<4x128xf32>
      %619 = arith.addf %618, %617 : vector<4x128xf32>
      %620 = arith.divf %618, %619 : vector<4x128xf32>
      %621 = math.tanh %615 : vector<4x128xf32>
      %622 = vector.extract_strided_slice %620 {offsets = [0, 0], sizes = [4, 32], strides = [1, 1]} : vector<4x128xf32> to vector<4x32xf32>
      %623 = vector.extract_strided_slice %620 {offsets = [0, 32], sizes = [4, 32], strides = [1, 1]} : vector<4x128xf32> to vector<4x32xf32>
      %624 = vector.extract_strided_slice %621 {offsets = [0, 64], sizes = [4, 32], strides = [1, 1]} : vector<4x128xf32> to vector<4x32xf32>
      %625 = vector.extract_strided_slice %620 {offsets = [0, 96], sizes = [4, 32], strides = [1, 1]} : vector<4x128xf32> to vector<4x32xf32>
      %626 = arith.mulf %623, %608 : vector<4x32xf32>
      %627 = arith.mulf %622, %624 : vector<4x32xf32>
      %628 = arith.addf %626, %627 : vector<4x32xf32>
      %629 = math.tanh %628 : vector<4x32xf32>
      %630 = arith.mulf %625, %629 : vector<4x32xf32>
      %631 = vector.broadcast %613 : i32 to vector<4x32xi32>
      %632 = arith.cmpi slt, %631, %1 : vector<4x32xi32>
      %633 = arith.select %632, %630, %607 : vector<4x32xi1>, vector<4x32xf32>
      %634 = arith.select %632, %628, %608 : vector<4x32xi1>, vector<4x32xf32>
      %c0_185 = arith.constant 0 : index
      %c0_186 = arith.constant 0 : index
      %635 = vector.load %arg18[%c0_185, %c0_186] : memref<4x32xf32, #tpu.memory_space<vmem>>, vector<4x32xf32>
      tpu.vector_store %arg18[%c0_185, %c0_186], %633 {strides = array<i32>} : memref<4x32xf32, #tpu.memory_space<vmem>>, vector<4x32xf32>,
      %c0_187 = arith.constant 0 : index
      %c0_188 = arith.constant 0 : index
      %636 = vector.load %arg19[%c0_187, %c0_188] : memref<4x32xf32, #tpu.memory_space<vmem>>, vector<4x32xf32>
      tpu.vector_store %arg19[%c0_187, %c0_188], %634 {strides = array<i32>} : memref<4x32xf32, #tpu.memory_space<vmem>>, vector<4x32xf32>,
    }
    %c19_i32_94 = arith.constant 19 : i32
    %c0_95 = arith.constant 0 : index
    %c0_96 = arith.constant 0 : index
    %375 = vector.load %arg18[%c0_95, %c0_96] : memref<4x32xf32, #tpu.memory_space<vmem>>, vector<4x32xf32>
    %c0_97 = arith.constant 0 : index
    %c0_98 = arith.constant 0 : index
    %376 = vector.load %arg11[%c0_97, %c0_98] : memref<1x32xf32, #tpu.memory_space<vmem>>, vector<1x32xf32>
    %377 = vector.broadcast %376 : vector<1x32xf32> to vector<4x32xf32>
    %378 = arith.mulf %348, %377 : vector<4x32xf32>
    %c0_99 = arith.constant 0 : index
    %c0_100 = arith.constant 0 : index
    %379 = vector.load %arg9[%c0_99, %c0_100] : memref<32x64xf32, #tpu.memory_space<vmem>>, vector<32x64xf32>
    %cst_101 = arith.constant dense<0.000000e+00> : vector<4x64xf32>
    %380 = tpu.matmul %378, %379, %cst_101 {dimension_numbers = #tpu.dot_dimension_numbers<[1], [0], [0], [1], [0, 0, 1, 1], [], []>} : vector<4x32xf32>, vector<32x64xf32>, vector<4x64xf32> -> vector<4x64xf32>
    %c0_102 = arith.constant 0 : index
    %c0_103 = arith.constant 0 : index
    %381 = vector.load %arg10[%c0_102, %c0_103] : memref<1x32xf32, #tpu.memory_space<vmem>>, vector<1x32xf32>
    %382 = vector.broadcast %381 : vector<1x32xf32> to vector<4x32xf32>
    %383 = arith.mulf %378, %382 : vector<4x32xf32>
    %cst_104 = arith.constant dense<0.000000e+00> : vector<4xf32>
    %384 = vector.multi_reduction <add>, %383, %cst_104 [1] : vector<4x32xf32> to vector<4xf32>
    %385 = vector.shape_cast %384 : vector<4xf32> to vector<4x1xf32>
    %c0_105 = arith.constant 0 : index
    %c0_106 = arith.constant 0 : index
    %386 = vector.load %arg12[%c0_105, %c0_106] : memref<1x1xf32, #tpu.memory_space<vmem>>, vector<1x1xf32>
    %387 = vector.extract %386[0, 0] : f32 from vector<1x1xf32>
    %388 = vector.broadcast %387 : f32 to vector<4x1xf32>
    %389 = arith.addf %385, %388 : vector<4x1xf32>
    %c0_107 = arith.constant 0 : index
    %c0_108 = arith.constant 0 : index
    %390 = vector.load %arg7[%c0_107, %c0_108] : memref<64x32xf32, #tpu.memory_space<vmem>>, vector<64x32xf32>
    %cst_109 = arith.constant dense<0.000000e+00> : vector<4x32xf32>
    %391 = tpu.matmul %380, %390, %cst_109 {dimension_numbers = #tpu.dot_dimension_numbers<[1], [0], [0], [1], [0, 0, 1, 1], [], []>} : vector<4x64xf32>, vector<64x32xf32>, vector<4x32xf32> -> vector<4x32xf32>
    %392 = vector.broadcast %389 : vector<4x1xf32> to vector<4x32xf32>
    %393 = arith.addf %391, %392 : vector<4x32xf32>
    %c0_110 = arith.constant 0 : index
    %c0_111 = arith.constant 0 : index
    %394 = vector.load %arg8[%c0_110, %c0_111] : memref<4x32xf32, #tpu.memory_space<vmem>>, vector<4x32xf32>
    %cst_112 = arith.constant 5.000000e-01 : f32
    %395 = vector.broadcast %cst_112 : f32 to vector<4x32xf32>
    %396 = arith.cmpf ogt, %394, %395 : vector<4x32xf32>
    %cst_113 = arith.constant -1.000000e+30 : f32
    %397 = vector.broadcast %cst_113 : f32 to vector<4x32xf32>
    %398 = arith.select %396, %393, %397 : vector<4x32xi1>, vector<4x32xf32>
    %cst_114 = arith.constant dense<0xFF800000> : vector<4xf32>
    %399 = vector.multi_reduction <maximumf>, %398, %cst_114 [1] : vector<4x32xf32> to vector<4xf32>
    %400 = vector.shape_cast %399 : vector<4xf32> to vector<4x1xf32>
    %401 = vector.broadcast %400 : vector<4x1xf32> to vector<4x32xf32>
    %402 = arith.subf %398, %401 : vector<4x32xf32>
    %403 = math.exp %402 : vector<4x32xf32>
    %cst_115 = arith.constant dense<0.000000e+00> : vector<4xf32>
    %404 = vector.multi_reduction <add>, %403, %cst_115 [1] : vector<4x32xf32> to vector<4xf32>
    %405 = vector.shape_cast %404 : vector<4xf32> to vector<4x1xf32>
    %406 = vector.broadcast %405 : vector<4x1xf32> to vector<4x32xf32>
    %407 = arith.divf %403, %406 : vector<4x32xf32>
    %c0_116 = arith.constant 0 : index
    %c0_117 = arith.constant 0 : index
    %408 = vector.load %arg6[%c0_116, %c0_117] : memref<32x64xf32, #tpu.memory_space<vmem>>, vector<32x64xf32>
    %cst_118 = arith.constant dense<0.000000e+00> : vector<4x64xf32>
    %409 = tpu.matmul %407, %408, %cst_118 {dimension_numbers = #tpu.dot_dimension_numbers<[1], [0], [0], [1], [0, 0, 1, 1], [], []>} : vector<4x32xf32>, vector<32x64xf32>, vector<4x64xf32> -> vector<4x64xf32>
    %c0_119 = arith.constant 0 : index
    %c0_120 = arith.constant 0 : index
    %410 = vector.load %arg13[%c0_119, %c0_120] : memref<64x32xf32, #tpu.memory_space<vmem>>, vector<64x32xf32>
    %cst_121 = arith.constant dense<0.000000e+00> : vector<4x32xf32>
    %411 = tpu.matmul %409, %410, %cst_121 {dimension_numbers = #tpu.dot_dimension_numbers<[1], [0], [0], [1], [0, 0, 1, 1], [], []>} : vector<4x64xf32>, vector<64x32xf32>, vector<4x32xf32> -> vector<4x32xf32>
    %c0_122 = arith.constant 0 : index
    %c0_123 = arith.constant 0 : index
    %412 = vector.load %arg14[%c0_122, %c0_123] : memref<32x32xf32, #tpu.memory_space<vmem>>, vector<32x32xf32>
    %cst_124 = arith.constant dense<0.000000e+00> : vector<4x32xf32>
    %413 = tpu.matmul %348, %412, %cst_124 {dimension_numbers = #tpu.dot_dimension_numbers<[1], [0], [0], [1], [0, 0, 1, 1], [], []>} : vector<4x32xf32>, vector<32x32xf32>, vector<4x32xf32> -> vector<4x32xf32>
    %414 = arith.addf %411, %413 : vector<4x32xf32>
    %c0_125 = arith.constant 0 : index
    %c0_126 = arith.constant 0 : index
    %415 = vector.load %arg15[%c0_125, %c0_126] : memref<32x32xf32, #tpu.memory_space<vmem>>, vector<32x32xf32>
    %cst_127 = arith.constant dense<0.000000e+00> : vector<4x32xf32>
    %416 = tpu.matmul %375, %415, %cst_127 {dimension_numbers = #tpu.dot_dimension_numbers<[1], [0], [0], [1], [0, 0, 1, 1], [], []>} : vector<4x32xf32>, vector<32x32xf32>, vector<4x32xf32> -> vector<4x32xf32>
    %417 = arith.addf %414, %416 : vector<4x32xf32>
    %c0_128 = arith.constant 0 : index
    %c0_129 = arith.constant 0 : index
    %418 = vector.load %arg16[%c0_128, %c0_129] : memref<1x32xf32, #tpu.memory_space<vmem>>, vector<1x32xf32>
    %419 = vector.broadcast %418 : vector<1x32xf32> to vector<4x32xf32>
    %420 = arith.addf %417, %419 : vector<4x32xf32>
    %421 = math.tanh %420 : vector<4x32xf32>
    %c0_130 = arith.constant 0 : index
    %c0_131 = arith.constant 0 : index
    %422 = vector.load %arg17[%c0_130, %c0_131] : memref<4x32xf32, #tpu.memory_space<vmem>>, vector<4x32xf32>
    tpu.vector_store %arg17[%c0_130, %c0_131], %421 {strides = array<i32>} : memref<4x32xf32, #tpu.memory_space<vmem>>, vector<4x32xf32>,
    return
  }
}

</mosaic_0001>

<bundles_post_ra>
// kernel: tpu_custom_call.1
= control target key start
LH: loop header
LB: loop body
LE: loop exit
PB: predicated region body
PF: predicated region fallthrough
CT: control target
= control target key end

     0   :  { %s5419_s0 = inlined_call_operand.vmem [shape: f32[8,4,128], index: 0, kind: input, shape index: {}]   ;;  %s5420_s1 = inlined_call_operand.hbm [shape: f32[160,4,128], index: 1, kind: input, shape index: {}]   ;;  %s5421_s2 = inlined_call_operand.vmem [shape: s32[4,32], index: 2, kind: input, shape index: {}]   ;;  %s5422_s3 = inlined_call_operand.hbm [shape: s32[4,32], index: 3, kind: input, shape index: {}]   ;;  %s5423_s4 = inlined_call_operand.vmem [shape: f32[32,128], index: 4, kind: input, shape index: {}]   ;;  %s5424_s5 = inlined_call_operand.vmem [shape: f32[32,128], index: 5, kind: input, shape index: {}]   ;;  %s5425_s6 = inlined_call_operand.vmem [shape: f32[32,64], index: 6, kind: input, shape index: {}]   ;;  %s5426_s7 = inlined_call_operand.vmem [shape: f32[64,32], index: 7, kind: input, shape index: {}]   ;;  %s5427_s8 = inlined_call_operand.vmem [shape: f32[4,32], index: 8, kind: input, shape index: {}]   ;;  %s5428_s9 = inlined_call_operand.vmem [shape: f32[32,64], index: 9, kind: input, shape index: {}]   ;;  %s5429_s10 = inlined_call_operand.vmem [shape: f32[1,32], index: 10, kind: input, shape index: {}]   ;;  %s5430_s11 = inlined_call_operand.vmem [shape: f32[1,32], index: 11, kind: input, shape index: {}]   ;;  %s5431_s12 = inlined_call_operand.<no memory space> [shape: f32[1,1], index: 12, kind: input, shape index: {}]   ;;  %s5432_s13 = inlined_call_operand.vmem [shape: f32[64,32], index: 13, kind: input, shape index: {}]   ;;  %s5433_s14 = inlined_call_operand.hbm [shape: f32[32,32], index: 14, kind: input, shape index: {}]   ;;  %s5434_s15 = inlined_call_operand.hbm [shape: f32[32,32], index: 15, kind: input, shape index: {}]   ;;  %s5435_s16 = inlined_call_operand.vmem [shape: f32[1,32], index: 16, kind: input, shape index: {}]   ;;  %s5436_s17 = inlined_call_operand.hbm [shape: f32[4,32], index: 17, kind: output, shape index: {}]  }
   0x1   :  { %5438 = sst [smem:[#allocation18_spill]] %s5419_s0  ;;  %v22_v0 = vstv %s5431_s12 }
   0x2   :  { %5439 = sst [smem:[#allocation19_spill]] %s5420_s1  ;;  %23 = vst [vmem:[#allocation4] sm:$0x1] %v22_v0 }
   0x3   :  { %24 = vsyncpa [#allocation6], 0 }
   0x4   :  { %25 = vsyncpa [#allocation9], 0 }
   0x5   :  { %26 = vsyncpa [#allocation12], 0 }
   0x6   :  { %27 = vsyncpa [#allocation7], 0  ;;  %s4428_s26 = smov [#allocation8]   ;;  %s4429_s28 = smov [#allocation5]  }
   0x7   :  { %s50_s27 = sshll.u32 %s4428_s26, 4  ;;  %s35_s29 = sshll.u32 %s4429_s28, 4  ;;  %s51_s27 = int_to_ptr.vmem [resolvable:$true] %s50_s27  ;;  %s36_s29 = int_to_ptr.vmem [resolvable:$true] %s35_s29 }
   0x8   :  { %s4320_s0 = scalar_lea.vmem %s51_s27, 64  ;;  %p4325_p1 = scmp.lt.s32.totalorder %s51_s27, %s51_s27 }
   0x9   :  { %p4321_p0 = scmp.ne.s32.totalorder %s51_s27, %s4320_s0  ;;  %p4326_p2 = scmp.lt.s32.totalorder %s4320_s0, %s4320_s0 }
   0xb   :  { %p4327_p3 = por %p4326_p2, %p4325_p1 }
   0xd   :  { %p4328_p4 = pnand %p4327_p3, %p4321_p0 }
   0xf   :  { %4331 = shalt.err (!%p4328_p4)
}
  0x10   :  { %53 = dma.hbm_to_vmem [thread:$0]  %s5422_s3, 64, %s51_s27, [#allocation9]  }
  0x11   :  { %s4340_s18 = scalar_lea.vmem %s36_s29, 10240  ;;  %p4345_p6 = scmp.lt.s32.totalorder %s36_s29, %s36_s29 }
  0x12   :  { %p4341_p5 = scmp.ne.s32.totalorder %s36_s29, %s4340_s18  ;;  %p4346_p7 = scmp.lt.s32.totalorder %s4340_s18, %s4340_s18 }
  0x14   :  { %p4347_p8 = por %p4346_p7, %p4345_p6 }
  0x16   :  { %p4348_p9 = pnand %p4347_p8, %p4341_p5 }
  0x18   :  { %4351 = shalt.err (!%p4348_p9)
}
  0x19   :  { %s4430_s19 = smov 64   ;;  %s4431_s1 = smov 4  }
  0x1a   :  { %s5440_s22 = sld [smem:[#allocation19_spill]]  ;;  %s4432_s23 = smov [#allocation10]  }
  0x1b   :  { %s79_s24 = sshll.u32 %s4432_s23, 4  ;;  %s80_s24 = int_to_ptr.vmem [resolvable:$true] %s79_s24 }
  0x1c   :  { %s4360_s25 = scalar_lea.vmem %s80_s24, 512  ;;  %p4365_p11 = scmp.lt.s32.totalorder %s80_s24, %s80_s24 }
  0x1d   :  { %p4361_p10 = scmp.ne.s32.totalorder %s80_s24, %s4360_s25  ;;  %p4366_p12 = scmp.lt.s32.totalorder %s4360_s25, %s4360_s25 }
  0x1f   :  { %p4367_p13 = por %p4366_p12, %p4365_p11 }
  0x20   :  { %41 = dma.hbm_to_vmem [thread:$0]  %s5440_s22, 10240, %s36_s29, [#allocation6], %s4430_s19, %s4430_s19, %s4431_s1  }
  0x21   :  { %p4368_p0 = pnand %p4367_p13, %p4361_p10 }
  0x23   :  { %4371 = shalt.err (!%p4368_p0)
}
  0x24   :  { %s4433_s3 = smov 128   ;;  %s4434_s26 = smov 8  }
  0x25   :  { %85 = dma.hbm_to_vmem [thread:$0]  %s5433_s14, 512, %s80_s24, [#allocation9], %s4433_s3, %s4433_s3, %s4434_s26  }
  0x26   :  { %s4435_s0 = smov [#allocation11]  }
  0x27   :  { %s91_s30 = sshll.u32 %s4435_s0, 4  ;;  %s92_s30 = int_to_ptr.vmem [resolvable:$true] %s91_s30 }
  0x28   :  { %s4380_s29 = scalar_lea.vmem %s92_s30, 512  ;;  %p4385_p2 = scmp.lt.s32.totalorder %s92_s30, %s92_s30 }
  0x29   :  { %p4381_p1 = scmp.ne.s32.totalorder %s92_s30, %s4380_s29  ;;  %p4386_p3 = scmp.lt.s32.totalorder %s4380_s29, %s4380_s29 }
  0x2b   :  { %p4387_p4 = por %p4386_p3, %p4385_p2 }
  0x2d   :  { %p4388_p5 = pnand %p4387_p4, %p4381_p1 }
  0x2f   :  { %4391 = shalt.err (!%p4388_p5)
}
  0x30   :  { %97 = dma.hbm_to_vmem [thread:$0]  %s5434_s15, 512, %s92_s30, [#allocation12], %s4433_s3, %s4433_s3, %s4434_s26  }
  0x31   :  { %4416 = dma.done.wait [#allocation6], 10240  }
  0x32   :  { %4417 = vsyncadd [#allocation6], 4294957056 }
  0x33   :  { %4418 = dma.done.wait [#allocation9], 576  }
  0x34   :  { %4419 = vsyncadd [#allocation9], 4294966720 }
  0x35   :  { %4420 = dma.done.wait [#allocation12], 512  }
  0x36   :  { %4421 = vsyncadd [#allocation12], 4294966784  ;;  %v4436_v1 = vmov 0.0   ;;  %vm4437_vm0 = vmmov 0   ;;  %v4562_v2 = vld [vmem:[%s5424_s5 + $0x18] sm:$0xff]  ;;  %v4572_v4 = vld [vmem:[%s5424_s5 + $0x10] sm:$0xff] }
  0x37   :  { %3741 = vmatprep.subr.mxu1 %v4436_v1  ;;  %3730 = vmatprep.subr.mxu0 %v4436_v1  ;;  %v4567_v3 = vld [vmem:[%s5423_s4 + $0x18] sm:$0xff]  ;;  %v4579_v5 = vld [vmem:[%s5423_s4 + $0x10] sm:$0xff]  ;;  %v4586_v6 = vld [vmem:[%s5424_s5 + $0x8] sm:$0xff]  ;;  %s5441_s14 = sld [smem:[#allocation18_spill]]  ;;  %s4438_s15 = smov 32   ;;  %vm123_vm2 = vcmask 261120  }
  0x38   :  { %3749 = vmatprep.mubr.msk.f32.mxu1 %vm4437_vm0, %v4436_v1  ;;  %3738 = vmatprep.mubr.msk.f32.mxu0 %vm4437_vm0, %v4436_v1  ;;  %v4591_v7 = vld [vmem:[%s5423_s4 + $0x8] sm:$0xff]  ;;  %v4600_v8 = vld [vmem:[%s5424_s5] sm:$0xff]  ;;  %s4439_s1 = smov 96  }
  0x39   :  { %3742 = vmatpush3.msra.mxu1 %v4562_v2  ;;  %3731 = vmatpush3.msra.mxu0 %v4567_v3  ;;  %v4605_v9 = vld [vmem:[%s5423_s4] sm:$0xff]  ;;  %v233_v10 = vld [vmem:[#allocation5] sm:$0xf]  ;;  %v456_v50 = vld [vmem:[#allocation5 + $0x4] sm:$0xf] }
  0x3a   :  { %3743 = vmatprep.subr.mxu1 %v4436_v1  ;;  %3732 = vmatprep.subr.mxu0 %v4436_v1  ;;  %v4650_v44 = vld [vmem:[#allocation8] sm:$0xf]  ;;  %v4656_v45 = vld [vmem:[%s5421_s2] sm:$0xf] }
  0x3b   :  { %3744 = vmatpush3.msra.mxu1 %v4572_v4  ;;  %3733 = vmatpush3.msra.mxu0 %v4579_v5  ;;  %vm329_vm1 = vcmp.gt.s32.totalorder %v4650_v44, 0  ;;  %vm222_vm3 = vcmp.gt.s32.totalorder %v4656_v45, 0  ;;  %vm559_vm4 = vcmp.gt.s32.totalorder %v4650_v44, 1  ;;  %vm444_vm5 = vcmp.gt.s32.totalorder %v4656_v45, 1 }
  0x3c   :  { %3745 = vmatprep.subr.mxu1 %v4436_v1  ;;  %3734 = vmatprep.subr.mxu0 %v4436_v1  ;;  %vm789_vm6 = vcmp.gt.s32.totalorder %v4650_v44, 2  ;;  %vm674_vm7 = vcmp.gt.s32.totalorder %v4656_v45, 2  ;;  %vm1019_vm8 = vcmp.gt.s32.totalorder %v4650_v44, 3  ;;  %vm904_vm9 = vcmp.gt.s32.totalorder %v4656_v45, 3 }
  0x3d   :  { %3746 = vmatpush3.msra.mxu1 %v4586_v6  ;;  %3735 = vmatpush3.msra.mxu0 %v4591_v7  ;;  %v122_v11 = vld [vmem:[%s5441_s14] sm:$0xf]  ;;  %v3479_v54 = vld [vmem:[%s5441_s14 + $0x4] sm:$0xf]  ;;  %vm1249_vm10 = vcmp.gt.s32.totalorder %v4650_v44, 4  ;;  %vm1134_vm11 = vcmp.gt.s32.totalorder %v4656_v45, 4 }
  0x3e   :  { %3747 = vmatprep.subr.mxu1 %v4436_v1  ;;  %3736 = vmatprep.subr.mxu0 %v4436_v1  ;;  %vm1479_vm12 = vcmp.gt.s32.totalorder %v4650_v44, 5  ;;  %vm1364_vm13 = vcmp.gt.s32.totalorder %v4656_v45, 5 }
  0x3f   :  { %3748 = vmatpush3.msra.mxu1 %v4600_v8  ;;  %3737 = vmatpush3.msra.mxu0 %v4605_v9 }
  0x40   :  { %3750 = vmatmul.mubr.f32.vlgmr.msra.gmra.mxu1 %v4436_v1  ;;  %3739 = vmatmul.mubr.f32.vlgmr.msra.gmra.mxu0 %v4436_v1 }
  0x41   :  { %3763 = vmatprep.subr.mxu1 %v4436_v1  ;;  %3752 = vmatprep.subr.mxu0 %v4436_v1 }
  0x42   :  { %3764 = vmatpush3.msra.mxu1 %v4562_v2  ;;  %3753 = vmatpush3.msra.mxu0 %v4567_v3 }
  0x43   :  { %3765 = vmatprep.subr.mxu1 %v4436_v1  ;;  %3754 = vmatprep.subr.mxu0 %v4436_v1 }
  0x44   :  { %3766 = vmatpush3.msra.mxu1 %v4572_v4  ;;  %3755 = vmatpush3.msra.mxu0 %v4579_v5 }
  0x45   :  { %3767 = vmatprep.subr.mxu1 %v4436_v1  ;;  %3771 = vmatprep.mubr.msk.f32.mxu1 %vm4437_vm0, %v4436_v1 }
  0x46   :  { %3768 = vmatpush3.msra.mxu1 %v4586_v6  ;;  %3756 = vmatprep.subr.mxu0 %v4436_v1 }
  0x47   :  { %3769 = vmatprep.subr.mxu1 %v4436_v1  ;;  %3757 = vmatpush3.msra.mxu0 %v4591_v7 }
  0x48   :  { %3770 = vmatpush3.msra.mxu1 %v4600_v8  ;;  %3758 = vmatprep.subr.mxu0 %v4436_v1 }
  0x49   :  { %3759 = vmatpush3.msra.mxu0 %v4605_v9  ;;  %3760 = vmatprep.mubr.msk.f32.mxu0 %vm4437_vm0, %v4436_v1 }
  0x4a   :  { %3785 = vmatprep.subr.mxu1 %v4436_v1  ;;  %3774 = vmatprep.subr.mxu0 %v4436_v1 }
 0x100   :  { %v300_v12 = vpop.f32.mrf.mxu1  ;;  %v193_v13 = vpop.f32.mrf.mxu0 }
 0x101   :  { %v304_v14 = vadd.f32 %v300_v12, %v233_v10  ;;  %v197_v15 = vadd.f32 %v193_v13, %v122_v11 }
 0x102   :  { %v3751_v16 = vpop.f32.mrf.mxu1  ;;  %v3740_v17 = vpop.f32.mrf.mxu0 }
 0x103   :  { %4104 = vtanh.f32 %v304_v14  ;;  %v3478_v20 = vmul.f32 -1.442695, %v304_v14  ;;  %v3477_v21 = vmul.f32 -1.442695, %v197_v15 }
 0x104   :  { %4106 = vtanh.f32 %v197_v15 }
 0x105   :  { %4108 = vpow2.f32 %v3478_v20 }
 0x106   :  { %4110 = vpow2.f32 %v3477_v21 }
 0x110   :  { %v4105_v18 = vpop.eup %4104 }
 0x111   :  { %314 = vrot.lane.b32.xlu0 %v4105_v18, %s4430_s19  ;;  %v4107_v19 = vpop.eup %4106 }
 0x112   :  { %v4109_v22 = vpop.eup %4108 }
 0x113   :  { %v308_v23 = vadd.f32 1.0, %v4109_v22  ;;  %v4111_v24 = vpop.eup %4110 }
 0x114   :  { %v201_v25 = vadd.f32 1.0, %v4111_v24 }
 0x115   :  { %207 = vrot.lane.b32.xlu0 %v4107_v19, %s4430_s19  ;;  %4112 = vrcp.f32 %v308_v23 }
 0x116   :  { %4114 = vrcp.f32 %v201_v25 }
 0x122   :  { %v4113_v26 = vpop.eup %4112 }
 0x123   :  { %v4115_v29 = vpop.eup %4114  ;;  %v312_v32 = vmul.f32 0.0, %v4113_v26 }
 0x124   :  { %v205_v35 = vmul.f32 0.0, %v4115_v29 }
 0x183   :  { %v315_v27 = vpop.permute.xlu0 %314 }
 0x184   :  { %v317_v28 = vmul.f32 %v4113_v26, %v315_v27 }
 0x186   :  { %319 = vrot.lane.b32.xlu1 %v317_v28, %s4438_s15 }
 0x187   :  { %v208_v30 = vpop.permute.xlu0 %207 }
 0x188   :  { %v210_v31 = vmul.f32 %v4115_v29, %v208_v30 }
 0x18a   :  { %212 = vrot.lane.b32.xlu1 %v210_v31, %s4438_s15 }
 0x1f8   :  { %v320_v33 = vpop.permute.xlu1 %319 }
 0x1f9   :  { %v322_v34 = vadd.f32 %v320_v33, %v312_v32 }
 0x1fb   :  { %4116 = vtanh.f32 %v322_v34 }
 0x1fc   :  { %v213_v36 = vpop.permute.xlu1 %212 }
 0x1fd   :  { %v215_v37 = vadd.f32 %v213_v36, %v205_v35 }
 0x1ff   :  { %4118 = vtanh.f32 %v215_v37 }
 0x208   :  { %v4117_v38 = vpop.eup %4116 }
 0x209   :  { %325 = vrot.lane.b32.xlu0 %v4117_v38, %s4430_s19 }
 0x20c   :  { %v4119_v39 = vpop.eup %4118 }
 0x20d   :  { %218 = vrot.lane.b32.xlu1 %v4119_v39, %s4430_s19  ;;  %v686_v39 = vld [vmem:[#allocation5 + $0x8] sm:$0xf] }
 0x27b   :  { %v326_v40 = vpop.permute.xlu0 %325 }
 0x27c   :  { %v328_v41 = vmul.f32 %v4113_v26, %v326_v40 }
 0x27e   :  { %331 = vrot.lane.b32.xlu0 %v328_v41, %s4438_s15 }
 0x27f   :  { %v219_v42 = vpop.permute.xlu1 %218 }
 0x280   :  { %v221_v43 = vmul.f32 %v4115_v29, %v219_v42 }
 0x282   :  { %336 = vrot.lane.b32.xlu0 %v322_v34, %s4439_s1  ;;  %224 = vrot.lane.b32.xlu1 %v221_v43, %s4438_s15  ;;  %v3484_v43 = vld [vmem:[%s5441_s14 + $0x8] sm:$0xf] }
 0x286   :  { %229 = vrot.lane.b32.xlu1 %v215_v37, %s4439_s1 }
 0x2f0   :  { %v332_v46 = vpop.permute.xlu0 %331 }
 0x2f1   :  { %v4660_v47 = vsel %vm329_vm1, %v332_v46, 0.0 }
 0x2f2   :  { %3772 = vmatmul.mubr.msk.f32.vlgmr.msra.gmra.mxu1 %vm123_vm2, %v4660_v47 }
 0x2f3   :  { %3786 = vmatpush3.msra.mxu1 %v4562_v2  ;;  %3793 = vmatprep.mubr.msk.f32.mxu1 %vm4437_vm0, %v4436_v1 }
 0x2f4   :  { %v225_v48 = vpop.permute.xlu1 %224  ;;  %3787 = vmatprep.subr.mxu1 %v4436_v1  ;;  %v337_v59 = vpop.permute.xlu0 %336 }
 0x2f5   :  { %v4671_v49 = vsel %vm222_vm3, %v225_v48, 0.0  ;;  %3788 = vmatpush3.msra.mxu1 %v4572_v4  ;;  %v4697_v61 = vsel %vm329_vm1, %v337_v59, 0.0 }
 0x2f6   :  { %3761 = vmatmul.mubr.msk.f32.vlgmr.msra.gmra.mxu0 %vm123_vm2, %v4671_v49  ;;  %3789 = vmatprep.subr.mxu1 %v4436_v1 }
 0x2f7   :  { %3775 = vmatpush3.msra.mxu0 %v4567_v3  ;;  %3790 = vmatpush3.msra.mxu1 %v4586_v6 }
 0x2f8   :  { %3791 = vmatprep.subr.mxu1 %v4436_v1  ;;  %3776 = vmatprep.subr.mxu0 %v4436_v1  ;;  %v230_v62 = vpop.permute.xlu1 %229 }
 0x2f9   :  { %3777 = vmatpush3.msra.mxu0 %v4579_v5  ;;  %3792 = vmatpush3.msra.mxu1 %v4600_v8  ;;  %v4704_v63 = vsel %vm222_vm3, %v230_v62, 0.0  ;;  %vm1945_vm3 = vcmask 257024  }
 0x2fa   :  { %3778 = vmatprep.subr.mxu0 %v4436_v1  ;;  %3782 = vmatprep.mubr.msk.f32.mxu0 %vm4437_vm0, %v4436_v1 }
 0x2fb   :  { %3779 = vmatpush3.msra.mxu0 %v4591_v7  ;;  %3807 = vmatprep.subr.mxu1 %v4436_v1 }
 0x2fc   :  { %3780 = vmatprep.subr.mxu0 %v4436_v1 }
 0x2fd   :  { %3781 = vmatpush3.msra.mxu0 %v4605_v9 }
 0x2fe   :  { %3796 = vmatprep.subr.mxu0 %v4436_v1 }
 0x3b2   :  { %v526_v51 = vpop.f32.mrf.mxu1 }
 0x3b3   :  { %v530_v52 = vadd.f32 %v526_v51, %v456_v50 }
 0x3b4   :  { %v3773_v53 = vpop.f32.mrf.mxu1 }
 0x3b5   :  { %4120 = vtanh.f32 %v530_v52  ;;  %v3483_v0 = vmul.f32 -1.442695, %v530_v52 }
 0x3b6   :  { %v411_v55 = vpop.f32.mrf.mxu0 }
 0x3b7   :  { %v415_v56 = vadd.f32 %v3479_v54, %v411_v55 }
 0x3b8   :  { %v3762_v57 = vpop.f32.mrf.mxu0 }
 0x3b9   :  { %4122 = vtanh.f32 %v415_v56  ;;  %v3481_v10 = vmul.f32 -1.442695, %v415_v56 }
 0x3ba   :  { %4124 = vpow2.f32 %v3483_v0 }
 0x3bb   :  { %4126 = vpow2.f32 %v3481_v10 }
 0x3c2   :  { %v4121_v58 = vpop.eup %4120 }
 0x3c3   :  { %544 = vrot.lane.b32.xlu0 %v4121_v58, %s4430_s19 }
 0x3c6   :  { %v4123_v60 = vpop.eup %4122 }
 0x3c7   :  { %539 = vrot.lane.b32.xlu0 %v4697_v61, %s4438_s15  ;;  %429 = vrot.lane.b32.xlu1 %v4123_v60, %s4430_s19  ;;  %v4125_v11 = vpop.eup %4124 }
 0x3c8   :  { %v534_v12 = vadd.f32 1.0, %v4125_v11  ;;  %v4127_v13 = vpop.eup %4126 }
 0x3c9   :  { %v419_v14 = vadd.f32 1.0, %v4127_v13 }
 0x3ca   :  { %4128 = vrcp.f32 %v534_v12 }
 0x3cb   :  { %424 = vrot.lane.b32.xlu1 %v4704_v63, %s4438_s15  ;;  %4130 = vrcp.f32 %v419_v14 }
 0x3d7   :  { %v4129_v15 = vpop.eup %4128 }
 0x3d8   :  { %v4131_v18 = vpop.eup %4130 }
 0x435   :  { %v545_v16 = vpop.permute.xlu0 %544 }
 0x436   :  { %v547_v17 = vmul.f32 %v4129_v15, %v545_v16 }
 0x438   :  { %549 = vrot.lane.b32.xlu0 %v547_v17, %s4438_s15 }
 0x439   :  { %v430_v19 = vpop.permute.xlu1 %429  ;;  %v540_v21 = vpop.permute.xlu0 %539 }
 0x43a   :  { %v432_v20 = vmul.f32 %v4131_v18, %v430_v19  ;;  %v542_v22 = vmul.f32 %v4129_v15, %v540_v21 }
 0x43c   :  { %434 = vrot.lane.b32.xlu1 %v432_v20, %s4438_s15 }
 0x43d   :  { %v425_v23 = vpop.permute.xlu1 %424 }
 0x43e   :  { %v427_v26 = vmul.f32 %v4131_v18, %v425_v23 }
 0x4aa   :  { %v550_v24 = vpop.permute.xlu0 %549 }
 0x4ab   :  { %v552_v25 = vadd.f32 %v550_v24, %v542_v22 }
 0x4ad   :  { %4132 = vtanh.f32 %v552_v25 }
 0x4ae   :  { %v435_v27 = vpop.permute.xlu1 %434 }
 0x4af   :  { %v437_v28 = vadd.f32 %v435_v27, %v427_v26 }
 0x4b1   :  { %4134 = vtanh.f32 %v437_v28 }
 0x4ba   :  { %v4133_v29 = vpop.eup %4132 }
 0x4bb   :  { %555 = vrot.lane.b32.xlu0 %v4133_v29, %s4430_s19 }
 0x4be   :  { %v4135_v30 = vpop.eup %4134 }
 0x4bf   :  { %440 = vrot.lane.b32.xlu1 %v4135_v30, %s4430_s19  ;;  %v916_v30 = vld [vmem:[#allocation5 + $0xc] sm:$0xf] }
 0x52d   :  { %v556_v31 = vpop.permute.xlu0 %555 }
 0x52e   :  { %v558_v32 = vmul.f32 %v4129_v15, %v556_v31 }
 0x530   :  { %561 = vrot.lane.b32.xlu0 %v558_v32, %s4438_s15 }
 0x531   :  { %v441_v33 = vpop.permute.xlu1 %440 }
 0x532   :  { %v443_v34 = vmul.f32 %v4131_v18, %v441_v33 }
 0x534   :  { %566 = vrot.lane.b32.xlu0 %v552_v25, %s4439_s1  ;;  %446 = vrot.lane.b32.xlu1 %v443_v34, %s4438_s15  ;;  %v3489_v34 = vld [vmem:[%s5441_s14 + $0xc] sm:$0xf] }
 0x538   :  { %451 = vrot.lane.b32.xlu1 %v437_v28, %s4439_s1 }
 0x5a2   :  { %v562_v35 = vpop.permute.xlu0 %561 }
 0x5a3   :  { %v4720_v36 = vsel %vm559_vm4, %v562_v35, %v4660_v47 }
 0x5a4   :  { %3794 = vmatmul.mubr.msk.f32.vlgmr.msra.gmra.mxu1 %vm123_vm2, %v4720_v36 }
 0x5a5   :  { %3808 = vmatpush3.msra.mxu1 %v4562_v2  ;;  %3815 = vmatprep.mubr.msk.f32.mxu1 %vm4437_vm0, %v4436_v1 }
 0x5a6   :  { %v447_v37 = vpop.permute.xlu1 %446  ;;  %3809 = vmatprep.subr.mxu1 %v4436_v1  ;;  %v567_v50 = vpop.permute.xlu0 %566 }
 0x5a7   :  { %v4732_v38 = vsel %vm444_vm5, %v447_v37, %v4671_v49  ;;  %3810 = vmatpush3.msra.mxu1 %v4572_v4  ;;  %v4759_v52 = vsel %vm559_vm4, %v567_v50, %v4697_v61 }
 0x5a8   :  { %3783 = vmatmul.mubr.msk.f32.vlgmr.msra.gmra.mxu0 %vm123_vm2, %v4732_v38  ;;  %3811 = vmatprep.subr.mxu1 %v4436_v1 }
 0x5a9   :  { %3797 = vmatpush3.msra.mxu0 %v4567_v3  ;;  %3812 = vmatpush3.msra.mxu1 %v4586_v6 }
 0x5aa   :  { %3813 = vmatprep.subr.mxu1 %v4436_v1  ;;  %3798 = vmatprep.subr.mxu0 %v4436_v1  ;;  %v452_v53 = vpop.permute.xlu1 %451 }
 0x5ab   :  { %3799 = vmatpush3.msra.mxu0 %v4579_v5  ;;  %3814 = vmatpush3.msra.mxu1 %v4600_v8  ;;  %v4767_v54 = vsel %vm444_vm5, %v452_v53, %v4704_v63 }
 0x5ac   :  { %3800 = vmatprep.subr.mxu0 %v4436_v1  ;;  %3804 = vmatprep.mubr.msk.f32.mxu0 %vm4437_vm0, %v4436_v1 }
 0x5ad   :  { %3801 = vmatpush3.msra.mxu0 %v4591_v7  ;;  %3829 = vmatprep.subr.mxu1 %v4436_v1 }
 0x5ae   :  { %3802 = vmatprep.subr.mxu0 %v4436_v1 }
 0x5af   :  { %3803 = vmatpush3.msra.mxu0 %v4605_v9 }
 0x5b0   :  { %3818 = vmatprep.subr.mxu0 %v4436_v1 }
 0x664   :  { %v756_v40 = vpop.f32.mrf.mxu1 }
 0x665   :  { %v760_v41 = vadd.f32 %v756_v40, %v686_v39 }
 0x666   :  { %v3795_v42 = vpop.f32.mrf.mxu1 }
 0x667   :  { %4136 = vtanh.f32 %v760_v41  ;;  %v3488_v55 = vmul.f32 -1.442695, %v760_v41 }
 0x668   :  { %v641_v46 = vpop.f32.mrf.mxu0 }
 0x669   :  { %v645_v47 = vadd.f32 %v3484_v43, %v641_v46 }
 0x66a   :  { %v3784_v48 = vpop.f32.mrf.mxu0 }
 0x66b   :  { %4138 = vtanh.f32 %v645_v47  ;;  %v3486_v56 = vmul.f32 -1.442695, %v645_v47 }
 0x66c   :  { %4140 = vpow2.f32 %v3488_v55 }
 0x66d   :  { %4142 = vpow2.f32 %v3486_v56 }
 0x674   :  { %v4137_v49 = vpop.eup %4136 }
 0x675   :  { %774 = vrot.lane.b32.xlu0 %v4137_v49, %s4430_s19 }
 0x678   :  { %v4139_v51 = vpop.eup %4138 }
 0x679   :  { %769 = vrot.lane.b32.xlu0 %v4759_v52, %s4438_s15  ;;  %659 = vrot.lane.b32.xlu1 %v4139_v51, %s4430_s19  ;;  %v4141_v57 = vpop.eup %4140 }
 0x67a   :  { %v764_v58 = vadd.f32 1.0, %v4141_v57  ;;  %v4143_v59 = vpop.eup %4142 }
 0x67b   :  { %v649_v60 = vadd.f32 1.0, %v4143_v59 }
 0x67c   :  { %4144 = vrcp.f32 %v764_v58 }
 0x67d   :  { %654 = vrot.lane.b32.xlu1 %v4767_v54, %s4438_s15  ;;  %4146 = vrcp.f32 %v649_v60 }
 0x689   :  { %v4145_v61 = vpop.eup %4144 }
 0x68a   :  { %v4147_v63 = vpop.eup %4146 }
 0x6e7   :  { %v775_v62 = vpop.permute.xlu0 %774 }
 0x6e8   :  { %v777_v0 = vmul.f32 %v4145_v61, %v775_v62 }
 0x6ea   :  { %779 = vrot.lane.b32.xlu0 %v777_v0, %s4438_s15 }
 0x6eb   :  { %v660_v10 = vpop.permute.xlu1 %659  ;;  %v770_v12 = vpop.permute.xlu0 %769 }
 0x6ec   :  { %v662_v11 = vmul.f32 %v4147_v63, %v660_v10  ;;  %v772_v13 = vmul.f32 %v4145_v61, %v770_v12 }
 0x6ee   :  { %664 = vrot.lane.b32.xlu1 %v662_v11, %s4438_s15 }
 0x6ef   :  { %v655_v14 = vpop.permute.xlu1 %654 }
 0x6f0   :  { %v657_v17 = vmul.f32 %v4147_v63, %v655_v14 }
 0x75c   :  { %v780_v15 = vpop.permute.xlu0 %779 }
 0x75d   :  { %v782_v16 = vadd.f32 %v780_v15, %v772_v13 }
 0x75f   :  { %4148 = vtanh.f32 %v782_v16 }
 0x760   :  { %v665_v18 = vpop.permute.xlu1 %664 }
 0x761   :  { %v667_v19 = vadd.f32 %v665_v18, %v657_v17 }
 0x763   :  { %4150 = vtanh.f32 %v667_v19 }
 0x76c   :  { %v4149_v20 = vpop.eup %4148 }
 0x76d   :  { %785 = vrot.lane.b32.xlu0 %v4149_v20, %s4430_s19 }
 0x770   :  { %v4151_v21 = vpop.eup %4150 }
 0x771   :  { %670 = vrot.lane.b32.xlu1 %v4151_v21, %s4430_s19  ;;  %v1146_v21 = vld [vmem:[#allocation5 + $0x10] sm:$0xf] }
 0x7df   :  { %v786_v22 = vpop.permute.xlu0 %785 }
 0x7e0   :  { %v788_v23 = vmul.f32 %v4145_v61, %v786_v22 }
 0x7e2   :  { %791 = vrot.lane.b32.xlu0 %v788_v23, %s4438_s15 }
 0x7e3   :  { %v671_v24 = vpop.permute.xlu1 %670 }
 0x7e4   :  { %v673_v25 = vmul.f32 %v4147_v63, %v671_v24 }
 0x7e6   :  { %796 = vrot.lane.b32.xlu0 %v782_v16, %s4439_s1  ;;  %676 = vrot.lane.b32.xlu1 %v673_v25, %s4438_s15  ;;  %v3494_v25 = vld [vmem:[%s5441_s14 + $0x10] sm:$0xf] }
 0x7ea   :  { %681 = vrot.lane.b32.xlu1 %v667_v19, %s4439_s1 }
 0x854   :  { %v792_v26 = vpop.permute.xlu0 %791 }
 0x855   :  { %v4783_v27 = vsel %vm789_vm6, %v792_v26, %v4720_v36 }
 0x856   :  { %3816 = vmatmul.mubr.msk.f32.vlgmr.msra.gmra.mxu1 %vm123_vm2, %v4783_v27 }
 0x857   :  { %3830 = vmatpush3.msra.mxu1 %v4562_v2  ;;  %3837 = vmatprep.mubr.msk.f32.mxu1 %vm4437_vm0, %v4436_v1 }
 0x858   :  { %v677_v28 = vpop.permute.xlu1 %676  ;;  %3831 = vmatprep.subr.mxu1 %v4436_v1  ;;  %v797_v39 = vpop.permute.xlu0 %796 }
 0x859   :  { %v4795_v29 = vsel %vm674_vm7, %v677_v28, %v4732_v38  ;;  %3832 = vmatpush3.msra.mxu1 %v4572_v4  ;;  %v4822_v41 = vsel %vm789_vm6, %v797_v39, %v4759_v52 }
 0x85a   :  { %3805 = vmatmul.mubr.msk.f32.vlgmr.msra.gmra.mxu0 %vm123_vm2, %v4795_v29  ;;  %3833 = vmatprep.subr.mxu1 %v4436_v1 }
 0x85b   :  { %3819 = vmatpush3.msra.mxu0 %v4567_v3  ;;  %3834 = vmatpush3.msra.mxu1 %v4586_v6 }
 0x85c   :  { %3835 = vmatprep.subr.mxu1 %v4436_v1  ;;  %3820 = vmatprep.subr.mxu0 %v4436_v1  ;;  %v682_v42 = vpop.permute.xlu1 %681 }
 0x85d   :  { %3821 = vmatpush3.msra.mxu0 %v4579_v5  ;;  %3836 = vmatpush3.msra.mxu1 %v4600_v8  ;;  %v4830_v43 = vsel %vm674_vm7, %v682_v42, %v4767_v54 }
 0x85e   :  { %3822 = vmatprep.subr.mxu0 %v4436_v1  ;;  %3826 = vmatprep.mubr.msk.f32.mxu0 %vm4437_vm0, %v4436_v1 }
 0x85f   :  { %3823 = vmatpush3.msra.mxu0 %v4591_v7  ;;  %3851 = vmatprep.subr.mxu1 %v4436_v1 }
 0x860   :  { %3824 = vmatprep.subr.mxu0 %v4436_v1 }
 0x861   :  { %3825 = vmatpush3.msra.mxu0 %v4605_v9 }
 0x862   :  { %3840 = vmatprep.subr.mxu0 %v4436_v1 }
 0x916   :  { %v986_v31 = vpop.f32.mrf.mxu1 }
 0x917   :  { %v990_v32 = vadd.f32 %v986_v31, %v916_v30 }
 0x918   :  { %v3817_v33 = vpop.f32.mrf.mxu1 }
 0x919   :  { %4152 = vtanh.f32 %v990_v32  ;;  %v3493_v46 = vmul.f32 -1.442695, %v990_v32 }
 0x91a   :  { %v871_v35 = vpop.f32.mrf.mxu0 }
 0x91b   :  { %v875_v36 = vadd.f32 %v3489_v34, %v871_v35 }
 0x91c   :  { %v3806_v37 = vpop.f32.mrf.mxu0 }
 0x91d   :  { %4154 = vtanh.f32 %v875_v36  ;;  %v3491_v47 = vmul.f32 -1.442695, %v875_v36 }
 0x91e   :  { %4156 = vpow2.f32 %v3493_v46 }
 0x91f   :  { %4158 = vpow2.f32 %v3491_v47 }
 0x926   :  { %v4153_v38 = vpop.eup %4152 }
 0x927   :  { %1004 = vrot.lane.b32.xlu0 %v4153_v38, %s4430_s19 }
 0x92a   :  { %v4155_v40 = vpop.eup %4154 }
 0x92b   :  { %999 = vrot.lane.b32.xlu0 %v4822_v41, %s4438_s15  ;;  %889 = vrot.lane.b32.xlu1 %v4155_v40, %s4430_s19  ;;  %v4157_v48 = vpop.eup %4156 }
 0x92c   :  { %v994_v49 = vadd.f32 1.0, %v4157_v48  ;;  %v4159_v50 = vpop.eup %4158 }
 0x92d   :  { %v879_v51 = vadd.f32 1.0, %v4159_v50 }
 0x92e   :  { %4160 = vrcp.f32 %v994_v49 }
 0x92f   :  { %884 = vrot.lane.b32.xlu1 %v4830_v43, %s4438_s15  ;;  %4162 = vrcp.f32 %v879_v51 }
 0x93b   :  { %v4161_v52 = vpop.eup %4160 }
 0x93c   :  { %v4163_v54 = vpop.eup %4162 }
 0x999   :  { %v1005_v53 = vpop.permute.xlu0 %1004 }
 0x99a   :  { %v1007_v55 = vmul.f32 %v4161_v52, %v1005_v53 }
 0x99c   :  { %1009 = vrot.lane.b32.xlu0 %v1007_v55, %s4438_s15 }
 0x99d   :  { %v890_v56 = vpop.permute.xlu1 %889  ;;  %v1000_v58 = vpop.permute.xlu0 %999 }
 0x99e   :  { %v892_v57 = vmul.f32 %v4163_v54, %v890_v56  ;;  %v1002_v59 = vmul.f32 %v4161_v52, %v1000_v58 }
 0x9a0   :  { %894 = vrot.lane.b32.xlu1 %v892_v57, %s4438_s15 }
 0x9a1   :  { %v885_v60 = vpop.permute.xlu1 %884 }
 0x9a2   :  { %v887_v0 = vmul.f32 %v4163_v54, %v885_v60 }
 0xa0e   :  { %v1010_v61 = vpop.permute.xlu0 %1009 }
 0xa0f   :  { %v1012_v62 = vadd.f32 %v1010_v61, %v1002_v59 }
 0xa11   :  { %4164 = vtanh.f32 %v1012_v62 }
 0xa12   :  { %v895_v63 = vpop.permute.xlu1 %894 }
 0xa13   :  { %v897_v10 = vadd.f32 %v895_v63, %v887_v0 }
 0xa15   :  { %4166 = vtanh.f32 %v897_v10 }
 0xa1e   :  { %v4165_v11 = vpop.eup %4164 }
 0xa1f   :  { %1015 = vrot.lane.b32.xlu0 %v4165_v11, %s4430_s19 }
 0xa22   :  { %v4167_v12 = vpop.eup %4166 }
 0xa23   :  { %900 = vrot.lane.b32.xlu1 %v4167_v12, %s4430_s19 }
 0xa91   :  { %v1016_v13 = vpop.permute.xlu0 %1015 }
 0xa92   :  { %v1018_v14 = vmul.f32 %v4161_v52, %v1016_v13 }
 0xa94   :  { %1021 = vrot.lane.b32.xlu0 %v1018_v14, %s4438_s15  ;;  %v3499_v14 = vld [vmem:[%s5441_s14 + $0x14] sm:$0xf] }
 0xa95   :  { %v901_v15 = vpop.permute.xlu1 %900 }
 0xa96   :  { %v903_v16 = vmul.f32 %v4163_v54, %v901_v15 }
 0xa98   :  { %1026 = vrot.lane.b32.xlu0 %v1012_v62, %s4439_s1  ;;  %906 = vrot.lane.b32.xlu1 %v903_v16, %s4438_s15 }
 0xa9c   :  { %911 = vrot.lane.b32.xlu1 %v897_v10, %s4439_s1 }
 0xb06   :  { %v1022_v17 = vpop.permute.xlu0 %1021 }
 0xb07   :  { %v4846_v18 = vsel %vm1019_vm8, %v1022_v17, %v4783_v27 }
 0xb08   :  { %3838 = vmatmul.mubr.msk.f32.vlgmr.msra.gmra.mxu1 %vm123_vm2, %v4846_v18 }
 0xb09   :  { %3852 = vmatpush3.msra.mxu1 %v4562_v2  ;;  %3859 = vmatprep.mubr.msk.f32.mxu1 %vm4437_vm0, %v4436_v1 }
 0xb0a   :  { %v907_v19 = vpop.permute.xlu1 %906  ;;  %3853 = vmatprep.subr.mxu1 %v4436_v1  ;;  %v1027_v30 = vpop.permute.xlu0 %1026 }
 0xb0b   :  { %v4858_v20 = vsel %vm904_vm9, %v907_v19, %v4795_v29  ;;  %3854 = vmatpush3.msra.mxu1 %v4572_v4  ;;  %v4885_v32 = vsel %vm1019_vm8, %v1027_v30, %v4822_v41 }
 0xb0c   :  { %3827 = vmatmul.mubr.msk.f32.vlgmr.msra.gmra.mxu0 %vm123_vm2, %v4858_v20  ;;  %3855 = vmatprep.subr.mxu1 %v4436_v1 }
 0xb0d   :  { %3841 = vmatpush3.msra.mxu0 %v4567_v3  ;;  %3856 = vmatpush3.msra.mxu1 %v4586_v6 }
 0xb0e   :  { %3857 = vmatprep.subr.mxu1 %v4436_v1  ;;  %3842 = vmatprep.subr.mxu0 %v4436_v1  ;;  %v912_v33 = vpop.permute.xlu1 %911 }
 0xb0f   :  { %3843 = vmatpush3.msra.mxu0 %v4579_v5  ;;  %3858 = vmatpush3.msra.mxu1 %v4600_v8  ;;  %v4893_v34 = vsel %vm904_vm9, %v912_v33, %v4830_v43 }
 0xb10   :  { %3844 = vmatprep.subr.mxu0 %v4436_v1  ;;  %3848 = vmatprep.mubr.msk.f32.mxu0 %vm4437_vm0, %v4436_v1 }
 0xb11   :  { %3845 = vmatpush3.msra.mxu0 %v4591_v7  ;;  %3873 = vmatprep.subr.mxu1 %v4436_v1 }
 0xb12   :  { %3846 = vmatprep.subr.mxu0 %v4436_v1 }
 0xb13   :  { %3847 = vmatpush3.msra.mxu0 %v4605_v9 }
 0xb14   :  { %3862 = vmatprep.subr.mxu0 %v4436_v1 }
 0xbc8   :  { %v1216_v22 = vpop.f32.mrf.mxu1 }
 0xbc9   :  { %v1220_v23 = vadd.f32 %v1216_v22, %v1146_v21 }
 0xbca   :  { %v3839_v24 = vpop.f32.mrf.mxu1 }
 0xbcb   :  { %4168 = vtanh.f32 %v1220_v23  ;;  %v3498_v35 = vmul.f32 -1.442695, %v1220_v23 }
 0xbcc   :  { %v1101_v26 = vpop.f32.mrf.mxu0 }
 0xbcd   :  { %v1105_v27 = vadd.f32 %v3494_v25, %v1101_v26 }
 0xbce   :  { %v3828_v28 = vpop.f32.mrf.mxu0 }
 0xbcf   :  { %4170 = vtanh.f32 %v1105_v27  ;;  %v3496_v36 = vmul.f32 -1.442695, %v1105_v27 }
 0xbd0   :  { %4172 = vpow2.f32 %v3498_v35 }
 0xbd1   :  { %4174 = vpow2.f32 %v3496_v36 }
 0xbd8   :  { %v4169_v29 = vpop.eup %4168 }
 0xbd9   :  { %1234 = vrot.lane.b32.xlu0 %v4169_v29, %s4430_s19 }
 0xbdc   :  { %v4171_v31 = vpop.eup %4170 }
 0xbdd   :  { %1229 = vrot.lane.b32.xlu0 %v4885_v32, %s4438_s15  ;;  %1119 = vrot.lane.b32.xlu1 %v4171_v31, %s4430_s19  ;;  %v4173_v37 = vpop.eup %4172 }
 0xbde   :  { %v1224_v38 = vadd.f32 1.0, %v4173_v37  ;;  %v4175_v39 = vpop.eup %4174 }
 0xbdf   :  { %v1109_v40 = vadd.f32 1.0, %v4175_v39 }
 0xbe0   :  { %4176 = vrcp.f32 %v1224_v38 }
 0xbe1   :  { %1114 = vrot.lane.b32.xlu1 %v4893_v34, %s4438_s15  ;;  %4178 = vrcp.f32 %v1109_v40 }
 0xbed   :  { %v4177_v41 = vpop.eup %4176 }
 0xbee   :  { %v4179_v43 = vpop.eup %4178 }
 0xc4b   :  { %v1235_v42 = vpop.permute.xlu0 %1234 }
 0xc4c   :  { %v1237_v46 = vmul.f32 %v4177_v41, %v1235_v42 }
 0xc4e   :  { %1239 = vrot.lane.b32.xlu0 %v1237_v46, %s4438_s15 }
 0xc4f   :  { %v1120_v47 = vpop.permute.xlu1 %1119  ;;  %v1230_v49 = vpop.permute.xlu0 %1229 }
 0xc50   :  { %v1122_v48 = vmul.f32 %v4179_v43, %v1120_v47  ;;  %v1232_v50 = vmul.f32 %v4177_v41, %v1230_v49 }
 0xc52   :  { %1124 = vrot.lane.b32.xlu1 %v1122_v48, %s4438_s15 }
 0xc53   :  { %v1115_v51 = vpop.permute.xlu1 %1114 }
 0xc54   :  { %v1117_v55 = vmul.f32 %v4179_v43, %v1115_v51 }
 0xcc0   :  { %v1240_v52 = vpop.permute.xlu0 %1239 }
 0xcc1   :  { %v1242_v53 = vadd.f32 %v1240_v52, %v1232_v50  ;;  %v4232_v52 = vld [vmem:[%s5424_s5 + $0x18] sm:$0xff] }
 0xcc3   :  { %4180 = vtanh.f32 %v1242_v53 }
 0xcc4   :  { %v1125_v54 = vpop.permute.xlu1 %1124 }
 0xcc5   :  { %v1127_v56 = vadd.f32 %v1125_v54, %v1117_v55  ;;  %v4233_v54 = vld [vmem:[%s5424_s5 + $0x10] sm:$0xff] }
 0xcc7   :  { %4182 = vtanh.f32 %v1127_v56 }
 0xcd0   :  { %v4181_v57 = vpop.eup %4180 }
 0xcd1   :  { %1245 = vrot.lane.b32.xlu0 %v4181_v57, %s4430_s19  ;;  %v4235_v57 = vld [vmem:[%s5424_s5 + $0x8] sm:$0xff] }
 0xcd4   :  { %v4183_v58 = vpop.eup %4182 }
 0xcd5   :  { %1130 = vrot.lane.b32.xlu1 %v4183_v58, %s4430_s19  ;;  %v4236_v58 = vld [vmem:[%s5423_s4 + $0x10] sm:$0xff] }
 0xd43   :  { %v1246_v59 = vpop.permute.xlu0 %1245 }
 0xd44   :  { %v1248_v60 = vmul.f32 %v4177_v41, %v1246_v59  ;;  %v4237_v59 = vld [vmem:[%s5424_s5] sm:$0xff] }
 0xd46   :  { %1251 = vrot.lane.b32.xlu0 %v1248_v60, %s4438_s15  ;;  %v4238_v60 = vld [vmem:[%s5423_s4 + $0x8] sm:$0xff] }
 0xd47   :  { %v1131_v61 = vpop.permute.xlu1 %1130 }
 0xd48   :  { %v1133_v62 = vmul.f32 %v4179_v43, %v1131_v61  ;;  %v4239_v61 = vld [vmem:[%s5423_s4] sm:$0xff] }
 0xd4a   :  { %1256 = vrot.lane.b32.xlu0 %v1242_v53, %s4439_s1  ;;  %1136 = vrot.lane.b32.xlu1 %v1133_v62, %s4438_s15  ;;  %v1606_v62 = vld [vmem:[#allocation5 + $0x18] sm:$0xf] }
 0xd4e   :  { %1141 = vrot.lane.b32.xlu1 %v1127_v56, %s4439_s1  ;;  %v4234_v56 = vld [vmem:[%s5423_s4 + $0x18] sm:$0xff] }
 0xdb8   :  { %v1252_v0 = vpop.permute.xlu0 %1251 }
 0xdb9   :  { %v4909_v63 = vsel %vm1249_vm10, %v1252_v0, %v4846_v18 }
 0xdba   :  { %3860 = vmatmul.mubr.msk.f32.vlgmr.msra.gmra.mxu1 %vm123_vm2, %v4909_v63 }
 0xdbb   :  { %3874 = vmatpush3.msra.mxu1 %v4562_v2  ;;  %3881 = vmatprep.mubr.msk.f32.mxu1 %vm4437_vm0, %v4436_v1 }
 0xdbc   :  { %v1137_v10 = vpop.permute.xlu1 %1136  ;;  %3875 = vmatprep.subr.mxu1 %v4436_v1  ;;  %v1257_v18 = vpop.permute.xlu0 %1256 }
 0xdbd   :  { %v4921_v11 = vsel %vm1134_vm11, %v1137_v10, %v4858_v20  ;;  %3876 = vmatpush3.msra.mxu1 %v4572_v4  ;;  %v4948_v19 = vsel %vm1249_vm10, %v1257_v18, %v4885_v32 }
 0xdbe   :  { %3849 = vmatmul.mubr.msk.f32.vlgmr.msra.gmra.mxu0 %vm123_vm2, %v4921_v11  ;;  %3877 = vmatprep.subr.mxu1 %v4436_v1 }
 0xdbf   :  { %3863 = vmatpush3.msra.mxu0 %v4567_v3  ;;  %3878 = vmatpush3.msra.mxu1 %v4586_v6  ;;  %v1376_v3 = vld [vmem:[#allocation5 + $0x14] sm:$0xf] }
 0xdc0   :  { %3879 = vmatprep.subr.mxu1 %v4436_v1  ;;  %3864 = vmatprep.subr.mxu0 %v4436_v1  ;;  %v1142_v20 = vpop.permute.xlu1 %1141 }
 0xdc1   :  { %3865 = vmatpush3.msra.mxu0 %v4579_v5  ;;  %3880 = vmatpush3.msra.mxu1 %v4600_v8  ;;  %v4956_v21 = vsel %vm1134_vm11, %v1142_v20, %v4893_v34 }
 0xdc2   :  { %3866 = vmatprep.subr.mxu0 %v4436_v1  ;;  %3870 = vmatprep.mubr.msk.f32.mxu0 %vm4437_vm0, %v4436_v1 }
 0xdc3   :  { %3867 = vmatpush3.msra.mxu0 %v4591_v7  ;;  %3895 = vmatprep.subr.mxu1 %v4436_v1 }
 0xdc4   :  { %3868 = vmatprep.subr.mxu0 %v4436_v1 }
 0xdc5   :  { %3869 = vmatpush3.msra.mxu0 %v4605_v9 }
 0xdc6   :  { %3884 = vmatprep.subr.mxu0 %v4436_v1 }
 0xe7a   :  { %v1446_v12 = vpop.f32.mrf.mxu1 }
 0xe7b   :  { %v1450_v5 = vadd.f32 %v1446_v12, %v1376_v3 }
 0xe7c   :  { %v3861_v13 = vpop.f32.mrf.mxu1 }
 0xe7d   :  { %4184 = vtanh.f32 %v1450_v5  ;;  %v3503_v22 = vmul.f32 -1.442695, %v1450_v5 }
 0xe7e   :  { %v1331_v15 = vpop.f32.mrf.mxu0 }
 0xe7f   :  { %v1335_v16 = vadd.f32 %v3499_v14, %v1331_v15 }
 0xe80   :  { %v3850_v7 = vpop.f32.mrf.mxu0 }
 0xe81   :  { %4186 = vtanh.f32 %v1335_v16  ;;  %v3501_v23 = vmul.f32 -1.442695, %v1335_v16 }
 0xe82   :  { %4188 = vpow2.f32 %v3503_v22 }
 0xe83   :  { %4190 = vpow2.f32 %v3501_v23 }
 0xe8a   :  { %v4185_v17 = vpop.eup %4184 }
 0xe8b   :  { %1464 = vrot.lane.b32.xlu0 %v4185_v17, %s4430_s19 }
 0xe8e   :  { %v4187_v9 = vpop.eup %4186 }
 0xe8f   :  { %1459 = vrot.lane.b32.xlu0 %v4948_v19, %s4438_s15  ;;  %1349 = vrot.lane.b32.xlu1 %v4187_v9, %s4430_s19  ;;  %v4189_v24 = vpop.eup %4188 }
 0xe90   :  { %v1454_v25 = vadd.f32 1.0, %v4189_v24  ;;  %v4191_v26 = vpop.eup %4190 }
 0xe91   :  { %v1339_v27 = vadd.f32 1.0, %v4191_v26 }
 0xe92   :  { %4192 = vrcp.f32 %v1454_v25 }
 0xe93   :  { %1344 = vrot.lane.b32.xlu1 %v4956_v21, %s4438_s15  ;;  %4194 = vrcp.f32 %v1339_v27 }
 0xe9f   :  { %v4193_v28 = vpop.eup %4192 }
 0xea0   :  { %v4195_v31 = vpop.eup %4194 }
 0xefd   :  { %v1465_v29 = vpop.permute.xlu0 %1464 }
 0xefe   :  { %v1467_v30 = vmul.f32 %v4193_v28, %v1465_v29 }
 0xf00   :  { %1469 = vrot.lane.b32.xlu0 %v1467_v30, %s4438_s15 }
 0xf01   :  { %v1350_v32 = vpop.permute.xlu1 %1349  ;;  %v1460_v34 = vpop.permute.xlu0 %1459 }
 0xf02   :  { %v1352_v33 = vmul.f32 %v4195_v31, %v1350_v32  ;;  %v1462_v35 = vmul.f32 %v4193_v28, %v1460_v34 }
 0xf04   :  { %1354 = vrot.lane.b32.xlu1 %v1352_v33, %s4438_s15 }
 0xf05   :  { %v1345_v36 = vpop.permute.xlu1 %1344 }
 0xf06   :  { %v1347_v39 = vmul.f32 %v4195_v31, %v1345_v36 }
 0xf72   :  { %v1470_v37 = vpop.permute.xlu0 %1469 }
 0xf73   :  { %v1472_v38 = vadd.f32 %v1470_v37, %v1462_v35 }
 0xf75   :  { %4196 = vtanh.f32 %v1472_v38 }
 0xf76   :  { %v1355_v40 = vpop.permute.xlu1 %1354 }
 0xf77   :  { %v1357_v41 = vadd.f32 %v1355_v40, %v1347_v39 }
 0xf79   :  { %4198 = vtanh.f32 %v1357_v41 }
 0xf82   :  { %v4197_v42 = vpop.eup %4196 }
 0xf83   :  { %1475 = vrot.lane.b32.xlu0 %v4197_v42, %s4430_s19  ;;  %v5045_v42 = vld [vmem:[#allocation8] sm:$0xf] }
 0xf84   :  { %vm1709_vm14 = vcmp.gt.s32.totalorder %v5045_v42, 6  ;;  %vm1934_vm1 = vcmp.gt.s32.totalorder %v5045_v42, 7 }
 0xf86   :  { %v4199_v46 = vpop.eup %4198 }
 0xf87   :  { %1360 = vrot.lane.b32.xlu1 %v4199_v46, %s4430_s19 }
 0xff5   :  { %v1476_v43 = vpop.permute.xlu0 %1475 }
 0xff6   :  { %v1478_v47 = vmul.f32 %v4193_v28, %v1476_v43 }
 0xff8   :  { %1481 = vrot.lane.b32.xlu0 %v1478_v47, %s4438_s15  ;;  %v5058_v47 = vld [vmem:[%s5421_s2] sm:$0xf]  ;;  %s5096_s2 = smov 0  }
 0xff9   :  { %v1361_v48 = vpop.permute.xlu1 %1360  ;;  %vm1594_vm15 = vcmp.gt.s32.totalorder %v5058_v47, 6  ;;  %vm1824_vm4 = vcmp.gt.s32.totalorder %v5058_v47, 7 }
 0xffa   :  { %v1363_v49 = vmul.f32 %v4195_v31, %v1361_v48 }
 0xffc   :  { %1486 = vrot.lane.b32.xlu0 %v1472_v38, %s4439_s1  ;;  %1366 = vrot.lane.b32.xlu1 %v1363_v49, %s4438_s15 }
0x1000   :  { %1371 = vrot.lane.b32.xlu1 %v1357_v41, %s4439_s1 }
0x106a   :  { %v1482_v50 = vpop.permute.xlu0 %1481 }
0x106b   :  { %v4972_v51 = vsel %vm1479_vm12, %v1482_v50, %v4909_v63  ;;  %v1831_v50 = vld [vmem:[#allocation5 + $0x1c] sm:$0xf] }
0x106c   :  { %3882 = vmatmul.mubr.msk.f32.vlgmr.msra.gmra.mxu1 %vm123_vm2, %v4972_v51 }
0x106d   :  { %3896 = vmatpush3.msra.mxu1 %v4232_v52  ;;  %3903 = vmatprep.mubr.msk.f32.mxu1 %vm4437_vm0, %v4436_v1 }
0x106e   :  { %v1367_v53 = vpop.permute.xlu1 %1366  ;;  %3897 = vmatprep.subr.mxu1 %v4436_v1  ;;  %v1487_v14 = vpop.permute.xlu0 %1486 }
0x106f   :  { %v4986_v55 = vsel %vm1364_vm13, %v1367_v53, %v4921_v11  ;;  %3898 = vmatpush3.msra.mxu1 %v4233_v54  ;;  %v3504_v11 = vld [vmem:[%s5441_s14 + $0x18] sm:$0xf]  ;;  %v5025_v16 = vsel %vm1479_vm12, %v1487_v14, %v4948_v19  ;;  %v3509_v54 = vld [vmem:[%s5441_s14 + $0x1c] sm:$0xf] }
0x1070   :  { %3871 = vmatmul.mubr.msk.f32.vlgmr.msra.gmra.mxu0 %vm123_vm2, %v4986_v55  ;;  %3899 = vmatprep.subr.mxu1 %v4436_v1 }
0x1071   :  { %3885 = vmatpush3.msra.mxu0 %v4234_v56  ;;  %3900 = vmatpush3.msra.mxu1 %v4235_v57 }
0x1072   :  { %3901 = vmatprep.subr.mxu1 %v4436_v1  ;;  %3886 = vmatprep.subr.mxu0 %v4436_v1  ;;  %v1372_v7 = vpop.permute.xlu1 %1371 }
0x1073   :  { %3887 = vmatpush3.msra.mxu0 %v4236_v58  ;;  %3902 = vmatpush3.msra.mxu1 %v4237_v59  ;;  %v5033_v17 = vsel %vm1364_vm13, %v1372_v7, %v4956_v21 }
0x1074   :  { %3888 = vmatprep.subr.mxu0 %v4436_v1  ;;  %3892 = vmatprep.mubr.msk.f32.mxu0 %vm4437_vm0, %v4436_v1 }
0x1075   :  { %3889 = vmatpush3.msra.mxu0 %v4238_v60 }
0x1076   :  { %3890 = vmatprep.subr.mxu0 %v4436_v1 }
0x1077   :  { %3891 = vmatpush3.msra.mxu0 %v4239_v61 }
0x112c   :  { %v1676_v0 = vpop.f32.mrf.mxu1 }
0x112d   :  { %v1680_v63 = vadd.f32 %v1676_v0, %v1606_v62 }
0x112e   :  { %v3883_v10 = vpop.f32.mrf.mxu1 }
0x112f   :  { %4200 = vtanh.f32 %v1680_v63  ;;  %v3508_v18 = vmul.f32 -1.442695, %v1680_v63 }
0x1130   :  { %v1561_v3 = vpop.f32.mrf.mxu0 }
0x1131   :  { %v1565_v12 = vadd.f32 %v3504_v11, %v1561_v3 }
0x1132   :  { %v3872_v5 = vpop.f32.mrf.mxu0 }
0x1133   :  { %4202 = vtanh.f32 %v1565_v12  ;;  %v3506_v9 = vmul.f32 -1.442695, %v1565_v12 }
0x1134   :  { %4204 = vpow2.f32 %v3508_v18 }
0x1135   :  { %4206 = vpow2.f32 %v3506_v9 }
0x113c   :  { %v4201_v13 = vpop.eup %4200 }
0x113d   :  { %1694 = vrot.lane.b32.xlu0 %v4201_v13, %s4430_s19 }
0x1140   :  { %v4203_v15 = vpop.eup %4202 }
0x1141   :  { %1689 = vrot.lane.b32.xlu0 %v5025_v16, %s4438_s15  ;;  %1579 = vrot.lane.b32.xlu1 %v4203_v15, %s4430_s19  ;;  %v4205_v19 = vpop.eup %4204 }
0x1142   :  { %v1684_v20 = vadd.f32 1.0, %v4205_v19  ;;  %v4207_v22 = vpop.eup %4206 }
0x1143   :  { %v1569_v23 = vadd.f32 1.0, %v4207_v22 }
0x1144   :  { %4208 = vrcp.f32 %v1684_v20 }
0x1145   :  { %1574 = vrot.lane.b32.xlu1 %v5033_v17, %s4438_s15  ;;  %4210 = vrcp.f32 %v1569_v23 }
0x1151   :  { %v4209_v24 = vpop.eup %4208 }
0x1152   :  { %v4211_v45 = vpop.eup %4210 }
0x11af   :  { %v1695_v25 = vpop.permute.xlu0 %1694 }
0x11b0   :  { %v1697_v26 = vmul.f32 %v4209_v24, %v1695_v25 }
0x11b2   :  { %1699 = vrot.lane.b32.xlu0 %v1697_v26, %s4438_s15 }
0x11b3   :  { %v1580_v21 = vpop.permute.xlu1 %1579  ;;  %v1690_v28 = vpop.permute.xlu0 %1689 }
0x11b4   :  { %v1582_v27 = vmul.f32 %v4211_v45, %v1580_v21  ;;  %v1692_v29 = vmul.f32 %v4209_v24, %v1690_v28 }
0x11b6   :  { %1584 = vrot.lane.b32.xlu1 %v1582_v27, %s4438_s15 }
0x11b7   :  { %v1575_v30 = vpop.permute.xlu1 %1574 }
0x11b8   :  { %v1577_v33 = vmul.f32 %v4211_v45, %v1575_v30 }
0x1224   :  { %v1700_v31 = vpop.permute.xlu0 %1699 }
0x1225   :  { %v1702_v32 = vadd.f32 %v1700_v31, %v1692_v29 }
0x1227   :  { %4212 = vtanh.f32 %v1702_v32 }
0x1228   :  { %v1585_v34 = vpop.permute.xlu1 %1584 }
0x1229   :  { %v1587_v35 = vadd.f32 %v1585_v34, %v1577_v33 }
0x122b   :  { %4214 = vtanh.f32 %v1587_v35 }
0x1234   :  { %v4213_v36 = vpop.eup %4212 }
0x1235   :  { %1705 = vrot.lane.b32.xlu0 %v4213_v36, %s4430_s19 }
0x1238   :  { %v4215_v37 = vpop.eup %4214 }
0x1239   :  { %1590 = vrot.lane.b32.xlu1 %v4215_v37, %s4430_s19 }
0x12a7   :  { %v1706_v38 = vpop.permute.xlu0 %1705 }
0x12a8   :  { %v1708_v39 = vmul.f32 %v4209_v24, %v1706_v38 }
0x12aa   :  { %1711 = vrot.lane.b32.xlu0 %v1708_v39, %s4438_s15 }
0x12ab   :  { %v1591_v40 = vpop.permute.xlu1 %1590 }
0x12ac   :  { %v1593_v41 = vmul.f32 %v4211_v45, %v1591_v40 }
0x12ae   :  { %1716 = vrot.lane.b32.xlu0 %v1702_v32, %s4439_s1  ;;  %1596 = vrot.lane.b32.xlu1 %v1593_v41, %s4438_s15 }
0x12b2   :  { %1601 = vrot.lane.b32.xlu1 %v1587_v35, %s4439_s1 }
0x131c   :  { %v1712_v46 = vpop.permute.xlu0 %1711 }
0x131d   :  { %v5051_v43 = vsel %vm1709_vm14, %v1712_v46, %v4972_v51 }
0x131e   :  { %3904 = vmatmul.mubr.msk.f32.vlgmr.msra.gmra.mxu1 %vm123_vm2, %v5051_v43 }
0x1320   :  { %v1597_v48 = vpop.permute.xlu1 %1596  ;;  %v1717_v60 = vpop.permute.xlu0 %1716 }
0x1321   :  { %v5064_v49 = vsel %vm1594_vm15, %v1597_v48, %v4986_v55  ;;  %v1719_v61 = vsel %vm1709_vm14, %v1717_v60, %v5025_v16 }
0x1322   :  { %3893 = vmatmul.mubr.msk.f32.vlgmr.msra.gmra.mxu0 %vm123_vm2, %v5064_v49 }
0x1324   :  { %v1602_v62 = vpop.permute.xlu1 %1601 }
0x1325   :  { %v1604_v0 = vsel %vm1594_vm15, %v1602_v62, %v5033_v17 }
0x13de   :  { %v1901_v51 = vpop.f32.mrf.mxu1 }
0x13df   :  { %v1905_v52 = vadd.f32 %v1901_v51, %v1831_v50 }
0x13e0   :  { %v3905_v53 = vpop.f32.mrf.mxu1 }
0x13e1   :  { %4216 = vtanh.f32 %v1905_v52  ;;  %v3513_v63 = vmul.f32 -1.442695, %v1905_v52 }
0x13e2   :  { %v1791_v56 = vpop.f32.mrf.mxu0 }
0x13e3   :  { %v1795_v57 = vadd.f32 %v3509_v54, %v1791_v56 }
0x13e4   :  { %v3894_v58 = vpop.f32.mrf.mxu0 }
0x13e5   :  { %4218 = vtanh.f32 %v1795_v57  ;;  %v3511_v10 = vmul.f32 -1.442695, %v1795_v57 }
0x13e6   :  { %4220 = vpow2.f32 %v3513_v63 }
0x13e7   :  { %4222 = vpow2.f32 %v3511_v10 }
0x13ee   :  { %v4217_v59 = vpop.eup %4216 }
0x13ef   :  { %1919 = vrot.lane.b32.xlu0 %v4217_v59, %s4430_s19 }
0x13f2   :  { %v4219_v55 = vpop.eup %4218 }
0x13f3   :  { %1914 = vrot.lane.b32.xlu0 %v1719_v61, %s4438_s15  ;;  %1809 = vrot.lane.b32.xlu1 %v4219_v55, %s4430_s19  ;;  %v4221_v11 = vpop.eup %4220 }
0x13f4   :  { %v1909_v3 = vadd.f32 1.0, %v4221_v11  ;;  %v4223_v12 = vpop.eup %4222 }
0x13f5   :  { %v1799_v5 = vadd.f32 1.0, %v4223_v12 }
0x13f6   :  { %4224 = vrcp.f32 %v1909_v3 }
0x13f7   :  { %1804 = vrot.lane.b32.xlu1 %v1604_v0, %s4438_s15  ;;  %4226 = vrcp.f32 %v1799_v5 }
0x1403   :  { %v4225_v13 = vpop.eup %4224 }
0x1404   :  { %v4227_v16 = vpop.eup %4226 }
0x1461   :  { %v1920_v14 = vpop.permute.xlu0 %1919 }
0x1462   :  { %v1922_v15 = vmul.f32 %v4225_v13, %v1920_v14 }
0x1464   :  { %1924 = vrot.lane.b32.xlu0 %v1922_v15, %s4438_s15 }
0x1465   :  { %v1810_v7 = vpop.permute.xlu1 %1809  ;;  %v1915_v18 = vpop.permute.xlu0 %1914 }
0x1466   :  { %v1812_v17 = vmul.f32 %v4227_v16, %v1810_v7  ;;  %v1917_v9 = vmul.f32 %v4225_v13, %v1915_v18 }
0x1468   :  { %1814 = vrot.lane.b32.xlu1 %v1812_v17, %s4438_s15 }
0x1469   :  { %v1805_v19 = vpop.permute.xlu1 %1804 }
0x146a   :  { %v1807_v23 = vmul.f32 %v4227_v16, %v1805_v19 }
0x14d6   :  { %v1925_v20 = vpop.permute.xlu0 %1924 }
0x14d7   :  { %v1927_v22 = vadd.f32 %v1925_v20, %v1917_v9 }
0x14d9   :  { %4228 = vtanh.f32 %v1927_v22 }
0x14da   :  { %v1815_v24 = vpop.permute.xlu1 %1814 }
0x14db   :  { %v1817_v25 = vadd.f32 %v1815_v24, %v1807_v23 }
0x14dd   :  { %4230 = vtanh.f32 %v1817_v25 }
0x14e6   :  { %v4229_v26 = vpop.eup %4228 }
0x14e7   :  { %1930 = vrot.lane.b32.xlu0 %v4229_v26, %s4430_s19 }
0x14ea   :  { %v4231_v45 = vpop.eup %4230 }
0x14eb   :  { %1820 = vrot.lane.b32.xlu1 %v4231_v45, %s4430_s19 }
0x14ef   :  { %1941 = vrot.lane.b32.xlu1 %v1927_v22, %s4439_s1 }
0x1559   :  { %v1931_v21 = vpop.permute.xlu0 %1930 }
0x155a   :  { %v1933_v27 = vmul.f32 %v4225_v13, %v1931_v21 }
0x155c   :  { %1936 = vrot.lane.b32.xlu0 %v1933_v27, %s4438_s15 }
0x155d   :  { %v1821_v28 = vpop.permute.xlu1 %1820 }
0x155e   :  { %v1823_v29 = vmul.f32 %v4227_v16, %v1821_v28 }
0x1560   :  { %1826 = vrot.lane.b32.xlu0 %v1823_v29, %s4438_s15 }
0x1561   :  { %v1942_v30 = vpop.permute.xlu1 %1941 }
0x1562   :  { %v1944_v31 = vsel %vm1934_vm1, %v1942_v30, %v1719_v61 }
0x1563   :  { %1947 = vst.msk [vmem:[#allocation3] sm:$0xf] %vm1945_vm3, %v1944_v31 }
0x15ce   :  { %v1937_v32 = vpop.permute.xlu0 %1936 }
0x15cf   :  { %v1939_v33 = vsel %vm1934_vm1, %v1937_v32, %v5051_v43 }
0x15d0   :  { %1946 = vst.msk [vmem:[#allocation2] sm:$0xf] %vm1945_vm3, %v1939_v33 }
0x15d2   :  { %v1827_v34 = vpop.permute.xlu0 %1826 }
0x15d3   :  { %v5094_v35 = vsel %vm1824_vm4, %v1827_v34, %v5064_v49 }
0x15d4 LB: > { %v4440_v36 = vmov 0.0   ;;  %vm4441_vm5 = vmmov 0   ;;  %s3564_s19 = sshll.u32 %s4426_s2, 5  ;;  %s4442_s15 = smov 64   ;;  %v1955_v46 = vld [vmem:[#allocation3] sm:$0xf]  ;;  %s4426_s2 = sphi %s5096_s2, %s1953_s2  }
0x15d5   : > { %3906 = vmatprep.subr.mxu0 %v4440_v36  ;;  %3914 = vmatprep.mubr.msk.f32.mxu0 %vm4441_vm5, %v4440_v36  ;;  %s5138_s14 = scalar_lea.vmem [#allocation5], %s3564_s19  ;;  %s4443_s1 = smov 32  }
0x15d6   : > { %3907 = vmatpush3.msra.mxu0 %v4562_v2  ;;  %3917 = vmatprep.subr.mxu1 %v4440_v36  ;;  %v3517_v38 = vld [vmem:[%s5138_s14 + $0x20] sm:$0xf]  ;;  %s4444_s22 = smov 96   ;;  %s5147_s23 = sshll.u32 %s4426_s2, 3  ;;  %v3522_v63 = vld [vmem:[%s5138_s14 + $0x24] sm:$0xf] }
0x15d7   : > { %3908 = vmatprep.subr.mxu0 %v4440_v36  ;;  %3918 = vmatpush3.msra.mxu1 %v4562_v2  ;;  %v5113_v37 = vld [vmem:[#allocation2] sm:$0xf]  ;;  %s1957_s24 = sadd.s32 8, %s5147_s23  ;;  %s2075_s25 = sadd.s32 9, %s5147_s23  ;;  %v3527_v27 = vld [vmem:[%s5138_s14 + $0x28] sm:$0xf] }
0x15d8   : > { %3909 = vmatpush3.msra.mxu0 %v4572_v4  ;;  %3919 = vmatprep.subr.mxu1 %v4440_v36  ;;  %v2063_v58 = vstv %s1957_s24  ;;  %v2181_v22 = vstv %s2075_s25  ;;  %s2193_s3 = sadd.s32 10, %s5147_s23  ;;  %s2311_s26 = sadd.s32 11, %s5147_s23 }
0x15d9   : > { %3910 = vmatprep.subr.mxu0 %v4440_v36  ;;  %3920 = vmatpush3.msra.mxu1 %v4572_v4  ;;  %vm2064_vm6 = vcmp.lt.s32.totalorder %v2063_v58, %v4650_v44  ;;  %vm2182_vm7 = vcmp.lt.s32.totalorder %v2181_v22, %v4650_v44  ;;  %s2429_s27 = sadd.s32 12, %s5147_s23  ;;  %s2547_s28 = sadd.s32 13, %s5147_s23 }
0x15da   : > { %3911 = vmatpush3.msra.mxu0 %v4586_v6  ;;  %3921 = vmatprep.subr.mxu1 %v4440_v36  ;;  %s2665_s0 = sadd.s32 14, %s5147_s23  ;;  %s2783_s30 = sadd.s32 15, %s5147_s23 }
0x15db   : > { %3912 = vmatprep.subr.mxu0 %v4440_v36  ;;  %3922 = vmatpush3.msra.mxu1 %v4586_v6  ;;  %s1953_s2 = sadd.s32 1, %s4426_s2  }
0x15dc   : > { %3913 = vmatpush3.msra.mxu0 %v4600_v8  ;;  %3923 = vmatprep.subr.mxu1 %v4440_v36  ;;  %p1950_p6 = scmp.ge.s32.totalorder %s1953_s2, 19  }
0x15dd   : > { %3915 = vmatmul.mubr.msk.f32.vlgmr.msra.gmra.mxu0 %vm123_vm2, %v5113_v37  ;;  %3924 = vmatpush3.msra.mxu1 %v4600_v8  ;;  %vm3012_vm14 = vcmask (%p1950_p6), 523264  }
0x15de   : > { %3925 = vmatprep.mubr.msk.f32.mxu1 %vm4441_vm5, %v4440_v36  ;;  %3928 = vmatprep.subr.mxu0 %v4440_v36 }
0x15df   : > { %3929 = vmatpush3.msra.mxu0 %v4562_v2  ;;  %3936 = vmatprep.mubr.msk.f32.mxu0 %vm4441_vm5, %v4440_v36 }
0x15e0   : > { %3930 = vmatprep.subr.mxu0 %v4440_v36  ;;  %3939 = vmatprep.subr.mxu1 %v4440_v36 }
0x15e1   : > { %3931 = vmatpush3.msra.mxu0 %v4572_v4 }
0x15e2   : > { %3932 = vmatprep.subr.mxu0 %v4440_v36 }
0x15e3   : > { %3933 = vmatpush3.msra.mxu0 %v4586_v6 }
0x15e4   : > { %3934 = vmatprep.subr.mxu0 %v4440_v36 }
0x15e5   : > { %3935 = vmatpush3.msra.mxu0 %v4600_v8 }
0x15e6   : > { %3950 = vmatprep.subr.mxu0 %v4440_v36 }
0x169d   : > { %v2030_v39 = vpop.f32.mrf.mxu0 }
0x169e   : > { %v2034_v40 = vadd.f32 %v3517_v38, %v2030_v39 }
0x169f   : > { %v3916_v41 = vpop.f32.mrf.mxu0 }
0x16a0   : > { %4242 = vtanh.f32 %v2034_v40  ;;  %v3519_v43 = vmul.f32 -1.442695, %v2034_v40 }
0x16a2   : > { %4244 = vpow2.f32 %v3519_v43 }
0x16ad   : > { %v4243_v42 = vpop.eup %4242 }
0x16ae   : > { %2048 = vrot.lane.b32.xlu0 %v4243_v42, %s4442_s15 }
0x16af   : > { %v4245_v47 = vpop.eup %4244 }
0x16b0   : > { %v2038_v48 = vadd.f32 1.0, %v4245_v47  ;;  %v2299_v47 = vstv %s2193_s3 }
0x16b1   : > { %vm2300_vm8 = vcmp.lt.s32.totalorder %v2299_v47, %v4650_v44 }
0x16b2   : > { %2043 = vrot.lane.b32.xlu0 %v1955_v46, %s4443_s1  ;;  %4246 = vrcp.f32 %v2038_v48 }
0x16bf   : > { %v4247_v49 = vpop.eup %4246 }
0x1720   : > { %v2049_v50 = vpop.permute.xlu0 %2048 }
0x1721   : > { %v2051_v51 = vmul.f32 %v4247_v49, %v2049_v50 }
0x1723   : > { %2053 = vrot.lane.b32.xlu1 %v2051_v51, %s4443_s1 }
0x1724   : > { %v2044_v52 = vpop.permute.xlu0 %2043 }
0x1725   : > { %v2046_v53 = vmul.f32 %v4247_v49, %v2044_v52 }
0x1795   : > { %v2054_v54 = vpop.permute.xlu1 %2053 }
0x1796   : > { %v2056_v56 = vadd.f32 %v2054_v54, %v2046_v53  ;;  %v3532_v54 = vld [vmem:[%s5138_s14 + $0x2c] sm:$0xf] }
0x1798   : > { %4248 = vtanh.f32 %v2056_v56 }
0x17a5   : > { %v4249_v57 = vpop.eup %4248 }
0x17a6   : > { %2059 = vrot.lane.b32.xlu1 %v4249_v57, %s4442_s15 }
0x17aa   : > { %2071 = vrot.lane.b32.xlu1 %v2056_v56, %s4444_s22 }
0x1818   : > { %v2060_v59 = vpop.permute.xlu1 %2059 }
0x1819   : > { %v2062_v60 = vmul.f32 %v4247_v49, %v2060_v59 }
0x181b   : > { %2066 = vrot.lane.b32.xlu0 %v2062_v60, %s4443_s1 }
0x181c   : > { %v2072_v55 = vpop.permute.xlu1 %2071 }
0x181d   : > { %v2074_v61 = vsel %vm2064_vm6, %v2072_v55, %v1955_v46 }
0x181e   : > { %2161 = vrot.lane.b32.xlu1 %v2074_v61, %s4443_s1 }
0x188d   : > { %v2067_v62 = vpop.permute.xlu0 %2066 }
0x188e   : > { %v2069_v0 = vsel %vm2064_vm6, %v2067_v62, %v5113_v37 }
0x188f   : > { %3926 = vmatmul.mubr.msk.f32.vlgmr.msra.gmra.mxu1 %vm123_vm2, %v2069_v0 }
0x1890   : > { %3940 = vmatpush3.msra.mxu1 %v4562_v2  ;;  %3947 = vmatprep.mubr.msk.f32.mxu1 %vm4441_vm5, %v4440_v36  ;;  %v2162_v17 = vpop.permute.xlu1 %2161 }
0x1891   : > { %3941 = vmatprep.subr.mxu1 %v4440_v36 }
0x1892   : > { %3942 = vmatpush3.msra.mxu1 %v4572_v4 }
0x1893   : > { %3943 = vmatprep.subr.mxu1 %v4440_v36 }
0x1894   : > { %3944 = vmatpush3.msra.mxu1 %v4586_v6 }
0x1895   : > { %3945 = vmatprep.subr.mxu1 %v4440_v36 }
0x1896   : > { %3946 = vmatpush3.msra.mxu1 %v4600_v8 }
0x1897   : > { %3961 = vmatprep.subr.mxu1 %v4440_v36 }
0x194f   : > { %v2148_v10 = vpop.f32.mrf.mxu1 }
0x1950   : > { %v2152_v11 = vadd.f32 %v3522_v63, %v2148_v10 }
0x1951   : > { %v3927_v3 = vpop.f32.mrf.mxu1 }
0x1952   : > { %4250 = vtanh.f32 %v2152_v11  ;;  %v3524_v5 = vmul.f32 -1.442695, %v2152_v11 }
0x1954   : > { %4252 = vpow2.f32 %v3524_v5 }
0x195f   : > { %v4251_v12 = vpop.eup %4250 }
0x1960   : > { %2166 = vrot.lane.b32.xlu0 %v4251_v12, %s4442_s15 }
0x1961   : > { %v4253_v13 = vpop.eup %4252 }
0x1962   : > { %v2156_v14 = vadd.f32 1.0, %v4253_v13  ;;  %v2417_v13 = vstv %s2311_s26 }
0x1963   : > { %vm2418_vm9 = vcmp.lt.s32.totalorder %v2417_v13, %v4650_v44 }
0x1964   : > { %4254 = vrcp.f32 %v2156_v14 }
0x1971   : > { %v4255_v15 = vpop.eup %4254 }
0x1972   : > { %v2164_v18 = vmul.f32 %v4255_v15, %v2162_v17 }
0x19d2   : > { %v2167_v16 = vpop.permute.xlu0 %2166 }
0x19d3   : > { %v2169_v7 = vmul.f32 %v4255_v15, %v2167_v16 }
0x19d5   : > { %2171 = vrot.lane.b32.xlu0 %v2169_v7, %s4443_s1 }
0x1a47   : > { %v2172_v9 = vpop.permute.xlu0 %2171 }
0x1a48   : > { %v2174_v19 = vadd.f32 %v2172_v9, %v2164_v18  ;;  %v3537_v9 = vld [vmem:[%s5138_s14 + $0x30] sm:$0xf] }
0x1a4a   : > { %4256 = vtanh.f32 %v2174_v19 }
0x1a57   : > { %v4257_v20 = vpop.eup %4256 }
0x1a58   : > { %2177 = vrot.lane.b32.xlu1 %v4257_v20, %s4442_s15 }
0x1a5c   : > { %2189 = vrot.lane.b32.xlu1 %v2174_v19, %s4444_s22 }
0x1aca   : > { %v2178_v23 = vpop.permute.xlu1 %2177 }
0x1acb   : > { %v2180_v24 = vmul.f32 %v4255_v15, %v2178_v23 }
0x1acd   : > { %2184 = vrot.lane.b32.xlu0 %v2180_v24, %s4443_s1 }
0x1ace   : > { %v2190_v25 = vpop.permute.xlu1 %2189 }
0x1acf   : > { %v2192_v26 = vsel %vm2182_vm7, %v2190_v25, %v2074_v61 }
0x1ad0   : > { %2279 = vrot.lane.b32.xlu1 %v2192_v26, %s4443_s1 }
0x1b3f   : > { %v2185_v45 = vpop.permute.xlu0 %2184 }
0x1b40   : > { %v2187_v21 = vsel %vm2182_vm7, %v2185_v45, %v2069_v0 }
0x1b41   : > { %3937 = vmatmul.mubr.msk.f32.vlgmr.msra.gmra.mxu0 %vm123_vm2, %v2187_v21 }
0x1b42   : > { %3951 = vmatpush3.msra.mxu0 %v4562_v2  ;;  %3958 = vmatprep.mubr.msk.f32.mxu0 %vm4441_vm5, %v4440_v36  ;;  %v2280_v40 = vpop.permute.xlu1 %2279 }
0x1b43   : > { %3952 = vmatprep.subr.mxu0 %v4440_v36 }
0x1b44   : > { %3953 = vmatpush3.msra.mxu0 %v4572_v4 }
0x1b45   : > { %3954 = vmatprep.subr.mxu0 %v4440_v36 }
0x1b46   : > { %3955 = vmatpush3.msra.mxu0 %v4586_v6 }
0x1b47   : > { %3956 = vmatprep.subr.mxu0 %v4440_v36 }
0x1b48   : > { %3957 = vmatpush3.msra.mxu0 %v4600_v8 }
0x1b49   : > { %3972 = vmatprep.subr.mxu0 %v4440_v36 }
0x1c01   : > { %v2266_v28 = vpop.f32.mrf.mxu0 }
0x1c02   : > { %v2270_v29 = vadd.f32 %v3527_v27, %v2266_v28 }
0x1c03   : > { %v3938_v30 = vpop.f32.mrf.mxu0 }
0x1c04   : > { %4258 = vtanh.f32 %v2270_v29  ;;  %v3529_v32 = vmul.f32 -1.442695, %v2270_v29 }
0x1c06   : > { %4260 = vpow2.f32 %v3529_v32 }
0x1c11   : > { %v4259_v31 = vpop.eup %4258 }
0x1c12   : > { %2284 = vrot.lane.b32.xlu0 %v4259_v31, %s4442_s15 }
0x1c13   : > { %v4261_v33 = vpop.eup %4260 }
0x1c14   : > { %v2274_v34 = vadd.f32 1.0, %v4261_v33  ;;  %v2535_v33 = vstv %s2429_s27 }
0x1c15   : > { %vm2536_vm10 = vcmp.lt.s32.totalorder %v2535_v33, %v4650_v44 }
0x1c16   : > { %4262 = vrcp.f32 %v2274_v34 }
0x1c23   : > { %v4263_v37 = vpop.eup %4262 }
0x1c24   : > { %v2282_v41 = vmul.f32 %v4263_v37, %v2280_v40 }
0x1c84   : > { %v2285_v38 = vpop.permute.xlu0 %2284 }
0x1c85   : > { %v2287_v39 = vmul.f32 %v4263_v37, %v2285_v38 }
0x1c87   : > { %2289 = vrot.lane.b32.xlu0 %v2287_v39, %s4443_s1 }
0x1cf9   : > { %v2290_v42 = vpop.permute.xlu0 %2289 }
0x1cfa   : > { %v2292_v46 = vadd.f32 %v2290_v42, %v2282_v41  ;;  %v3542_v42 = vld [vmem:[%s5138_s14 + $0x34] sm:$0xf] }
0x1cfc   : > { %4264 = vtanh.f32 %v2292_v46 }
0x1d09   : > { %v4265_v43 = vpop.eup %4264 }
0x1d0a   : > { %2295 = vrot.lane.b32.xlu1 %v4265_v43, %s4442_s15 }
0x1d0e   : > { %2307 = vrot.lane.b32.xlu1 %v2292_v46, %s4444_s22 }
0x1d7c   : > { %v2296_v48 = vpop.permute.xlu1 %2295 }
0x1d7d   : > { %v2298_v49 = vmul.f32 %v4263_v37, %v2296_v48 }
0x1d7f   : > { %2302 = vrot.lane.b32.xlu0 %v2298_v49, %s4443_s1 }
0x1d80   : > { %v2308_v50 = vpop.permute.xlu1 %2307 }
0x1d81   : > { %v2310_v51 = vsel %vm2300_vm8, %v2308_v50, %v2192_v26 }
0x1d82   : > { %2397 = vrot.lane.b32.xlu1 %v2310_v51, %s4443_s1 }
0x1df1   : > { %v2303_v52 = vpop.permute.xlu0 %2302 }
0x1df2   : > { %v2305_v53 = vsel %vm2300_vm8, %v2303_v52, %v2187_v21 }
0x1df3   : > { %3948 = vmatmul.mubr.msk.f32.vlgmr.msra.gmra.mxu1 %vm123_vm2, %v2305_v53 }
0x1df4   : > { %3962 = vmatpush3.msra.mxu1 %v4562_v2  ;;  %3969 = vmatprep.mubr.msk.f32.mxu1 %vm4441_vm5, %v4440_v36  ;;  %v2398_v10 = vpop.permute.xlu1 %2397 }
0x1df5   : > { %3963 = vmatprep.subr.mxu1 %v4440_v36 }
0x1df6   : > { %3964 = vmatpush3.msra.mxu1 %v4572_v4 }
0x1df7   : > { %3965 = vmatprep.subr.mxu1 %v4440_v36 }
0x1df8   : > { %3966 = vmatpush3.msra.mxu1 %v4586_v6 }
0x1df9   : > { %3967 = vmatprep.subr.mxu1 %v4440_v36 }
0x1dfa   : > { %3968 = vmatpush3.msra.mxu1 %v4600_v8 }
0x1dfb   : > { %3983 = vmatprep.subr.mxu1 %v4440_v36 }
0x1eb3   : > { %v2384_v56 = vpop.f32.mrf.mxu1 }
0x1eb4   : > { %v2388_v57 = vadd.f32 %v3532_v54, %v2384_v56 }
0x1eb5   : > { %v3949_v58 = vpop.f32.mrf.mxu1 }
0x1eb6   : > { %4266 = vtanh.f32 %v2388_v57  ;;  %v3534_v60 = vmul.f32 -1.442695, %v2388_v57 }
0x1eb8   : > { %4268 = vpow2.f32 %v3534_v60  ;;  %v2653_v60 = vstv %s2547_s28 }
0x1eb9   : > { %vm2654_vm11 = vcmp.lt.s32.totalorder %v2653_v60, %v4650_v44  ;;  %v3008_v60 = vld [vmem:[%s5426_s7 + $0x20] sm:$0xff] (%p1950_p6) }
0x1ec3   : > { %v4267_v59 = vpop.eup %4266 }
0x1ec4   : > { %2402 = vrot.lane.b32.xlu0 %v4267_v59, %s4442_s15 }
0x1ec5   : > { %v4269_v55 = vpop.eup %4268 }
0x1ec6   : > { %v2392_v61 = vadd.f32 1.0, %v4269_v55 }
0x1ec8   : > { %4270 = vrcp.f32 %v2392_v61 }
0x1ed5   : > { %v4271_v62 = vpop.eup %4270 }
0x1ed6   : > { %v2400_v11 = vmul.f32 %v4271_v62, %v2398_v10 }
0x1f36   : > { %v2403_v0 = vpop.permute.xlu0 %2402 }
0x1f37   : > { %v2405_v63 = vmul.f32 %v4271_v62, %v2403_v0 }
0x1f39   : > { %2407 = vrot.lane.b32.xlu0 %v2405_v63, %s4443_s1 }
0x1fab   : > { %v2408_v3 = vpop.permute.xlu0 %2407 }
0x1fac   : > { %v2410_v12 = vadd.f32 %v2408_v3, %v2400_v11  ;;  %v3547_v11 = vld [vmem:[%s5138_s14 + $0x38] sm:$0xf] }
0x1fae   : > { %4272 = vtanh.f32 %v2410_v12 }
0x1fbb   : > { %v4273_v5 = vpop.eup %4272 }
0x1fbc   : > { %2413 = vrot.lane.b32.xlu1 %v4273_v5, %s4442_s15 }
0x1fc0   : > { %2425 = vrot.lane.b32.xlu1 %v2410_v12, %s4444_s22 }
0x202e   : > { %v2414_v14 = vpop.permute.xlu1 %2413 }
0x202f   : > { %v2416_v15 = vmul.f32 %v4271_v62, %v2414_v14 }
0x2031   : > { %2420 = vrot.lane.b32.xlu0 %v2416_v15, %s4443_s1 }
0x2032   : > { %v2426_v16 = vpop.permute.xlu1 %2425 }
0x2033   : > { %v2428_v7 = vsel %vm2418_vm9, %v2426_v16, %v2310_v51 }
0x2034   : > { %2515 = vrot.lane.b32.xlu1 %v2428_v7, %s4443_s1 }
0x20a3   : > { %v2421_v17 = vpop.permute.xlu0 %2420 }
0x20a4   : > { %v2423_v18 = vsel %vm2418_vm9, %v2421_v17, %v2305_v53 }
0x20a5   : > { %3959 = vmatmul.mubr.msk.f32.vlgmr.msra.gmra.mxu0 %vm123_vm2, %v2423_v18 }
0x20a6   : > { %3973 = vmatpush3.msra.mxu0 %v4562_v2  ;;  %3980 = vmatprep.mubr.msk.f32.mxu0 %vm4441_vm5, %v4440_v36  ;;  %v2516_v28 = vpop.permute.xlu1 %2515 }
0x20a7   : > { %3974 = vmatprep.subr.mxu0 %v4440_v36 }
0x20a8   : > { %3975 = vmatpush3.msra.mxu0 %v4572_v4 }
0x20a9   : > { %3976 = vmatprep.subr.mxu0 %v4440_v36 }
0x20aa   : > { %3977 = vmatpush3.msra.mxu0 %v4586_v6 }
0x20ab   : > { %3978 = vmatprep.subr.mxu0 %v4440_v36 }
0x20ac   : > { %3979 = vmatpush3.msra.mxu0 %v4600_v8 }
0x20ad   :  { %3994 = vmatprep.subr.mxu0 (%p1950_p6), %v4436_v1 }
0x2165   : > { %v2502_v19 = vpop.f32.mrf.mxu0 }
0x2166   : > { %v2506_v20 = vadd.f32 %v3537_v9, %v2502_v19 }
0x2167   : > { %v3960_v22 = vpop.f32.mrf.mxu0 }
0x2168   : > { %4274 = vtanh.f32 %v2506_v20  ;;  %v3539_v24 = vmul.f32 -1.442695, %v2506_v20 }
0x216a   : > { %4276 = vpow2.f32 %v3539_v24  ;;  %v2771_v24 = vstv %s2665_s0 }
0x216b   : > { %vm2772_vm12 = vcmp.lt.s32.totalorder %v2771_v24, %v4650_v44 }
0x2175   : > { %v4275_v23 = vpop.eup %4274 }
0x2176   : > { %2520 = vrot.lane.b32.xlu0 %v4275_v23, %s4442_s15 }
0x2177   : > { %v4277_v25 = vpop.eup %4276 }
0x2178   : > { %v2510_v26 = vadd.f32 1.0, %v4277_v25 }
0x217a   : > { %4278 = vrcp.f32 %v2510_v26 }
0x2187   : > { %v4279_v45 = vpop.eup %4278 }
0x2188   : > { %v2518_v29 = vmul.f32 %v4279_v45, %v2516_v28 }
0x21e8   : > { %v2521_v21 = vpop.permute.xlu0 %2520 }
0x21e9   : > { %v2523_v27 = vmul.f32 %v4279_v45, %v2521_v21 }
0x21eb   : > { %2525 = vrot.lane.b32.xlu0 %v2523_v27, %s4443_s1 }
0x225d   : > { %v2526_v30 = vpop.permute.xlu0 %2525 }
0x225e   : > { %v2528_v31 = vadd.f32 %v2526_v30, %v2518_v29  ;;  %v3552_v29 = vld [vmem:[%s5138_s14 + $0x3c] sm:$0xf] }
0x2260   : > { %4280 = vtanh.f32 %v2528_v31 }
0x226d   : > { %v4281_v32 = vpop.eup %4280 }
0x226e   : > { %2531 = vrot.lane.b32.xlu1 %v4281_v32, %s4442_s15 }
0x2272   : > { %2543 = vrot.lane.b32.xlu1 %v2528_v31, %s4444_s22 }
0x22e0   : > { %v2532_v34 = vpop.permute.xlu1 %2531 }
0x22e1   : > { %v2534_v37 = vmul.f32 %v4279_v45, %v2532_v34 }
0x22e3   : > { %2538 = vrot.lane.b32.xlu0 %v2534_v37, %s4443_s1 }
0x22e4   : > { %v2544_v38 = vpop.permute.xlu1 %2543 }
0x22e5   : > { %v2546_v39 = vsel %vm2536_vm10, %v2544_v38, %v2428_v7 }
0x22e6   : > { %2633 = vrot.lane.b32.xlu1 %v2546_v39, %s4443_s1 }
0x2355   : > { %v2539_v40 = vpop.permute.xlu0 %2538 }
0x2356   : > { %v2541_v41 = vsel %vm2536_vm10, %v2539_v40, %v2423_v18 }
0x2357   : > { %3970 = vmatmul.mubr.msk.f32.vlgmr.msra.gmra.mxu1 %vm123_vm2, %v2541_v41 }
0x2358   : > { %3984 = vmatpush3.msra.mxu1 %v4562_v2  ;;  %3991 = vmatprep.mubr.msk.f32.mxu1 %vm4441_vm5, %v4440_v36  ;;  %v3011_v2 = vld [vmem:[%s5426_s7 + $0x38] sm:$0xff] (%p1950_p6) }
0x2359   : > { %3985 = vmatprep.subr.mxu1 %v4440_v36 }
0x235a   : > { %3986 = vmatpush3.msra.mxu1 %v4572_v4  ;;  %v2913_v4 = vld [vmem:[%s5428_s9 + $0x8] sm:$0xff] (%p1950_p6) }
0x235b   : > { %3987 = vmatprep.subr.mxu1 %v4440_v36 }
0x235c   : > { %3988 = vmatpush3.msra.mxu1 %v4586_v6  ;;  %v3010_v6 = vld [vmem:[%s5426_s7 + $0x30] sm:$0xff] (%p1950_p6) }
0x235d   : > { %3989 = vmatprep.subr.mxu1 %v4440_v36  ;;  %v2634_v36 = vpop.permute.xlu1 %2633 }
0x235e   : > { %3990 = vmatpush3.msra.mxu1 %v4600_v8  ;;  %v3009_v8 = vld [vmem:[%s5426_s7 + $0x28] sm:$0xff] (%p1950_p6) }
0x235f   :  { %4005 = vmatprep.subr.mxu1 (%p1950_p6), %v4436_v1 }
0x2417   : > { %v2620_v46 = vpop.f32.mrf.mxu1 }
0x2418   : > { %v2624_v43 = vadd.f32 %v3542_v42, %v2620_v46 }
0x2419   : > { %v3971_v47 = vpop.f32.mrf.mxu1 }
0x241a   : > { %4282 = vtanh.f32 %v2624_v43  ;;  %v3544_v49 = vmul.f32 -1.442695, %v2624_v43 }
0x241c   : > { %4284 = vpow2.f32 %v3544_v49  ;;  %v2889_v49 = vstv %s2783_s30 }
0x241d   : > { %vm2890_vm13 = vcmp.lt.s32.totalorder %v2889_v49, %v4650_v44  ;;  %v2912_v44 = vld [vmem:[%s5428_s9] sm:$0xff] (%p1950_p6) }
0x241e   :  { %v3177_v49 = vld [vmem:[%s5432_s13] sm:$0xff] (%p1950_p6) }
0x2427   : > { %v4283_v48 = vpop.eup %4282 }
0x2428   : > { %2638 = vrot.lane.b32.xlu0 %v4283_v48, %s4442_s15 }
0x2429   : > { %v4285_v50 = vpop.eup %4284 }
0x242a   : > { %v2628_v51 = vadd.f32 1.0, %v4285_v50 }
0x242c   : > { %4286 = vrcp.f32 %v2628_v51 }
0x2439   : > { %v4287_v52 = vpop.eup %4286 }
0x243a   : > { %v2636_v56 = vmul.f32 %v4287_v52, %v2634_v36 }
0x249a   : > { %v2639_v53 = vpop.permute.xlu0 %2638 }
0x249b   : > { %v2641_v54 = vmul.f32 %v4287_v52, %v2639_v53 }
0x249d   : > { %2643 = vrot.lane.b32.xlu0 %v2641_v54, %s4443_s1 }
0x250f   : > { %v2644_v57 = vpop.permute.xlu0 %2643 }
0x2510   : > { %v2646_v58 = vadd.f32 %v2644_v57, %v2636_v56  ;;  %v2915_v56 = vld [vmem:[%s5428_s9 + $0x18] sm:$0xff] (%p1950_p6)  ;;  %v2914_v57 = vld [vmem:[%s5428_s9 + $0x10] sm:$0xff] (%p1950_p6) }
0x2512   : > { %4288 = vtanh.f32 %v2646_v58 }
0x251f   : > { %v4289_v59 = vpop.eup %4288 }
0x2520   : > { %2649 = vrot.lane.b32.xlu1 %v4289_v59, %s4442_s15 }
0x2524   : > { %2661 = vrot.lane.b32.xlu1 %v2646_v58, %s4444_s22  ;;  %v3555_v58 = vld [vmem:[%s5430_s11] ss:$0 sm:$0xff] (%p1950_p6) }
0x2525   :  { %v2911_v59 = vmul.f32 (%p1950_p6), %v3555_v58, %v5094_v35  ;;  %v3563_v58 = vld [vmem:[%s5435_s16] ss:$0 sm:$0xff] (%p1950_p6) }
0x2592   : > { %v2650_v55 = vpop.permute.xlu1 %2649 }
0x2593   : > { %v2652_v61 = vmul.f32 %v4287_v52, %v2650_v55  ;;  %v3007_v55 = vld [vmem:[%s5426_s7 + $0x18] sm:$0xff] (%p1950_p6) }
0x2595   : > { %2656 = vrot.lane.b32.xlu0 %v2652_v61, %s4443_s1  ;;  %v3006_v61 = vld [vmem:[%s5426_s7 + $0x10] sm:$0xff] (%p1950_p6) }
0x2596   : > { %v2662_v62 = vpop.permute.xlu1 %2661 }
0x2597   : > { %v2664_v0 = vsel %vm2654_vm11, %v2662_v62, %v2546_v39  ;;  %v3005_v62 = vld [vmem:[%s5426_s7 + $0x8] sm:$0xff] (%p1950_p6) }
0x2598   : > { %2751 = vrot.lane.b32.xlu1 %v2664_v0, %s4443_s1 }
0x2607   : > { %v2657_v63 = vpop.permute.xlu0 %2656 }
0x2608   : > { %v2659_v10 = vsel %vm2654_vm11, %v2657_v63, %v2541_v41  ;;  %v3557_v63 = vld [vmem:[%s5429_s10] ss:$0 sm:$0xff] (%p1950_p6) }
0x2609   : > { %3981 = vmatmul.mubr.msk.f32.vlgmr.msra.gmra.mxu0 %vm123_vm2, %v2659_v10 }
0x260a   : > { %v2752_v9 = vpop.permute.xlu1 %2751  ;;  %4002 = vmatprep.mubr.msk.f32.mxu0 (%p1950_p6), %vm4437_vm0, %v4436_v1  ;;  %3995 = vmatpush3.msra.mxu0 (%p1950_p6), %v2915_v56 }
0x260b   :  { %3996 = vmatprep.subr.mxu0 (%p1950_p6), %v4436_v1 }
0x260c   :  { %3997 = vmatpush3.msra.mxu0 (%p1950_p6), %v2914_v57 }
0x260d   :  { %3998 = vmatprep.subr.mxu0 (%p1950_p6), %v4436_v1 }
0x260e   :  { %3999 = vmatpush3.msra.mxu0 (%p1950_p6), %v2913_v4 }
0x260f   :  { %4000 = vmatprep.subr.mxu0 (%p1950_p6), %v4436_v1 }
0x2610   :  { %4001 = vmatpush3.msra.mxu0 (%p1950_p6), %v2912_v44 }
0x2611   :  { %4003 = vmatmul.mubr.msk.f32.vlgmr.msra.gmra.mxu0 (%p1950_p6), %vm123_vm2, %v2911_v59  ;;  %4024 = vmatprep.subr.mxu0 (%p1950_p6), %v4436_v1 }
0x2612   :  { %4032 = vmatprep.mubr.msk.f32.mxu0 (%p1950_p6), %vm4437_vm0, %v4436_v1 }
0x26c9   : > { %v2738_v3 = vpop.f32.mrf.mxu0 }
0x26ca   : > { %v2742_v12 = vadd.f32 %v3547_v11, %v2738_v3  ;;  %v2996_v11 = vmul.f32 (%p1950_p6), %v3557_v63, %v2911_v59 }
0x26cb   : > { %v3982_v5 = vpop.f32.mrf.mxu0 }
0x26cc   : > { %4290 = vtanh.f32 %v2742_v12  ;;  %v3549_v14 = vmul.f32 -1.442695, %v2742_v12  ;;  %v2997_v3 = vsel (%p1950_p6), %vm1945_vm3, %v2996_v11, 0.0 }
0x26ce   : > { %4292 = vpow2.f32 %v3549_v14 }
0x26d1   :  { %v2985_v12 = vpop.f32.mrf.mxu0 (%p1950_p6) }
0x26d3   :  { %v4004_v5 = vpop.f32.mrf.mxu0 (%p1950_p6) }
0x26d9   : > { %v4291_v13 = vpop.eup %4290 }
0x26da   : > { %2756 = vrot.lane.b32.xlu0 %v4291_v13, %s4442_s15 }
0x26db   : > { %v4293_v15 = vpop.eup %4292 }
0x26dc   : > { %v2746_v16 = vadd.f32 1.0, %v4293_v15 }
0x26de   : > { %4294 = vrcp.f32 %v2746_v16  ;;  %v3086_v16 = vld [vmem:[%s5427_s8] sm:$0xf] (%p1950_p6) }
0x26df   :  { %vm3087_vm15 = vcmp.gt.f32.partialorder (%p1950_p6), %v3086_v16, 0.5 }
0x26eb   : > { %v4295_v7 = vpop.eup %4294 }
0x26ec   : > { %v2754_v19 = vmul.f32 %v4295_v7, %v2752_v9 }
0x274c   : > { %v2757_v17 = vpop.permute.xlu0 %2756 }
0x274d   : > { %v2759_v18 = vmul.f32 %v4295_v7, %v2757_v17 }
0x274f   : > { %2761 = vrot.lane.b32.xlu0 %v2759_v18, %s4443_s1 }
0x27c1   : > { %v2762_v20 = vpop.permute.xlu0 %2761 }
0x27c2   : > { %v2764_v22 = vadd.f32 %v2762_v20, %v2754_v19 }
0x27c4   : > { %4296 = vtanh.f32 %v2764_v22 }
0x27d1   : > { %v4297_v23 = vpop.eup %4296 }
0x27d2   : > { %2767 = vrot.lane.b32.xlu1 %v4297_v23, %s4442_s15 }
0x27d6   : > { %2779 = vrot.lane.b32.xlu1 %v2764_v22, %s4444_s22 }
0x2844   : > { %v2768_v25 = vpop.permute.xlu1 %2767 }
0x2845   : > { %v2770_v26 = vmul.f32 %v4295_v7, %v2768_v25 }
0x2847   : > { %2774 = vrot.lane.b32.xlu0 %v2770_v26, %s4443_s1  ;;  %v3103_v26 = vld [vmem:[%s5425_s6 + $0x18] sm:$0xff] (%p1950_p6) }
0x2848   : > { %v2780_v45 = vpop.permute.xlu1 %2779  ;;  %4025 = vmatpush3.msra.mxu0 (%p1950_p6), %v3103_v26 }
0x2849   : > { %v2782_v21 = vsel %vm2772_vm12, %v2780_v45, %v2664_v0  ;;  %v3004_v0 = vld [vmem:[%s5426_s7] sm:$0xff] (%p1950_p6)  ;;  %v3102_v45 = vld [vmem:[%s5425_s6 + $0x10] sm:$0xff] (%p1950_p6)  ;;  %4026 = vmatprep.subr.mxu0 (%p1950_p6), %v4436_v1 }
0x284a   : > { %2869 = vrot.lane.b32.xlu1 %v2782_v21, %s4443_s1  ;;  %4027 = vmatpush3.msra.mxu0 (%p1950_p6), %v3102_v45 }
0x284b   :  { %4028 = vmatprep.subr.mxu0 (%p1950_p6), %v4436_v1 }
0x28b9   : > { %v2775_v27 = vpop.permute.xlu0 %2774 }
0x28ba   : > { %v2777_v28 = vsel %vm2772_vm12, %v2775_v27, %v2659_v10  ;;  %v3000_v10 = vld [vmem:[#allocation4] sm:$0x1] (%p1950_p6)  ;;  %v3100_v27 = vld [vmem:[%s5425_s6] sm:$0xff] (%p1950_p6) }
0x28bb   : > { %3992 = vmatmul.mubr.msk.f32.vlgmr.msra.gmra.mxu1 %vm123_vm2, %v2777_v28  ;;  %4076 = vpush (%p1950_p6), %v3000_v10 }
0x28bc   : > { %v2870_v42 = vpop.permute.xlu1 %2869  ;;  %4006 = vmatpush3.msra.mxu1 (%p1950_p6), %v3011_v2  ;;  %4021 = vmatprep.mubr.msk.f32.mxu1 (%p1950_p6), %vm4437_vm0, %v4436_v1 }
0x28bd   :  { %4007 = vmatprep.subr.mxu1 (%p1950_p6), %v4436_v1 }
0x28be   :  { %4008 = vmatpush3.msra.mxu1 (%p1950_p6), %v3010_v6 }
0x28bf   :  { %4009 = vmatprep.subr.mxu1 (%p1950_p6), %v4436_v1 }
0x28c0   :  { %4010 = vmatpush3.msra.mxu1 (%p1950_p6), %v3009_v8 }
0x28c1   :  { %4011 = vmatprep.subr.mxu1 (%p1950_p6), %v4436_v1 }
0x28c2   :  { %4012 = vmatpush3.msra.mxu1 (%p1950_p6), %v3008_v60 }
0x28c3   :  { %4013 = vmatprep.subr.mxu1 (%p1950_p6), %v4436_v1 }
0x28c4   :  { %4014 = vmatpush3.msra.mxu1 (%p1950_p6), %v3007_v55 }
0x28c5   :  { %4015 = vmatprep.subr.mxu1 (%p1950_p6), %v4436_v1 }
0x28c6   :  { %4016 = vmatpush3.msra.mxu1 (%p1950_p6), %v3006_v61 }
0x28c7   :  { %4017 = vmatprep.subr.mxu1 (%p1950_p6), %v4436_v1 }
0x28c8   :  { %4018 = vmatpush3.msra.mxu1 (%p1950_p6), %v3005_v62 }
0x28c9   :  { %4019 = vmatprep.subr.mxu1 (%p1950_p6), %v4436_v1 }
0x28ca   :  { %4020 = vmatpush3.msra.mxu1 (%p1950_p6), %v3004_v0 }
0x28cb   :  { %4046 = vmatprep.subr.mxu1 (%p1950_p6), %v4436_v1  ;;  %4022 = vmatmul.mubr.msk.f32.vlgmr.msra.gmra.mxu1 (%p1950_p6), %vm3012_vm14, %v2985_v12 }
0x28cc   :  { %4062 = vmatprep.mubr.msk.f32.mxu1 (%p1950_p6), %vm4437_vm0, %v4436_v1 }
0x28ec   :  { %s4077_s7 = spop (%p1950_p6), %4076 }
0x28ed   :  { %v3002_v13 = vstv (%p1950_p6), %s4077_s7 }
0x297b   : > { %v2856_v30 = vpop.f32.mrf.mxu1 }
0x297c   : > { %v2860_v31 = vadd.f32 %v3552_v29, %v2856_v30  ;;  %v3183_v29 = vld [vmem:[%s5432_s13 + $0x30] sm:$0xff] (%p1950_p6)  ;;  %v3182_v30 = vld [vmem:[%s5432_s13 + $0x28] sm:$0xff] (%p1950_p6) }
0x297d   : > { %v3993_v32 = vpop.f32.mrf.mxu1 }
0x297e   : > { %4298 = vtanh.f32 %v2860_v31  ;;  %v3554_v34 = vmul.f32 -1.442695, %v2860_v31  ;;  %v3181_v31 = vld [vmem:[%s5432_s13 + $0x20] sm:$0xff] (%p1950_p6)  ;;  %v3180_v32 = vld [vmem:[%s5432_s13 + $0x18] sm:$0xff] (%p1950_p6) }
0x2980   : > { %4300 = vpow2.f32 %v3554_v34  ;;  %v3178_v34 = vld [vmem:[%s5432_s13 + $0x8] sm:$0xff] (%p1950_p6) }
0x298b   : > { %v4299_v33 = vpop.eup %4298  ;;  %v3082_v7 = vpop.f32.mrf.mxu1 (%p1950_p6) }
0x298c   : > { %2874 = vrot.lane.b32.xlu0 %v4299_v33, %s4442_s15  ;;  %v3179_v33 = vld [vmem:[%s5432_s13 + $0x10] sm:$0xff] (%p1950_p6) }
0x298d   : > { %v4301_v37 = vpop.eup %4300  ;;  %v4023_v18 = vpop.f32.mrf.mxu1 (%p1950_p6) }
0x298e   : > { %v2864_v38 = vadd.f32 1.0, %v4301_v37 }
0x2990   : > { %4302 = vrcp.f32 %v2864_v38 }
0x299d   : > { %v4303_v39 = vpop.eup %4302 }
0x299e   : > { %v2872_v46 = vmul.f32 %v4303_v39, %v2870_v42  ;;  %v3186_v42 = vld [vmem:[#allocation10 + $0x8] sm:$0xff] (%p1950_p6) }
0x29fe   : > { %v2875_v40 = vpop.permute.xlu0 %2874 }
0x29ff   : > { %v2877_v41 = vmul.f32 %v4303_v39, %v2875_v40  ;;  %v3188_v40 = vld [vmem:[#allocation10 + $0x18] sm:$0xff] (%p1950_p6) }
0x2a01   : > { %2879 = vrot.lane.b32.xlu0 %v2877_v41, %s4443_s1  ;;  %v3187_v41 = vld [vmem:[#allocation10 + $0x10] sm:$0xff] (%p1950_p6) }
0x2a73   : > { %v2880_v43 = vpop.permute.xlu0 %2879 }
0x2a74   : > { %v2882_v47 = vadd.f32 %v2880_v43, %v2872_v46  ;;  %v3185_v46 = vld [vmem:[#allocation10] sm:$0xff] (%p1950_p6)  ;;  %v3338_v43 = vld [vmem:[#allocation11 + $0x18] sm:$0xff] (%p1950_p6) }
0x2a76   : > { %4304 = vtanh.f32 %v2882_v47 }
0x2a83   : > { %v4305_v48 = vpop.eup %4304 }
0x2a84   : > { %2885 = vrot.lane.b32.xlu1 %v4305_v48, %s4442_s15  ;;  %v3336_v48 = vld [vmem:[#allocation11 + $0x8] sm:$0xff] (%p1950_p6) }
0x2a88   : > { %2897 = vrot.lane.b32.xlu1 %v2882_v47, %s4444_s22  ;;  %v3337_v47 = vld [vmem:[#allocation11 + $0x10] sm:$0xff] (%p1950_p6) }
0x2af6   : > { %v2886_v50 = vpop.permute.xlu1 %2885 }
0x2af7   : > { %v2888_v51 = vmul.f32 %v4303_v39, %v2886_v50  ;;  %v3335_v50 = vld [vmem:[#allocation11] sm:$0xff] (%p1950_p6) }
0x2af9   : > { %2892 = vrot.lane.b32.xlu0 %v2888_v51, %s4443_s1 }
0x2afa   : > { %v2898_v52 = vpop.permute.xlu1 %2897 }
0x2afb   : > { %v2900_v53 = vsel %vm2890_vm13, %v2898_v52, %v2782_v21  ;;  %v3101_v21 = vld [vmem:[%s5425_s6 + $0x8] sm:$0xff] (%p1950_p6) }
0x2afc   : > { %2902 = vst.msk [vmem:[#allocation3] sm:$0xf] %vm1945_vm3, %v2900_v53  ;;  %4029 = vmatpush3.msra.mxu0 (%p1950_p6), %v3101_v21 }
0x2afd   :  { %4030 = vmatprep.subr.mxu0 (%p1950_p6), %v4436_v1 }
0x2afe   :  { %4031 = vmatpush3.msra.mxu0 (%p1950_p6), %v3100_v27 }
0x2aff   :  { %4035 = vmatprep.subr.mxu0 (%p1950_p6), %v4436_v1 }
0x2b18   :  { %2998 = vadd.xlane.f32.xlu0 (%p1950_p6), %v2997_v3 }
0x2b69   :  { %1952 = sbr.rel (!%p1950_p6) target bundleno = 5588 (0x15d4), region = 133 }
0x2b6b   : > { %v2893_v54 = vpop.permute.xlu0 %2892 }
0x2b6c   : > { %v2895_v36 = vsel %vm2890_vm13, %v2893_v54, %v2777_v28  ;;  %v3184_v28 = vld [vmem:[%s5432_s13 + $0x38] sm:$0xff] (%p1950_p6)  ;;  %s4445_s13 = smov (%p1950_p6), [#allocation13]  }
0x2b6d   : > { %2901 = vst.msk [vmem:[#allocation2] sm:$0xf] %vm1945_vm3, %v2895_v36  ;;  %4047 = vmatpush3.msra.mxu1 (%p1950_p6), %v3184_v28  ;;  %s3429_s18 = sshll.u32 (%p1950_p6), %s4445_s13, 4  ;;  %s3430_s18 = int_to_ptr.vmem [resolvable:$true] %s3429_s18 }
0x2b6e   :  { %4048 = vmatprep.subr.mxu1 %v4436_v1  ;;  %s4392_s10 = scalar_lea.vmem %s3430_s18, 64  ;;  %p4397_p8 = scmp.lt.s32.totalorder %s3430_s18, %s3430_s18 }
0x2b6f   :  { %4049 = vmatpush3.msra.mxu1 %v3183_v29  ;;  %p4393_p7 = scmp.ne.s32.totalorder %s3430_s18, %s4392_s10  ;;  %p4398_p9 = scmp.lt.s32.totalorder %s4392_s10, %s4392_s10 }
0x2b70   :  { %4050 = vmatprep.subr.mxu1 %v4436_v1 }
0x2b71   :  { %4051 = vmatpush3.msra.mxu1 %v3182_v30  ;;  %p4399_p10 = por %p4398_p9, %p4397_p8 }
0x2b72   :  { %4052 = vmatprep.subr.mxu1 %v4436_v1 }
0x2b73   :  { %4053 = vmatpush3.msra.mxu1 %v3181_v31  ;;  %p4400_p11 = pnand %p4399_p10, %p4393_p7 }
0x2b74   :  { %4054 = vmatprep.subr.mxu1 %v4436_v1 }
0x2b75   :  { %4055 = vmatpush3.msra.mxu1 %v3180_v32 }
0x2b76   :  { %4056 = vmatprep.subr.mxu1 %v4436_v1 }
0x2b77   :  { %4057 = vmatpush3.msra.mxu1 %v3179_v33 }
0x2b78   :  { %4058 = vmatprep.subr.mxu1 %v4436_v1 }
0x2b79   :  { %4059 = vmatpush3.msra.mxu1 %v3178_v34 }
0x2b7a   :  { %4060 = vmatprep.subr.mxu1 %v4436_v1 }
0x2b7b   :  { %4061 = vmatpush3.msra.mxu1 %v3177_v49 }
0x2ba1   :  { %v2999_v14 = vpop.xlane.xlu0 %2998 }
0x2ba2   :  { %v3003_v15 = vadd.f32 %v3002_v13, %v2999_v14 }
0x2ba4   :  { %v3083_v17 = vadd.f32 %v3082_v7, %v3003_v15 }
0x2ba6   :  { %v3088_v9 = vsel %vm3087_vm15, %v3083_v17, -1e+30 }
0x2ba7   :  { %v3089_v19 = vsel %vm1945_vm3, %v3088_v9, -inf }
0x2ba8   :  { %3090 = vmax.xlane.f32.xlu0 %v3089_v19 }
0x2c31   :  { %v3091_v20 = vpop.xlane.xlu0 %3090 }
0x2c32   :  { %v3092_v22 = vsub.f32 %v3088_v9, %v3091_v20 }
0x2c34   :  { %v3093_v23 = vmul.f32 1.442695, %v3092_v22 }
0x2c36   :  { %4306 = vpow2.f32 %v3093_v23 }
0x2c43   :  { %v4307_v24 = vpop.eup %4306 }
0x2c44   :  { %v3095_v25 = vsel %vm1945_vm3, %v4307_v24, 0.0 }
0x2c45   :  { %3096 = vadd.xlane.f32.xlu1 %v3095_v25 }
0x2cce   :  { %v3097_v37 = vpop.xlane.xlu1 %3096 }
0x2ccf   :  { %4308 = vrcp.f32 %v3097_v37 }
0x2cdc   :  { %v4309_v38 = vpop.eup %4308 }
0x2cdd   :  { %v3099_v39 = vmul.f32 %v4309_v38, %v4307_v24 }
0x2cdf   :  { %4033 = vmatmul.mubr.msk.f32.vlgmr.msra.gmra.mxu0 %vm123_vm2, %v3099_v39 }
0x2ce0   :  { %4036 = vmatpush3.msra.mxu0 %v3188_v40  ;;  %4043 = vmatprep.mubr.msk.f32.mxu0 %vm4437_vm0, %v4436_v1 }
0x2ce1   :  { %4037 = vmatprep.subr.mxu0 %v4436_v1 }
0x2ce2   :  { %4038 = vmatpush3.msra.mxu0 %v3187_v41 }
0x2ce3   :  { %4039 = vmatprep.subr.mxu0 %v4436_v1 }
0x2ce4   :  { %4040 = vmatpush3.msra.mxu0 %v3186_v42 }
0x2ce5   :  { %4041 = vmatprep.subr.mxu0 %v4436_v1 }
0x2ce6   :  { %4042 = vmatpush3.msra.mxu0 %v3185_v46 }
0x2ce7   :  { %4065 = vmatprep.subr.mxu0 %v4436_v1  ;;  %4044 = vmatmul.mubr.msk.f32.vlgmr.msra.gmra.mxu0 %vm123_vm2, %v5094_v35  ;;  %v2903_v35 = vld [vmem:[#allocation2] sm:$0xf] }
0x2ce8   :  { %4066 = vmatpush3.msra.mxu0 %v3338_v43  ;;  %4073 = vmatprep.mubr.msk.f32.mxu0 %vm4437_vm0, %v4436_v1 }
0x2ce9   :  { %4067 = vmatprep.subr.mxu0 %v4436_v1 }
0x2cea   :  { %4068 = vmatpush3.msra.mxu0 %v3337_v47 }
0x2ceb   :  { %4069 = vmatprep.subr.mxu0 %v4436_v1 }
0x2cec   :  { %4070 = vmatpush3.msra.mxu0 %v3336_v48 }
0x2ced   :  { %4071 = vmatprep.subr.mxu0 %v4436_v1 }
0x2cee   :  { %4072 = vmatpush3.msra.mxu0 %v3335_v50 }
0x2cef   :  { %4074 = vmatmul.mubr.msk.f32.vlgmr.msra.gmra.mxu0 %vm123_vm2, %v2903_v35 }
0x2d9f   :  { %v3173_v51 = vpop.f32.mrf.mxu0 }
0x2da0   :  { %4063 = vmatmul.mubr.msk.f32.vlgmr.msra.gmra.mxu1 %vm3012_vm14, %v3173_v51 }
0x2da1   :  { %v4034_v52 = vpop.f32.mrf.mxu0 }
0x2da7   :  { %v3258_v53 = vpop.f32.mrf.mxu0 }
0x2da9   :  { %v4045_v54 = vpop.f32.mrf.mxu0 }
0x2daf   :  { %v3408_v36 = vpop.f32.mrf.mxu0 }
0x2db1   :  { %v4075_v56 = vpop.f32.mrf.mxu0 }
0x2e60   :  { %v3331_v57 = vpop.f32.mrf.mxu1 }
0x2e61   :  { %v3332_v1 = vadd.f32 %v3331_v57, %v3258_v53 }
0x2e62   :  { %v4064_v2 = vpop.f32.mrf.mxu1 }
0x2e63   :  { %v3412_v4 = vadd.f32 %v3408_v36, %v3332_v1 }
0x2e65   :  { %v3420_v6 = vadd.f32 %v3563_v58, %v3412_v4 }
0x2e67   :  { %4310 = vtanh.f32 %v3420_v6 }
0x2e74   :  { %v4311_v8 = vpop.eup %4310 }
0x2e75   :  { %3422 = vst.msk [vmem:[#allocation13] sm:$0xf] %vm1945_vm3, %v4311_v8 }
0x2e76   :  { %4403 = shalt.err (!%p4400_p11)
}
0x2e77   :  { %3432 = dma.vmem_to_hbm [thread:$0]  %s3430_s18, 64, %s5436_s17, [#allocation7]  }
0x2e78   :  { %4422 = dma.done.wait [#allocation7], 64  }
0x2e79   :  { %4423 = vsyncadd [#allocation7], 4294967232 }
0x2e7a   :  { %3436 = vsyncpa [#allocation6], 1 }
0x2e7b   :  { %3437 = vsyncpa [#allocation9], 1 }
0x2e7c   :  { %3438 = vsyncpa [#allocation12], 1 }
0x2e7d   :  { %3439 = vsyncpa [#allocation7], 1 }

</bundles_post_ra>
